<compile_context>
chip_gen: v6e
topology: v6e:2x2x1
jax: 0.10.0
libtpu: 0.0.40
codegen_flags: <defaults>
</compile_context>

<pallas_src>
import numpy as np

import jax
import jax.numpy as jnp
from jax import lax
from jax.experimental import pallas as pl
from jax.experimental.pallas import tpu as pltpu


# ----------------------------------------------------------------------------
# small helpers
# ----------------------------------------------------------------------------
def _pick_block(n, candidates):
    """Largest candidate dividing n, else n (full-array block is always legal)."""
    for c in candidates:
        if n % c == 0:
            return c
    return n


def _shift_down(a):
    """out[r] = a[r-1]; out[0] = 0 (rows move toward higher index)."""
    zero = jnp.zeros((1, a.shape[1]), a.dtype)
    return jnp.concatenate([zero, a[:-1, :]], axis=0)


def _shift_up(a):
    """out[r] = a[r+1]; out[-1] = 0."""
    zero = jnp.zeros((1, a.shape[1]), a.dtype)
    return jnp.concatenate([a[1:, :], zero], axis=0)


# ----------------------------------------------------------------------------
# Kernel 1: conv1 + ReLU + AvgPool2x2 + conv2 + ReLU + MaxPool2x2
#           (G images per grid step, rows stacked along M)
# ----------------------------------------------------------------------------
def _conv_stack_kernel(x_ref, mt_ref, mb_ref, w1_ref, b1_ref, w2_ref, b2_ref,
                       o_ref):
    """Row index r = g*7 + m  (g = image in block, m in [0,7)).

    x_ref  : (4, R, 28) f32   class c row = input row h = 4m + c
    mt_ref : (R, 1)  bf16     1.0 iff m != 0  (a row above exists in-image)
    mb_ref : (R, 1)  bf16     1.0 iff m != 6  (a row below exists in-image)
    w1_ref : (3, 28, 512) bf16  banded conv1 weights, out lane:
                                 w=2u -> u*16+co, w=2u+1 -> 256+u*16+co
    b1_ref : (1, 512) f32
    w2_ref : (3, 256, 512) bf16 banded conv2 weights, in lane w2*16+ci,
                                 out lane: w2=2u -> u*32+co, w2=2u+1 -> 256+...
    b2_ref : (1, 512) f32
    o_ref  : (R, 256) bf16    pooled features, lane = w3*32 + co (224 used)
    """
    f32 = jnp.float32
    bf16 = jnp.bfloat16

    mt = mt_ref[...]                         # (R, 1) bf16
    mb = mb_ref[...]

    # input row classes (h = 4m + c), cast once to bf16 for the MXU
    x0 = x_ref[0].astype(bf16)               # h = 4m
    x1 = x_ref[1].astype(bf16)               # h = 4m + 1
    x2 = x_ref[2].astype(bf16)               # h = 4m + 2
    x3 = x_ref[3].astype(bf16)               # h = 4m + 3
    x3m = _shift_down(x3) * mt               # h = 4m - 1 (zero at image top)
    x0p = _shift_up(x0) * mb                 # h = 4m + 4 (zero at image bottom)

    w1_0 = w1_ref[0]
    w1_1 = w1_ref[1]
    w1_2 = w1_ref[2]
    b1 = b1_ref[...]

    def conv1(up, mid, dn):                  # banded 3x3 conv, kw folded in W
        return (jnp.dot(up, w1_0, preferred_element_type=f32)
                + jnp.dot(mid, w1_1, preferred_element_type=f32)
                + jnp.dot(dn, w1_2, preferred_element_type=f32))

    a_c0 = jnp.maximum(conv1(x3m, x0, x1) + b1, 0.0)   # rows h = 4m
    a_c1 = jnp.maximum(conv1(x0, x1, x2) + b1, 0.0)    # rows h = 4m + 1
    a_c2 = jnp.maximum(conv1(x1, x2, x3) + b1, 0.0)    # rows h = 4m + 2
    a_c3 = jnp.maximum(conv1(x2, x3, x0p) + b1, 0.0)   # rows h = 4m + 3

    # AvgPool2d(2,2): row pairs are (class0,class1) / (class2,class3),
    # column pairs are the 256-lane-aligned halves (even-w / odd-w lanes).
    p_e = ((a_c0[:, 0:256] + a_c0[:, 256:512])
           + (a_c1[:, 0:256] + a_c1[:, 256:512])) * 0.25    # h2 = 2m
    p_o = ((a_c2[:, 0:256] + a_c2[:, 256:512])
           + (a_c3[:, 0:256] + a_c3[:, 256:512])) * 0.25    # h2 = 2m + 1
    pe = p_e.astype(bf16)
    po = p_o.astype(bf16)
    pom = _shift_down(po) * mt               # h2 = 2m - 1
    pep = _shift_up(pe) * mb                 # h2 = 2m + 2

    w2_0 = w2_ref[0]
    w2_1 = w2_ref[1]
    w2_2 = w2_ref[2]
    b2 = b2_ref[...]

    acc_e = (jnp.dot(pom, w2_0, preferred_element_type=f32)
             + jnp.dot(pe, w2_1, preferred_element_type=f32)
             + jnp.dot(po, w2_2, preferred_element_type=f32))   # conv2 h2 = 2m
    acc_o = (jnp.dot(pe, w2_0, preferred_element_type=f32)
             + jnp.dot(po, w2_1, preferred_element_type=f32)
             + jnp.dot(pep, w2_2, preferred_element_type=f32))  # h2 = 2m + 1
    a_e = jnp.maximum(acc_e + b2, 0.0)
    a_o = jnp.maximum(acc_o + b2, 0.0)

    # MaxPool2d(2,2): rows = max(even h2, odd h2); cols = max of lane halves.
    mr = jnp.maximum(a_e, a_o)                                  # (R, 512)
    feat = jnp.maximum(mr[:, 0:256], mr[:, 256:512])            # (R, 256)
    o_ref[...] = feat.astype(o_ref.dtype)


def conv_features(x4, mt, mb, cp):
    """x4: (4, B*7, 28) f32 row-class layout -> (B*7, 256) bf16 features."""
    rows = x4.shape[1]
    B = rows // 7
    # G multiple of 16 keeps bf16 block tiling happy; fallback = whole batch.
    G = _pick_block(B, (32, 16))
    R = G * 7
    return pl.pallas_call(
        _conv_stack_kernel,
        out_shape=jax.ShapeDtypeStruct((rows, 256), jnp.bfloat16),
        grid=(B // G,),
        in_specs=[
            pl.BlockSpec((4, R, 28), lambda i: (0, i, 0)),     # input classes
            pl.BlockSpec((R, 1), lambda i: (i, 0)),            # top mask
            pl.BlockSpec((R, 1), lambda i: (i, 0)),            # bottom mask
            pl.BlockSpec((3, 28, 512), lambda i: (0, 0, 0)),   # banded W1
            pl.BlockSpec((1, 512), lambda i: (0, 0)),          # b1 (lane-tiled)
            pl.BlockSpec((3, 256, 512), lambda i: (0, 0, 0)),  # banded W2
            pl.BlockSpec((1, 512), lambda i: (0, 0)),          # b2 (lane-tiled)
        ],
        out_specs=pl.BlockSpec((R, 256), lambda i: (i, 0)),
        compiler_params=pltpu.CompilerParams(
            dimension_semantics=("parallel",)),
    )(x4, mt, mb, cp["w1b"], cp["b1row"], cp["w2b"], cp["b2row"])


# ----------------------------------------------------------------------------
# Kernel 2: MLP head (fc1+ReLU -> fc2+ReLU -> out), single K=1792 fc1 dot
# ----------------------------------------------------------------------------
def _mlp_kernel(f_ref, w1_ref, b1_ref, w2_ref, b2_ref, w3_ref, b3_ref, o_ref):
    f32 = jnp.float32
    h1 = jnp.dot(f_ref[...], w1_ref[...], preferred_element_type=f32)
    h1 = jnp.maximum(h1 + b1_ref[...], 0.0)
    h2 = jnp.dot(h1.astype(jnp.bfloat16), w2_ref[...],
                 preferred_element_type=f32)
    h2 = jnp.maximum(h2 + b2_ref[...], 0.0)
    out = jnp.dot(h2.astype(jnp.bfloat16), w3_ref[...],
                  preferred_element_type=f32) + b3_ref[...]
    o_ref[...] = out.astype(o_ref.dtype)


def mlp_head(feat2d, cp):
    """feat2d: (B, 1792) bf16 -> logits (B, 10) f32."""
    B = feat2d.shape[0]
    bm = _pick_block(B, (512, 256, 128, 64, 32, 16))
    return pl.pallas_call(
        _mlp_kernel,
        out_shape=jax.ShapeDtypeStruct((B, 10), jnp.float32),
        grid=(B // bm,),
        in_specs=[
            pl.BlockSpec((bm, 1792), lambda i: (i, 0)),
            pl.BlockSpec((1792, 128), lambda i: (0, 0)),
            pl.BlockSpec((1, 128), lambda i: (0, 0)),
            pl.BlockSpec((128, 64), lambda i: (0, 0)),
            pl.BlockSpec((1, 64), lambda i: (0, 0)),
            pl.BlockSpec((64, 10), lambda i: (0, 0)),
            pl.BlockSpec((1, 10), lambda i: (0, 0)),
        ],
        out_specs=pl.BlockSpec((bm, 10), lambda i: (i, 0)),
        compiler_params=pltpu.CompilerParams(
            dimension_semantics=("parallel",)),
    )(feat2d, cp["wf1r"], cp["bf1"], cp["wf2"], cp["bf2"], cp["wo"], cp["bo"])


# ----------------------------------------------------------------------------
# Host-side weight preparation (one time, pure numpy weight shuffle)
# ----------------------------------------------------------------------------
def prepare_params(params):
    def lane1(w):      # conv1 output lane base for spatial w (16 channels)
        return (w // 2) * 16 + (256 if (w % 2) else 0)

    def lane2(w2):     # conv2 output lane base for spatial w2 (32 channels)
        return (w2 // 2) * 32 + (256 if (w2 % 2) else 0)

    # conv1 -> banded weights with kw padding + pool-column permutation folded
    wc1 = np.asarray(params["w_conv1"], np.float32)            # (16, 1, 3, 3)
    w1b = np.zeros((3, 28, 512), np.float32)
    for kh in range(3):
        for kw in range(3):
            for w in range(28):
                j = w + kw - 1
                if 0 <= j < 28:
                    base = lane1(w)
                    w1b[kh, j, base:base + 16] = wc1[:, 0, kh, kw]
    b1 = np.asarray(params["b_conv1"], np.float32)
    b1row = np.zeros((1, 512), np.float32)
    for w in range(28):
        b1row[0, lane1(w):lane1(w) + 16] = b1

    # conv2 -> banded weights (input lane = w2*16 + ci, output permuted)
    wc2 = np.asarray(params["w_conv2"], np.float32)            # (32, 16, 3, 3)
    w2b = np.zeros((3, 256, 512), np.float32)
    for kh in range(3):
        for kw in range(3):
            blk = wc2[:, :, kh, kw].T                          # (ci=16, co=32)
            for w2 in range(14):
                j2 = w2 + kw - 1
                if 0 <= j2 < 14:
                    base = lane2(w2)
                    w2b[kh, j2 * 16:(j2 + 1) * 16, base:base + 32] = blk
    b2 = np.asarray(params["b_conv2"], np.float32)
    b2row = np.zeros((1, 512), np.float32)
    for w2 in range(14):
        b2row[0, lane2(w2):lane2(w2) + 32] = b2

    # fc1: fold PyTorch x.view(B,-1) (flat = co*49 + h3*7 + w3) into the
    # feature layout (h3, lane = w3*32 + co, padded to 256 lanes).
    wf1 = np.asarray(params["w_fc1"], np.float32)              # (128, 1568)
    t = wf1.reshape(128, 32, 7, 7).transpose(2, 3, 1, 0)       # (h3, w3, co, out)
    wf1r = np.zeros((7, 256, 128), np.float32)
    wf1r[:, :224, :] = t.reshape(7, 224, 128)
    wf1r = wf1r.reshape(7 * 256, 128)                          # (1792, 128)
    wf2 = np.asarray(params["w_fc2"], np.float32).T            # (128, 64)
    wo = np.asarray(params["w_out"], np.float32).T             # (64, 10)

    f32 = lambda a: jnp.asarray(a, jnp.float32)
    bf16 = lambda a: jnp.asarray(a, jnp.bfloat16)
    return dict(
        w1b=bf16(w1b), b1row=f32(b1row),
        w2b=bf16(w2b), b2row=f32(b2row),
        wf1r=bf16(wf1r),
        bf1=f32(np.asarray(params["b_fc1"], np.float32)[None, :]),
        wf2=bf16(wf2),
        bf2=f32(np.asarray(params["b_fc2"], np.float32)[None, :]),
        wo=bf16(wo),
        bo=f32(np.asarray(params["b_out"], np.float32)[None, :]),
    )


# ----------------------------------------------------------------------------
# Parameters (deterministic init, PyTorch-shaped)
# ----------------------------------------------------------------------------
def init_params(key):
    ks = jax.random.split(key, 10)

    def u(k, shape, fan_in):
        bound = 1.0 / jnp.sqrt(jnp.float32(fan_in))
        return jax.random.uniform(k, shape, jnp.float32, -bound, bound)

    return dict(
        w_conv1=u(ks[0], (16, 1, 3, 3), 1 * 9),
        b_conv1=u(ks[1], (16,), 1 * 9),
        w_conv2=u(ks[2], (32, 16, 3, 3), 16 * 9),
        b_conv2=u(ks[3], (32,), 16 * 9),
        w_fc1=u(ks[4], (128, 32 * 7 * 7), 32 * 7 * 7),   # PyTorch Linear (out, in)
        b_fc1=u(ks[5], (128,), 32 * 7 * 7),
        w_fc2=u(ks[6], (64, 128), 128),
        b_fc2=u(ks[7], (64,), 128),
        w_out=u(ks[8], (10, 64), 64),
        b_out=u(ks[9], (10,), 64),
    )


# ----------------------------------------------------------------------------
# Forward pass (matches PyTorch ConvNet.forward)
# ----------------------------------------------------------------------------
def convnet_forward(x_nchw, cparams):
    B = x_nchw.shape[0]
    x = x_nchw.reshape(B, 28, 28).astype(jnp.float32)          # Cin = 1
    # Row-class-major layout: x4[c, g*7 + m, :] = x[g, 4*m + c, :]
    x4 = x.reshape(B, 7, 4, 28).transpose(2, 0, 1, 3).reshape(4, B * 7, 28)
    m = np.arange(B * 7) % 7
    mt = jnp.asarray((m != 0)[:, None], jnp.bfloat16)          # valid row above
    mb = jnp.asarray((m != 6)[:, None], jnp.bfloat16)          # valid row below
    feat = conv_features(x4, mt, mb, cparams)                  # (B*7, 256) bf16
    feat2d = feat.reshape(B, 7 * 256)                          # free reshape
    return mlp_head(feat2d, cparams)                           # (B, 10) f32


# Pure-JAX reference (XLA) for a correctness check against the Pallas path.
def reference_forward(x_nchw, params):
    x = x_nchw.astype(jnp.float32)
    dn = ("NCHW", "OIHW", "NCHW")
    y = lax.conv_general_dilated(x, params["w_conv1"], (1, 1), "SAME",
                                 dimension_numbers=dn)
    y = jnp.maximum(y + params["b_conv1"][None, :, None, None], 0.0)
    y = lax.reduce_window(y, 0.0, lax.add, (1, 1, 2, 2), (1, 1, 2, 2),
                          "VALID") / 4.0
    y = lax.conv_general_dilated(y, params["w_conv2"], (1, 1), "SAME",
                                 dimension_numbers=dn)
    y = jnp.maximum(y + params["b_conv2"][None, :, None, None], 0.0)
    y = lax.reduce_window(y, -jnp.inf, lax.max, (1, 1, 2, 2), (1, 1, 2, 2),
                          "VALID")
    f = y.reshape(y.shape[0], -1)
    h = jnp.maximum(f @ params["w_fc1"].T + params["b_fc1"], 0.0)
    h = jnp.maximum(h @ params["w_fc2"].T + params["b_fc2"], 0.0)
    return h @ params["w_out"].T + params["b_out"]


if __name__ == "__main__":
    key = jax.random.PRNGKey(0)
    k_param, k_x = jax.random.split(key)
    params = init_params(k_param)
    cparams = prepare_params(params)

    # The fc layer (32*7*7 inputs) implies 1x28x28 inputs; batch = 2.
    x = jax.random.normal(k_x, (2, 1, 28, 28), dtype=jnp.float32)

    fwd = jax.jit(convnet_forward)
    logits = fwd(x, cparams)
    jax.block_until_ready(logits)
    assert logits.shape == (2, 10), logits.shape

    # Correctness check vs. pure-JAX f32 reference (bf16 MXU operands -> loose tol).
    ref = reference_forward(x, params)
    max_err = float(jnp.max(jnp.abs(logits - ref)))
    assert max_err < 3e-2, f"max abs err vs reference: {max_err}"

    print("KERNEL_OK")
</pallas_src>

<mosaic_0001>
module attributes {stable_mosaic.version = 11 : i64} {
  func.func @_conv_stack_kernel(%arg0: i32, %arg1: memref<4x14x28xf32, #tpu.memory_space<vmem>>, %arg2: memref<14x1xbf16, #tpu.memory_space<vmem>>, %arg3: memref<14x1xbf16, #tpu.memory_space<vmem>>, %arg4: memref<3x28x512xbf16, #tpu.memory_space<vmem>>, %arg5: memref<1x512xf32, #tpu.memory_space<vmem>>, %arg6: memref<3x256x512xbf16, #tpu.memory_space<vmem>>, %arg7: memref<1x512xf32, #tpu.memory_space<vmem>>, %arg8: memref<14x256xbf16, #tpu.memory_space<vmem>>) attributes {dimension_semantics = [#tpu.dimension_semantics<parallel>], iteration_bounds = array<i64: 1>, scalar_prefetch = 0 : i64, scratch_operands = 0 : i64, tpu.core_type = #tpu.core_type<tc>, window_params = [{transform_indices = @transform_0, window_bounds = array<i64: 4, 14, 28>}, {transform_indices = @transform_1, window_bounds = array<i64: 14, 1>}, {transform_indices = @transform_2, window_bounds = array<i64: 14, 1>}, {pipeline_mode = #tpu.pipeline_mode<synchronous>, transform_indices = @transform_3, window_bounds = array<i64: 3, 28, 512>}, {pipeline_mode = #tpu.pipeline_mode<synchronous>, transform_indices = @transform_4, window_bounds = array<i64: 1, 512>}, {pipeline_mode = #tpu.pipeline_mode<synchronous>, transform_indices = @transform_5, window_bounds = array<i64: 3, 256, 512>}, {pipeline_mode = #tpu.pipeline_mode<synchronous>, transform_indices = @transform_6, window_bounds = array<i64: 1, 512>}, {transform_indices = @transform_7, window_bounds = array<i64: 14, 256>}]} {
    %c0 = arith.constant 0 : index
    %c0_0 = arith.constant 0 : index
    %0 = vector.load %arg2[%c0, %c0_0] : memref<14x1xbf16, #tpu.memory_space<vmem>>, vector<14x1xbf16>
    %c0_1 = arith.constant 0 : index
    %c0_2 = arith.constant 0 : index
    %1 = vector.load %arg3[%c0_1, %c0_2] : memref<14x1xbf16, #tpu.memory_space<vmem>>, vector<14x1xbf16>
    %c0_3 = arith.constant 0 : index
    %c0_4 = arith.constant 0 : index
    %c0_5 = arith.constant 0 : index
    %2 = vector.load %arg1[%c0_3, %c0_4, %c0_5] : memref<4x14x28xf32, #tpu.memory_space<vmem>>, vector<1x14x28xf32>
    %3 = vector.shape_cast %2 : vector<1x14x28xf32> to vector<14x28xf32>
    %4 = arith.truncf %3 : vector<14x28xf32> to vector<14x28xbf16>
    %c1 = arith.constant 1 : index
    %c0_6 = arith.constant 0 : index
    %c0_7 = arith.constant 0 : index
    %5 = vector.load %arg1[%c1, %c0_6, %c0_7] : memref<4x14x28xf32, #tpu.memory_space<vmem>>, vector<1x14x28xf32>
    %6 = vector.shape_cast %5 : vector<1x14x28xf32> to vector<14x28xf32>
    %7 = arith.truncf %6 : vector<14x28xf32> to vector<14x28xbf16>
    %c2 = arith.constant 2 : index
    %c0_8 = arith.constant 0 : index
    %c0_9 = arith.constant 0 : index
    %8 = vector.load %arg1[%c2, %c0_8, %c0_9] : memref<4x14x28xf32, #tpu.memory_space<vmem>>, vector<1x14x28xf32>
    %9 = vector.shape_cast %8 : vector<1x14x28xf32> to vector<14x28xf32>
    %10 = arith.truncf %9 : vector<14x28xf32> to vector<14x28xbf16>
    %c3 = arith.constant 3 : index
    %c0_10 = arith.constant 0 : index
    %c0_11 = arith.constant 0 : index
    %11 = vector.load %arg1[%c3, %c0_10, %c0_11] : memref<4x14x28xf32, #tpu.memory_space<vmem>>, vector<1x14x28xf32>
    %12 = vector.shape_cast %11 : vector<1x14x28xf32> to vector<14x28xf32>
    %13 = arith.truncf %12 : vector<14x28xf32> to vector<14x28xbf16>
    %cst = arith.constant 0.000000e+00 : bf16
    %14 = vector.broadcast %cst : bf16 to vector<1x28xbf16>
    %15 = vector.extract_strided_slice %13 {offsets = [0, 0], sizes = [13, 28], strides = [1, 1]} : vector<14x28xbf16> to vector<13x28xbf16>
    %16 = tpu.concatenate %14, %15 in 0 : vector<1x28xbf16>, vector<13x28xbf16> -> vector<14x28xbf16>
    %17 = vector.broadcast %0 : vector<14x1xbf16> to vector<14x28xbf16>
    %18 = arith.mulf %16, %17 : vector<14x28xbf16>
    %cst_12 = arith.constant 0.000000e+00 : bf16
    %19 = vector.broadcast %cst_12 : bf16 to vector<1x28xbf16>
    %20 = vector.extract_strided_slice %4 {offsets = [1, 0], sizes = [13, 28], strides = [1, 1]} : vector<14x28xbf16> to vector<13x28xbf16>
    %21 = tpu.concatenate %20, %19 in 0 : vector<13x28xbf16>, vector<1x28xbf16> -> vector<14x28xbf16>
    %22 = vector.broadcast %1 : vector<14x1xbf16> to vector<14x28xbf16>
    %23 = arith.mulf %21, %22 : vector<14x28xbf16>
    %c0_13 = arith.constant 0 : index
    %c0_14 = arith.constant 0 : index
    %c0_15 = arith.constant 0 : index
    %24 = vector.load %arg4[%c0_13, %c0_14, %c0_15] : memref<3x28x512xbf16, #tpu.memory_space<vmem>>, vector<1x28x512xbf16>
    %25 = vector.shape_cast %24 : vector<1x28x512xbf16> to vector<28x512xbf16>
    %c1_16 = arith.constant 1 : index
    %c0_17 = arith.constant 0 : index
    %c0_18 = arith.constant 0 : index
    %26 = vector.load %arg4[%c1_16, %c0_17, %c0_18] : memref<3x28x512xbf16, #tpu.memory_space<vmem>>, vector<1x28x512xbf16>
    %27 = vector.shape_cast %26 : vector<1x28x512xbf16> to vector<28x512xbf16>
    %c2_19 = arith.constant 2 : index
    %c0_20 = arith.constant 0 : index
    %c0_21 = arith.constant 0 : index
    %28 = vector.load %arg4[%c2_19, %c0_20, %c0_21] : memref<3x28x512xbf16, #tpu.memory_space<vmem>>, vector<1x28x512xbf16>
    %29 = vector.shape_cast %28 : vector<1x28x512xbf16> to vector<28x512xbf16>
    %c0_22 = arith.constant 0 : index
    %c0_23 = arith.constant 0 : index
    %30 = vector.load %arg5[%c0_22, %c0_23] : memref<1x512xf32, #tpu.memory_space<vmem>>, vector<1x512xf32>
    %cst_24 = arith.constant dense<0.000000e+00> : vector<14x512xf32>
    %31 = tpu.matmul %18, %25, %cst_24 {dimension_numbers = #tpu.dot_dimension_numbers<[1], [0], [0], [1], [0, 0, 1, 1], [], []>} : vector<14x28xbf16>, vector<28x512xbf16>, vector<14x512xf32> -> vector<14x512xf32>
    %cst_25 = arith.constant dense<0.000000e+00> : vector<14x512xf32>
    %32 = tpu.matmul %4, %27, %cst_25 {dimension_numbers = #tpu.dot_dimension_numbers<[1], [0], [0], [1], [0, 0, 1, 1], [], []>} : vector<14x28xbf16>, vector<28x512xbf16>, vector<14x512xf32> -> vector<14x512xf32>
    %33 = arith.addf %31, %32 : vector<14x512xf32>
    %cst_26 = arith.constant dense<0.000000e+00> : vector<14x512xf32>
    %34 = tpu.matmul %7, %29, %cst_26 {dimension_numbers = #tpu.dot_dimension_numbers<[1], [0], [0], [1], [0, 0, 1, 1], [], []>} : vector<14x28xbf16>, vector<28x512xbf16>, vector<14x512xf32> -> vector<14x512xf32>
    %35 = arith.addf %33, %34 : vector<14x512xf32>
    %36 = vector.broadcast %30 : vector<1x512xf32> to vector<14x512xf32>
    %37 = arith.addf %35, %36 : vector<14x512xf32>
    %cst_27 = arith.constant 0.000000e+00 : f32
    %38 = vector.broadcast %cst_27 : f32 to vector<14x512xf32>
    %39 = arith.maximumf %37, %38 : vector<14x512xf32>
    %cst_28 = arith.constant dense<0.000000e+00> : vector<14x512xf32>
    %40 = tpu.matmul %4, %25, %cst_28 {dimension_numbers = #tpu.dot_dimension_numbers<[1], [0], [0], [1], [0, 0, 1, 1], [], []>} : vector<14x28xbf16>, vector<28x512xbf16>, vector<14x512xf32> -> vector<14x512xf32>
    %cst_29 = arith.constant dense<0.000000e+00> : vector<14x512xf32>
    %41 = tpu.matmul %7, %27, %cst_29 {dimension_numbers = #tpu.dot_dimension_numbers<[1], [0], [0], [1], [0, 0, 1, 1], [], []>} : vector<14x28xbf16>, vector<28x512xbf16>, vector<14x512xf32> -> vector<14x512xf32>
    %42 = arith.addf %40, %41 : vector<14x512xf32>
    %cst_30 = arith.constant dense<0.000000e+00> : vector<14x512xf32>
    %43 = tpu.matmul %10, %29, %cst_30 {dimension_numbers = #tpu.dot_dimension_numbers<[1], [0], [0], [1], [0, 0, 1, 1], [], []>} : vector<14x28xbf16>, vector<28x512xbf16>, vector<14x512xf32> -> vector<14x512xf32>
    %44 = arith.addf %42, %43 : vector<14x512xf32>
    %45 = vector.broadcast %30 : vector<1x512xf32> to vector<14x512xf32>
    %46 = arith.addf %44, %45 : vector<14x512xf32>
    %cst_31 = arith.constant 0.000000e+00 : f32
    %47 = vector.broadcast %cst_31 : f32 to vector<14x512xf32>
    %48 = arith.maximumf %46, %47 : vector<14x512xf32>
    %cst_32 = arith.constant dense<0.000000e+00> : vector<14x512xf32>
    %49 = tpu.matmul %7, %25, %cst_32 {dimension_numbers = #tpu.dot_dimension_numbers<[1], [0], [0], [1], [0, 0, 1, 1], [], []>} : vector<14x28xbf16>, vector<28x512xbf16>, vector<14x512xf32> -> vector<14x512xf32>
    %cst_33 = arith.constant dense<0.000000e+00> : vector<14x512xf32>
    %50 = tpu.matmul %10, %27, %cst_33 {dimension_numbers = #tpu.dot_dimension_numbers<[1], [0], [0], [1], [0, 0, 1, 1], [], []>} : vector<14x28xbf16>, vector<28x512xbf16>, vector<14x512xf32> -> vector<14x512xf32>
    %51 = arith.addf %49, %50 : vector<14x512xf32>
    %cst_34 = arith.constant dense<0.000000e+00> : vector<14x512xf32>
    %52 = tpu.matmul %13, %29, %cst_34 {dimension_numbers = #tpu.dot_dimension_numbers<[1], [0], [0], [1], [0, 0, 1, 1], [], []>} : vector<14x28xbf16>, vector<28x512xbf16>, vector<14x512xf32> -> vector<14x512xf32>
    %53 = arith.addf %51, %52 : vector<14x512xf32>
    %54 = vector.broadcast %30 : vector<1x512xf32> to vector<14x512xf32>
    %55 = arith.addf %53, %54 : vector<14x512xf32>
    %cst_35 = arith.constant 0.000000e+00 : f32
    %56 = vector.broadcast %cst_35 : f32 to vector<14x512xf32>
    %57 = arith.maximumf %55, %56 : vector<14x512xf32>
    %cst_36 = arith.constant dense<0.000000e+00> : vector<14x512xf32>
    %58 = tpu.matmul %10, %25, %cst_36 {dimension_numbers = #tpu.dot_dimension_numbers<[1], [0], [0], [1], [0, 0, 1, 1], [], []>} : vector<14x28xbf16>, vector<28x512xbf16>, vector<14x512xf32> -> vector<14x512xf32>
    %cst_37 = arith.constant dense<0.000000e+00> : vector<14x512xf32>
    %59 = tpu.matmul %13, %27, %cst_37 {dimension_numbers = #tpu.dot_dimension_numbers<[1], [0], [0], [1], [0, 0, 1, 1], [], []>} : vector<14x28xbf16>, vector<28x512xbf16>, vector<14x512xf32> -> vector<14x512xf32>
    %60 = arith.addf %58, %59 : vector<14x512xf32>
    %cst_38 = arith.constant dense<0.000000e+00> : vector<14x512xf32>
    %61 = tpu.matmul %23, %29, %cst_38 {dimension_numbers = #tpu.dot_dimension_numbers<[1], [0], [0], [1], [0, 0, 1, 1], [], []>} : vector<14x28xbf16>, vector<28x512xbf16>, vector<14x512xf32> -> vector<14x512xf32>
    %62 = arith.addf %60, %61 : vector<14x512xf32>
    %63 = vector.broadcast %30 : vector<1x512xf32> to vector<14x512xf32>
    %64 = arith.addf %62, %63 : vector<14x512xf32>
    %cst_39 = arith.constant 0.000000e+00 : f32
    %65 = vector.broadcast %cst_39 : f32 to vector<14x512xf32>
    %66 = arith.maximumf %64, %65 : vector<14x512xf32>
    %67 = vector.extract_strided_slice %39 {offsets = [0, 0], sizes = [14, 256], strides = [1, 1]} : vector<14x512xf32> to vector<14x256xf32>
    %68 = vector.extract_strided_slice %39 {offsets = [0, 256], sizes = [14, 256], strides = [1, 1]} : vector<14x512xf32> to vector<14x256xf32>
    %69 = arith.addf %67, %68 : vector<14x256xf32>
    %70 = vector.extract_strided_slice %48 {offsets = [0, 0], sizes = [14, 256], strides = [1, 1]} : vector<14x512xf32> to vector<14x256xf32>
    %71 = vector.extract_strided_slice %48 {offsets = [0, 256], sizes = [14, 256], strides = [1, 1]} : vector<14x512xf32> to vector<14x256xf32>
    %72 = arith.addf %70, %71 : vector<14x256xf32>
    %73 = arith.addf %69, %72 : vector<14x256xf32>
    %cst_40 = arith.constant 2.500000e-01 : f32
    %74 = vector.broadcast %cst_40 : f32 to vector<14x256xf32>
    %75 = arith.mulf %73, %74 : vector<14x256xf32>
    %76 = vector.extract_strided_slice %57 {offsets = [0, 0], sizes = [14, 256], strides = [1, 1]} : vector<14x512xf32> to vector<14x256xf32>
    %77 = vector.extract_strided_slice %57 {offsets = [0, 256], sizes = [14, 256], strides = [1, 1]} : vector<14x512xf32> to vector<14x256xf32>
    %78 = arith.addf %76, %77 : vector<14x256xf32>
    %79 = vector.extract_strided_slice %66 {offsets = [0, 0], sizes = [14, 256], strides = [1, 1]} : vector<14x512xf32> to vector<14x256xf32>
    %80 = vector.extract_strided_slice %66 {offsets = [0, 256], sizes = [14, 256], strides = [1, 1]} : vector<14x512xf32> to vector<14x256xf32>
    %81 = arith.addf %79, %80 : vector<14x256xf32>
    %82 = arith.addf %78, %81 : vector<14x256xf32>
    %cst_41 = arith.constant 2.500000e-01 : f32
    %83 = vector.broadcast %cst_41 : f32 to vector<14x256xf32>
    %84 = arith.mulf %82, %83 : vector<14x256xf32>
    %85 = arith.truncf %75 : vector<14x256xf32> to vector<14x256xbf16>
    %86 = arith.truncf %84 : vector<14x256xf32> to vector<14x256xbf16>
    %cst_42 = arith.constant 0.000000e+00 : bf16
    %87 = vector.broadcast %cst_42 : bf16 to vector<1x256xbf16>
    %88 = vector.extract_strided_slice %86 {offsets = [0, 0], sizes = [13, 256], strides = [1, 1]} : vector<14x256xbf16> to vector<13x256xbf16>
    %89 = tpu.concatenate %87, %88 in 0 : vector<1x256xbf16>, vector<13x256xbf16> -> vector<14x256xbf16>
    %90 = vector.broadcast %0 : vector<14x1xbf16> to vector<14x256xbf16>
    %91 = arith.mulf %89, %90 : vector<14x256xbf16>
    %cst_43 = arith.constant 0.000000e+00 : bf16
    %92 = vector.broadcast %cst_43 : bf16 to vector<1x256xbf16>
    %93 = vector.extract_strided_slice %85 {offsets = [1, 0], sizes = [13, 256], strides = [1, 1]} : vector<14x256xbf16> to vector<13x256xbf16>
    %94 = tpu.concatenate %93, %92 in 0 : vector<13x256xbf16>, vector<1x256xbf16> -> vector<14x256xbf16>
    %95 = vector.broadcast %1 : vector<14x1xbf16> to vector<14x256xbf16>
    %96 = arith.mulf %94, %95 : vector<14x256xbf16>
    %c0_44 = arith.constant 0 : index
    %c0_45 = arith.constant 0 : index
    %c0_46 = arith.constant 0 : index
    %97 = vector.load %arg6[%c0_44, %c0_45, %c0_46] : memref<3x256x512xbf16, #tpu.memory_space<vmem>>, vector<1x256x512xbf16>
    %98 = vector.shape_cast %97 : vector<1x256x512xbf16> to vector<256x512xbf16>
    %c1_47 = arith.constant 1 : index
    %c0_48 = arith.constant 0 : index
    %c0_49 = arith.constant 0 : index
    %99 = vector.load %arg6[%c1_47, %c0_48, %c0_49] : memref<3x256x512xbf16, #tpu.memory_space<vmem>>, vector<1x256x512xbf16>
    %100 = vector.shape_cast %99 : vector<1x256x512xbf16> to vector<256x512xbf16>
    %c2_50 = arith.constant 2 : index
    %c0_51 = arith.constant 0 : index
    %c0_52 = arith.constant 0 : index
    %101 = vector.load %arg6[%c2_50, %c0_51, %c0_52] : memref<3x256x512xbf16, #tpu.memory_space<vmem>>, vector<1x256x512xbf16>
    %102 = vector.shape_cast %101 : vector<1x256x512xbf16> to vector<256x512xbf16>
    %c0_53 = arith.constant 0 : index
    %c0_54 = arith.constant 0 : index
    %103 = vector.load %arg7[%c0_53, %c0_54] : memref<1x512xf32, #tpu.memory_space<vmem>>, vector<1x512xf32>
    %cst_55 = arith.constant dense<0.000000e+00> : vector<14x512xf32>
    %104 = tpu.matmul %91, %98, %cst_55 {dimension_numbers = #tpu.dot_dimension_numbers<[1], [0], [0], [1], [0, 0, 1, 1], [], []>} : vector<14x256xbf16>, vector<256x512xbf16>, vector<14x512xf32> -> vector<14x512xf32>
    %cst_56 = arith.constant dense<0.000000e+00> : vector<14x512xf32>
    %105 = tpu.matmul %85, %100, %cst_56 {dimension_numbers = #tpu.dot_dimension_numbers<[1], [0], [0], [1], [0, 0, 1, 1], [], []>} : vector<14x256xbf16>, vector<256x512xbf16>, vector<14x512xf32> -> vector<14x512xf32>
    %106 = arith.addf %104, %105 : vector<14x512xf32>
    %cst_57 = arith.constant dense<0.000000e+00> : vector<14x512xf32>
    %107 = tpu.matmul %86, %102, %cst_57 {dimension_numbers = #tpu.dot_dimension_numbers<[1], [0], [0], [1], [0, 0, 1, 1], [], []>} : vector<14x256xbf16>, vector<256x512xbf16>, vector<14x512xf32> -> vector<14x512xf32>
    %108 = arith.addf %106, %107 : vector<14x512xf32>
    %cst_58 = arith.constant dense<0.000000e+00> : vector<14x512xf32>
    %109 = tpu.matmul %85, %98, %cst_58 {dimension_numbers = #tpu.dot_dimension_numbers<[1], [0], [0], [1], [0, 0, 1, 1], [], []>} : vector<14x256xbf16>, vector<256x512xbf16>, vector<14x512xf32> -> vector<14x512xf32>
    %cst_59 = arith.constant dense<0.000000e+00> : vector<14x512xf32>
    %110 = tpu.matmul %86, %100, %cst_59 {dimension_numbers = #tpu.dot_dimension_numbers<[1], [0], [0], [1], [0, 0, 1, 1], [], []>} : vector<14x256xbf16>, vector<256x512xbf16>, vector<14x512xf32> -> vector<14x512xf32>
    %111 = arith.addf %109, %110 : vector<14x512xf32>
    %cst_60 = arith.constant dense<0.000000e+00> : vector<14x512xf32>
    %112 = tpu.matmul %96, %102, %cst_60 {dimension_numbers = #tpu.dot_dimension_numbers<[1], [0], [0], [1], [0, 0, 1, 1], [], []>} : vector<14x256xbf16>, vector<256x512xbf16>, vector<14x512xf32> -> vector<14x512xf32>
    %113 = arith.addf %111, %112 : vector<14x512xf32>
    %114 = vector.broadcast %103 : vector<1x512xf32> to vector<14x512xf32>
    %115 = arith.addf %108, %114 : vector<14x512xf32>
    %cst_61 = arith.constant 0.000000e+00 : f32
    %116 = vector.broadcast %cst_61 : f32 to vector<14x512xf32>
    %117 = arith.maximumf %115, %116 : vector<14x512xf32>
    %118 = vector.broadcast %103 : vector<1x512xf32> to vector<14x512xf32>
    %119 = arith.addf %113, %118 : vector<14x512xf32>
    %cst_62 = arith.constant 0.000000e+00 : f32
    %120 = vector.broadcast %cst_62 : f32 to vector<14x512xf32>
    %121 = arith.maximumf %119, %120 : vector<14x512xf32>
    %122 = arith.maximumf %117, %121 : vector<14x512xf32>
    %123 = vector.extract_strided_slice %122 {offsets = [0, 0], sizes = [14, 256], strides = [1, 1]} : vector<14x512xf32> to vector<14x256xf32>
    %124 = vector.extract_strided_slice %122 {offsets = [0, 256], sizes = [14, 256], strides = [1, 1]} : vector<14x512xf32> to vector<14x256xf32>
    %125 = arith.maximumf %123, %124 : vector<14x256xf32>
    %126 = arith.truncf %125 : vector<14x256xf32> to vector<14x256xbf16>
    %c0_63 = arith.constant 0 : index
    %c0_64 = arith.constant 0 : index
    %127 = vector.load %arg8[%c0_63, %c0_64] : memref<14x256xbf16, #tpu.memory_space<vmem>>, vector<14x256xbf16>
    tpu.vector_store %arg8[%c0_63, %c0_64], %126 {strides = array<i32>} : memref<14x256xbf16, #tpu.memory_space<vmem>>, vector<14x256xbf16>,
    return
  }
  func.func @transform_0(%arg0: i32) -> (i32, i32, i32) {
    %c0_i32 = arith.constant 0 : i32
    %c0_i32_0 = arith.constant 0 : i32
    %c0_i32_1 = arith.constant 0 : i32
    return %c0_i32, %arg0, %c0_i32_0 : i32, i32, i32
  }
  func.func @transform_1(%arg0: i32) -> (i32, i32) {
    %c0_i32 = arith.constant 0 : i32
    %c0_i32_0 = arith.constant 0 : i32
    return %arg0, %c0_i32 : i32, i32
  }
  func.func @transform_2(%arg0: i32) -> (i32, i32) {
    %c0_i32 = arith.constant 0 : i32
    %c0_i32_0 = arith.constant 0 : i32
    return %arg0, %c0_i32 : i32, i32
  }
  func.func @transform_3(%arg0: i32) -> (i32, i32, i32) {
    %c0_i32 = arith.constant 0 : i32
    %c0_i32_0 = arith.constant 0 : i32
    %c0_i32_1 = arith.constant 0 : i32
    %c0_i32_2 = arith.constant 0 : i32
    return %c0_i32, %c0_i32_0, %c0_i32_1 : i32, i32, i32
  }
  func.func @transform_4(%arg0: i32) -> (i32, i32) {
    %c0_i32 = arith.constant 0 : i32
    %c0_i32_0 = arith.constant 0 : i32
    %c0_i32_1 = arith.constant 0 : i32
    return %c0_i32, %c0_i32_0 : i32, i32
  }
  func.func @transform_5(%arg0: i32) -> (i32, i32, i32) {
    %c0_i32 = arith.constant 0 : i32
    %c0_i32_0 = arith.constant 0 : i32
    %c0_i32_1 = arith.constant 0 : i32
    %c0_i32_2 = arith.constant 0 : i32
    return %c0_i32, %c0_i32_0, %c0_i32_1 : i32, i32, i32
  }
  func.func @transform_6(%arg0: i32) -> (i32, i32) {
    %c0_i32 = arith.constant 0 : i32
    %c0_i32_0 = arith.constant 0 : i32
    %c0_i32_1 = arith.constant 0 : i32
    return %c0_i32, %c0_i32_0 : i32, i32
  }
  func.func @transform_7(%arg0: i32) -> (i32, i32) {
    %c0_i32 = arith.constant 0 : i32
    %c0_i32_0 = arith.constant 0 : i32
    return %arg0, %c0_i32 : i32, i32
  }
}

module attributes {stable_mosaic.version = 11 : i64} {
  func.func @_mlp_kernel(%arg0: i32, %arg1: memref<2x1792xbf16, #tpu.memory_space<vmem>>, %arg2: memref<1792x128xbf16, #tpu.memory_space<vmem>>, %arg3: memref<1x128xf32, #tpu.memory_space<vmem>>, %arg4: memref<128x64xbf16, #tpu.memory_space<vmem>>, %arg5: memref<1x64xf32, #tpu.memory_space<vmem>>, %arg6: memref<64x10xbf16, #tpu.memory_space<vmem>>, %arg7: memref<1x10xf32, #tpu.memory_space<vmem>>, %arg8: memref<2x10xf32, #tpu.memory_space<vmem>>) attributes {dimension_semantics = [#tpu.dimension_semantics<parallel>], iteration_bounds = array<i64: 1>, scalar_prefetch = 0 : i64, scratch_operands = 0 : i64, tpu.core_type = #tpu.core_type<tc>, window_params = [{transform_indices = @transform_0, window_bounds = array<i64: 2, 1792>}, {pipeline_mode = #tpu.pipeline_mode<synchronous>, transform_indices = @transform_1, window_bounds = array<i64: 1792, 128>}, {pipeline_mode = #tpu.pipeline_mode<synchronous>, transform_indices = @transform_2, window_bounds = array<i64: 1, 128>}, {pipeline_mode = #tpu.pipeline_mode<synchronous>, transform_indices = @transform_3, window_bounds = array<i64: 128, 64>}, {pipeline_mode = #tpu.pipeline_mode<synchronous>, transform_indices = @transform_4, window_bounds = array<i64: 1, 64>}, {pipeline_mode = #tpu.pipeline_mode<synchronous>, transform_indices = @transform_5, window_bounds = array<i64: 64, 10>}, {pipeline_mode = #tpu.pipeline_mode<synchronous>, transform_indices = @transform_6, window_bounds = array<i64: 1, 10>}, {transform_indices = @transform_7, window_bounds = array<i64: 2, 10>}]} {
    %c0 = arith.constant 0 : index
    %c0_0 = arith.constant 0 : index
    %0 = vector.load %arg1[%c0, %c0_0] : memref<2x1792xbf16, #tpu.memory_space<vmem>>, vector<2x1792xbf16>
    %c0_1 = arith.constant 0 : index
    %c0_2 = arith.constant 0 : index
    %1 = vector.load %arg2[%c0_1, %c0_2] : memref<1792x128xbf16, #tpu.memory_space<vmem>>, vector<1792x128xbf16>
    %cst = arith.constant dense<0.000000e+00> : vector<2x128xf32>
    %2 = tpu.matmul %0, %1, %cst {dimension_numbers = #tpu.dot_dimension_numbers<[1], [0], [0], [1], [0, 0, 1, 1], [], []>} : vector<2x1792xbf16>, vector<1792x128xbf16>, vector<2x128xf32> -> vector<2x128xf32>
    %c0_3 = arith.constant 0 : index
    %c0_4 = arith.constant 0 : index
    %3 = vector.load %arg3[%c0_3, %c0_4] : memref<1x128xf32, #tpu.memory_space<vmem>>, vector<1x128xf32>
    %4 = vector.broadcast %3 : vector<1x128xf32> to vector<2x128xf32>
    %5 = arith.addf %2, %4 : vector<2x128xf32>
    %cst_5 = arith.constant 0.000000e+00 : f32
    %6 = vector.broadcast %cst_5 : f32 to vector<2x128xf32>
    %7 = arith.maximumf %5, %6 : vector<2x128xf32>
    %8 = arith.truncf %7 : vector<2x128xf32> to vector<2x128xbf16>
    %c0_6 = arith.constant 0 : index
    %c0_7 = arith.constant 0 : index
    %9 = vector.load %arg4[%c0_6, %c0_7] : memref<128x64xbf16, #tpu.memory_space<vmem>>, vector<128x64xbf16>
    %cst_8 = arith.constant dense<0.000000e+00> : vector<2x64xf32>
    %10 = tpu.matmul %8, %9, %cst_8 {dimension_numbers = #tpu.dot_dimension_numbers<[1], [0], [0], [1], [0, 0, 1, 1], [], []>} : vector<2x128xbf16>, vector<128x64xbf16>, vector<2x64xf32> -> vector<2x64xf32>
    %c0_9 = arith.constant 0 : index
    %c0_10 = arith.constant 0 : index
    %11 = vector.load %arg5[%c0_9, %c0_10] : memref<1x64xf32, #tpu.memory_space<vmem>>, vector<1x64xf32>
    %12 = vector.broadcast %11 : vector<1x64xf32> to vector<2x64xf32>
    %13 = arith.addf %10, %12 : vector<2x64xf32>
    %cst_11 = arith.constant 0.000000e+00 : f32
    %14 = vector.broadcast %cst_11 : f32 to vector<2x64xf32>
    %15 = arith.maximumf %13, %14 : vector<2x64xf32>
    %16 = arith.truncf %15 : vector<2x64xf32> to vector<2x64xbf16>
    %c0_12 = arith.constant 0 : index
    %c0_13 = arith.constant 0 : index
    %17 = vector.load %arg6[%c0_12, %c0_13] : memref<64x10xbf16, #tpu.memory_space<vmem>>, vector<64x10xbf16>
    %cst_14 = arith.constant dense<0.000000e+00> : vector<2x10xf32>
    %18 = tpu.matmul %16, %17, %cst_14 {dimension_numbers = #tpu.dot_dimension_numbers<[1], [0], [0], [1], [0, 0, 1, 1], [], []>} : vector<2x64xbf16>, vector<64x10xbf16>, vector<2x10xf32> -> vector<2x10xf32>
    %c0_15 = arith.constant 0 : index
    %c0_16 = arith.constant 0 : index
    %19 = vector.load %arg7[%c0_15, %c0_16] : memref<1x10xf32, #tpu.memory_space<vmem>>, vector<1x10xf32>
    %20 = vector.broadcast %19 : vector<1x10xf32> to vector<2x10xf32>
    %21 = arith.addf %18, %20 : vector<2x10xf32>
    %c0_17 = arith.constant 0 : index
    %c0_18 = arith.constant 0 : index
    %22 = vector.load %arg8[%c0_17, %c0_18] : memref<2x10xf32, #tpu.memory_space<vmem>>, vector<2x10xf32>
    tpu.vector_store %arg8[%c0_17, %c0_18], %21 {strides = array<i32>} : memref<2x10xf32, #tpu.memory_space<vmem>>, vector<2x10xf32>,
    return
  }
  func.func @transform_0(%arg0: i32) -> (i32, i32) {
    %c0_i32 = arith.constant 0 : i32
    %c0_i32_0 = arith.constant 0 : i32
    return %arg0, %c0_i32 : i32, i32
  }
  func.func @transform_1(%arg0: i32) -> (i32, i32) {
    %c0_i32 = arith.constant 0 : i32
    %c0_i32_0 = arith.constant 0 : i32
    %c0_i32_1 = arith.constant 0 : i32
    return %c0_i32, %c0_i32_0 : i32, i32
  }
  func.func @transform_2(%arg0: i32) -> (i32, i32) {
    %c0_i32 = arith.constant 0 : i32
    %c0_i32_0 = arith.constant 0 : i32
    %c0_i32_1 = arith.constant 0 : i32
    return %c0_i32, %c0_i32_0 : i32, i32
  }
  func.func @transform_3(%arg0: i32) -> (i32, i32) {
    %c0_i32 = arith.constant 0 : i32
    %c0_i32_0 = arith.constant 0 : i32
    %c0_i32_1 = arith.constant 0 : i32
    return %c0_i32, %c0_i32_0 : i32, i32
  }
  func.func @transform_4(%arg0: i32) -> (i32, i32) {
    %c0_i32 = arith.constant 0 : i32
    %c0_i32_0 = arith.constant 0 : i32
    %c0_i32_1 = arith.constant 0 : i32
    return %c0_i32, %c0_i32_0 : i32, i32
  }
  func.func @transform_5(%arg0: i32) -> (i32, i32) {
    %c0_i32 = arith.constant 0 : i32
    %c0_i32_0 = arith.constant 0 : i32
    %c0_i32_1 = arith.constant 0 : i32
    return %c0_i32, %c0_i32_0 : i32, i32
  }
  func.func @transform_6(%arg0: i32) -> (i32, i32) {
    %c0_i32 = arith.constant 0 : i32
    %c0_i32_0 = arith.constant 0 : i32
    %c0_i32_1 = arith.constant 0 : i32
    return %c0_i32, %c0_i32_0 : i32, i32
  }
  func.func @transform_7(%arg0: i32) -> (i32, i32) {
    %c0_i32 = arith.constant 0 : i32
    %c0_i32_0 = arith.constant 0 : i32
    return %arg0, %c0_i32 : i32, i32
  }
}

</mosaic_0001>

<bundles_post_ra>
// kernel: convnet_forward.3
= control target key start
LH: loop header
LB: loop body
LE: loop exit
PB: predicated region body
PF: predicated region fallthrough
CT: control target
= control target key end

     0   :  { %v267_v27 = vlaneseq  ;;  %v2019_v35 = vmov 1966171168   ;;  %s2486_s0 = inlined_call_operand.vmem [shape: bf16[2,1792], index: 0, kind: input, shape index: {}]   ;;  %s2487_s1 = inlined_call_operand.vmem [shape: bf16[1792,128], index: 1, kind: input, shape index: {}]   ;;  %s2488_s2 = inlined_call_operand.vmem [shape: f32[1,128], index: 2, kind: input, shape index: {}]   ;;  %s2489_s3 = inlined_call_operand.vmem [shape: bf16[128,64], index: 3, kind: input, shape index: {}]   ;;  %s2490_s4 = inlined_call_operand.vmem [shape: f32[1,64], index: 4, kind: input, shape index: {}]   ;;  %s2491_s5 = inlined_call_operand.vmem [shape: bf16[64,10], index: 5, kind: input, shape index: {}]   ;;  %s2492_s6 = inlined_call_operand.vmem [shape: f32[1,10], index: 6, kind: input, shape index: {}]   ;;  %s2493_s7 = inlined_call_operand.hbm [shape: f32[2,10], index: 7, kind: output, shape index: {}]  }
   0x1   :  { %v1871_v0 = vld [vmem:[%s2487_s1 + $0x78] sm:$0xff]   ;;  %v1875_v4 = vld [vmem:[%s2487_s1 + $0x70] sm:$0xff]   ;;  %v1879_v8 = vld [vmem:[%s2487_s1 + $0x68] sm:$0xff]   ;;  %v265_v36 = vunpack.c.l.s4 %v2019_v35 }
   0x2   :  { %v1872_v1 = vld [vmem:[%s2487_s1 + $0x38] sm:$0xff]   ;;  %1667 = vmatprep.subr.bf16.mxu0 %v1871_v0  ;;  %v1876_v5 = vld [vmem:[%s2487_s1 + $0x30] sm:$0xff]   ;;  %v1880_v9 = vld [vmem:[%s2487_s1 + $0x28] sm:$0xff]   ;;  %v268_v32 = vshrl.u32 %v267_v27, 7 }
   0x3   :  { %v1873_v2 = vld [vmem:[%s2487_s1 + $0xf8] sm:$0xff]   ;;  %1668 = vmatpush3.bf16.msra.mxu0 %v1872_v1  ;;  %v1877_v6 = vld [vmem:[%s2487_s1 + $0xf0] sm:$0xff]   ;;  %v1881_v10 = vld [vmem:[%s2487_s1 + $0xe8] sm:$0xff]   ;;  %v266_v39 = vunpack.c.0.s8 %v265_v36 }
   0x4   :  { %v1874_v3 = vld [vmem:[%s2487_s1 + $0xb8] sm:$0xff]   ;;  %1689 = vmatprep.subr.bf16.mxu1 %v1873_v2  ;;  %1669 = vmatprep.subr.bf16.mxu0 %v1875_v4  ;;  %v1878_v7 = vld [vmem:[%s2487_s1 + $0xb0] sm:$0xff]   ;;  %v1882_v11 = vld [vmem:[%s2487_s1 + $0xa8] sm:$0xff]  }
   0x5   :  { %1690 = vmatpush3.bf16.msra.mxu1 %v1874_v3  ;;  %v1883_v12 = vld [vmem:[%s2487_s1 + $0x60] sm:$0xff]   ;;  %v1887_v16 = vld [vmem:[%s2487_s1 + $0x58] sm:$0xff]   ;;  %v1891_v20 = vld [vmem:[%s2487_s1 + $0x50] sm:$0xff]   ;;  %v2168_v41 = vsub.s32 %v266_v39, %v268_v32 }
   0x6   :  { %1691 = vmatprep.subr.bf16.mxu1 %v1877_v6  ;;  %v1884_v13 = vld [vmem:[%s2487_s1 + $0x20] sm:$0xff]   ;;  %v1888_v17 = vld [vmem:[%s2487_s1 + $0x18] sm:$0xff]   ;;  %v1892_v21 = vld [vmem:[%s2487_s1 + $0x10] sm:$0xff]  }
   0x7   :  { %1670 = vmatpush3.bf16.msra.mxu0 %v1876_v5  ;;  %v1885_v14 = vld [vmem:[%s2487_s1 + $0xe0] sm:$0xff]   ;;  %v1889_v18 = vld [vmem:[%s2487_s1 + $0xd8] sm:$0xff]   ;;  %v1893_v22 = vld [vmem:[%s2487_s1 + $0xd0] sm:$0xff]  }
   0x8   :  { %1671 = vmatprep.subr.bf16.mxu0 %v1879_v8  ;;  %v1886_v15 = vld [vmem:[%s2487_s1 + $0xa0] sm:$0xff]   ;;  %v1890_v19 = vld [vmem:[%s2487_s1 + $0x98] sm:$0xff]   ;;  %v1894_v23 = vld [vmem:[%s2487_s1 + $0x90] sm:$0xff]  }
   0x9   :  { %1692 = vmatpush3.bf16.msra.mxu1 %v1878_v7  ;;  %v1895_v24 = vld [vmem:[%s2487_s1 + $0x48] sm:$0xff]   ;;  %v1899_v29 = vld [vmem:[%s2487_s1 + $0x40] sm:$0xff]   ;;  %v1904_v37 = vld [vmem:[%s2487_s1 + $0x178] sm:$0xff]  }
   0xa   :  { %1693 = vmatprep.subr.bf16.mxu1 %v1881_v10  ;;  %v1896_v25 = vld [vmem:[%s2487_s1 + $0x8] sm:$0xff]   ;;  %v1900_v30 = vld [vmem:[%s2487_s1] sm:$0xff]   ;;  %v1906_v40 = vld [vmem:[%s2487_s1 + $0x1f8] sm:$0xff]  }
   0xb   :  { %1672 = vmatpush3.bf16.msra.mxu0 %v1880_v9  ;;  %v1897_v26 = vld [vmem:[%s2487_s1 + $0xc8] sm:$0xff]   ;;  %v1901_v31 = vld [vmem:[%s2487_s1 + $0xc0] sm:$0xff]   ;;  %v1905_v48 = vld [vmem:[%s2487_s1 + $0x138] sm:$0xff]  }
   0xc   :  { %1673 = vmatprep.subr.bf16.mxu0 %v1883_v12  ;;  %v1898_v28 = vld [vmem:[%s2487_s1 + $0x88] sm:$0xff]   ;;  %v28_v33 = vld [vmem:[%s2486_s0] sm:$0xff]  ;;  %v1908_v51 = vld [vmem:[%s2487_s1 + $0x170] sm:$0xff]  }
   0xd   :  { %1694 = vmatpush3.bf16.msra.mxu1 %v1882_v11  ;;  %v1903_v34 = vld [vmem:[%s2487_s1 + $0x80] sm:$0xff]   ;;  %v263_v38 = vcombine.high %v28_v33, %v28_v33  ;;  %v270_v42 = vrot.slane %v28_v33, %v2168_v41  ;;  %v1907_v53 = vld [vmem:[%s2487_s1 + $0x1b8] sm:$0xff]   ;;  %v1910_v54 = vld [vmem:[%s2487_s1 + $0x1f0] sm:$0xff]  }
   0xe   :  { %1695 = vmatprep.subr.bf16.mxu1 %v1885_v14  ;;  %v1909_v56 = vld [vmem:[%s2487_s1 + $0x130] sm:$0xff]   ;;  %v1912_v57 = vld [vmem:[%s2487_s1 + $0x168] sm:$0xff]   ;;  %v1916_v61 = vld [vmem:[%s2487_s1 + $0x160] sm:$0xff]  }
   0xf   :  { %1674 = vmatpush3.bf16.msra.mxu0 %v1884_v13  ;;  %v2172_v43 = vrot.slane %v263_v38, %v2168_v41  ;;  %v278_v44 = vcombine.high %v270_v42, %v270_v42  ;;  %v286_v45 = vrot.slane %v270_v42, %v2168_v41  ;;  %v1911_v58 = vld [vmem:[%s2487_s1 + $0x1b0] sm:$0xff]   ;;  %v1914_v59 = vld [vmem:[%s2487_s1 + $0x1e8] sm:$0xff]   ;;  %v1918_v63 = vld [vmem:[%s2487_s1 + $0x1e0] sm:$0xff]  }
  0x10   :  { %1675 = vmatprep.subr.bf16.mxu0 %v1887_v16  ;;  %v1913_v60 = vld [vmem:[%s2487_s1 + $0x128] sm:$0xff]   ;;  %v1917_v0 = vld [vmem:[%s2487_s1 + $0x120] sm:$0xff]   ;;  %v1920_v1 = vld [vmem:[%s2487_s1 + $0x158] sm:$0xff]  }
  0x11   :  { %1696 = vmatpush3.bf16.msra.mxu1 %v1886_v15  ;;  %v279_v46 = vcombine.high %v2172_v43, %v2172_v43  ;;  %v300_v47 = vrot.slane %v278_v44, %v2168_v41  ;;  %v308_v50 = vcombine.high %v286_v45, %v286_v45  ;;  %v1915_v62 = vld [vmem:[%s2487_s1 + $0x1a8] sm:$0xff]   ;;  %v1919_v2 = vld [vmem:[%s2487_s1 + $0x1a0] sm:$0xff]   ;;  %v1922_v3 = vld [vmem:[%s2487_s1 + $0x1d8] sm:$0xff]  }
  0x12   :  { %1697 = vmatprep.subr.bf16.mxu1 %v1889_v18  ;;  %v1921_v4 = vld [vmem:[%s2487_s1 + $0x118] sm:$0xff]   ;;  %v1924_v5 = vld [vmem:[%s2487_s1 + $0x150] sm:$0xff]   ;;  %v1928_v9 = vld [vmem:[%s2487_s1 + $0x148] sm:$0xff]  }
  0x13   :  { %1676 = vmatpush3.bf16.msra.mxu0 %v1888_v17  ;;  %v307_v49 = vrot.slane %v279_v46, %v2168_v41  ;;  %1077 = vmatprep.mubr.bf16.mxu0 %v300_v47  ;;  %v310_v52 = vcombine.high %v300_v47, %v300_v47  ;;  %v1923_v6 = vld [vmem:[%s2487_s1 + $0x198] sm:$0xff]   ;;  %v1926_v7 = vld [vmem:[%s2487_s1 + $0x1d0] sm:$0xff]   ;;  %v1930_v11 = vld [vmem:[%s2487_s1 + $0x1c8] sm:$0xff]   ;;  %v293_v17 = vrot.slane %v2172_v43, %v2168_v41 }
  0x14   :  { %1677 = vmatprep.subr.bf16.mxu0 %v1891_v20  ;;  %v1925_v8 = vld [vmem:[%s2487_s1 + $0x110] sm:$0xff]   ;;  %v1929_v12 = vld [vmem:[%s2487_s1 + $0x108] sm:$0xff]   ;;  %v1932_v13 = vld [vmem:[%s2487_s1 + $0x140] sm:$0xff]  }
  0x15   :  { %1698 = vmatpush3.bf16.msra.mxu1 %v1890_v19  ;;  %v311_v55 = vcombine.high %v307_v49, %v307_v49  ;;  %1117 = vmatprep.mubr.bf16.mxu1 %v310_v52  ;;  %v1927_v10 = vld [vmem:[%s2487_s1 + $0x190] sm:$0xff]   ;;  %v1931_v14 = vld [vmem:[%s2487_s1 + $0x188] sm:$0xff]   ;;  %v1934_v15 = vld [vmem:[%s2487_s1 + $0x1c0] sm:$0xff]  }
  0x16   :  { %1699 = vmatprep.subr.bf16.mxu1 %v1893_v22  ;;  %v1933_v16 = vld [vmem:[%s2487_s1 + $0x100] sm:$0xff]   ;;  %v1936_v18 = vld [vmem:[%s2487_s1 + $0x278] sm:$0xff]   ;;  %v309_v22 = vcombine.high %v293_v17, %v293_v17  ;;  %v1944_v27 = vld [vmem:[%s2487_s1 + $0x268] sm:$0xff]  }
  0x17   :  { %1678 = vmatpush3.bf16.msra.mxu0 %v1892_v21  ;;  %v1935_v19 = vld [vmem:[%s2487_s1 + $0x180] sm:$0xff]   ;;  %v1938_v20 = vld [vmem:[%s2487_s1 + $0x2f8] sm:$0xff]   ;;  %v1947_v32 = vld [vmem:[%s2487_s1 + $0x2a8] sm:$0xff]  }
  0x18   :  { %1679 = vmatprep.subr.bf16.mxu0 %v1895_v24  ;;  %v1937_v21 = vld [vmem:[%s2487_s1 + $0x238] sm:$0xff]   ;;  %v1950_v33 = vld [vmem:[%s2487_s1 + $0x2e0] sm:$0xff]   ;;  %v1956_v39 = vld [vmem:[%s2487_s1 + $0x250] sm:$0xff]  }
  0x19   :  { %1700 = vmatpush3.bf16.msra.mxu1 %v1894_v23  ;;  %v1940_v23 = vld [vmem:[%s2487_s1 + $0x270] sm:$0xff]   ;;  %v1939_v24 = vld [vmem:[%s2487_s1 + $0x2b8] sm:$0xff]   ;;  %v1951_v36 = vld [vmem:[%s2487_s1 + $0x2a0] sm:$0xff]  }
  0x1a   :  { %1701 = vmatprep.subr.bf16.mxu1 %v1897_v26  ;;  %v1941_v26 = vld [vmem:[%s2487_s1 + $0x230] sm:$0xff]   ;;  %v1952_v35 = vld [vmem:[%s2487_s1 + $0x258] sm:$0xff]   ;;  %v1960_v44 = vld [vmem:[%s2487_s1 + $0x248] sm:$0xff]  }
  0x1b   :  { %1680 = vmatpush3.bf16.msra.mxu0 %v1896_v25  ;;  %v1942_v25 = vld [vmem:[%s2487_s1 + $0x2f0] sm:$0xff]   ;;  %v1953_v38 = vld [vmem:[%s2487_s1 + $0x218] sm:$0xff]  }
  0x1c   :  { %1681 = vmatprep.subr.bf16.mxu0 %v1899_v29  ;;  %v1946_v29 = vld [vmem:[%s2487_s1 + $0x2e8] sm:$0xff]   ;;  %v1958_v42 = vld [vmem:[%s2487_s1 + $0x2d0] sm:$0xff]  }
  0x1d   :  { %1702 = vmatpush3.bf16.msra.mxu1 %v1898_v28  ;;  %v1943_v28 = vld [vmem:[%s2487_s1 + $0x2b0] sm:$0xff]  }
  0x1e   :  { %1703 = vmatprep.subr.bf16.mxu1 %v1901_v31  ;;  %v1948_v31 = vld [vmem:[%s2487_s1 + $0x260] sm:$0xff]   ;;  %v1957_v43 = vld [vmem:[%s2487_s1 + $0x210] sm:$0xff]  }
  0x1f   :  { %1682 = vmatpush3.bf16.msra.mxu0 %v1900_v30  ;;  %v1945_v30 = vld [vmem:[%s2487_s1 + $0x228] sm:$0xff]   ;;  %v1959_v46 = vld [vmem:[%s2487_s1 + $0x290] sm:$0xff]  }
  0x20   :  { %1711 = vmatprep.subr.bf16.mxu0 %v1904_v37  ;;  %v1954_v37 = vld [vmem:[%s2487_s1 + $0x2d8] sm:$0xff]  }
  0x21   :  { %1704 = vmatpush3.bf16.msra.mxu1 %v1903_v34  ;;  %v1949_v34 = vld [vmem:[%s2487_s1 + $0x220] sm:$0xff]  }
  0x22   :  { %1733 = vmatprep.subr.bf16.mxu1 %v1906_v40  ;;  %1078 = vmatmul.mubr.bf16.vlgmr.msra.gmra.mxu0 %v286_v45  ;;  %v1955_v40 = vld [vmem:[%s2487_s1 + $0x298] sm:$0xff]   ;;  %v29_v45 = vld [vmem:[%s2486_s0 + $0x8] sm:$0x3f] }
  0x23   :  { %1712 = vmatpush3.bf16.msra.mxu0 %v1905_v48  ;;  %1157 = vmatprep.mubr.bf16.mxu0 %v307_v49  ;;  %v319_v47 = vrot.slane %v29_v45, %v2168_v41  ;;  %v312_v48 = vcombine.high %v29_v45, %v29_v45  ;;  %v1962_v49 = vld [vmem:[%s2487_s1 + $0x2c8] sm:$0xff]  }
  0x24   :  { %1118 = vmatmul.mubr.bf16.vlgmr.msra.gmra.mxu1 %v308_v50  ;;  %1713 = vmatprep.subr.bf16.mxu0 %v1908_v51  ;;  %v1961_v50 = vld [vmem:[%s2487_s1 + $0x208] sm:$0xff]  }
  0x25   :  { %1734 = vmatpush3.bf16.msra.mxu1 %v1907_v53  ;;  %1197 = vmatprep.mubr.bf16.mxu1 %v311_v55  ;;  %v327_v51 = vcombine.high %v319_v47, %v319_v47  ;;  %v326_v52 = vrot.slane %v312_v48, %v2168_v41  ;;  %v1964_v53 = vld [vmem:[%s2487_s1 + $0x240] sm:$0xff]  }
  0x26   :  { %1735 = vmatprep.subr.bf16.mxu1 %v1910_v54  ;;  %v1963_v54 = vld [vmem:[%s2487_s1 + $0x288] sm:$0xff]  }
  0x27   :  { %1714 = vmatpush3.bf16.msra.mxu0 %v1909_v56  ;;  %v349_v55 = vrot.slane %v327_v51, %v2168_v41  ;;  %v1966_v56 = vld [vmem:[%s2487_s1 + $0x2c0] sm:$0xff]  }
  0x28   :  { %1715 = vmatprep.subr.bf16.mxu0 %v1912_v57  ;;  %v1965_v57 = vld [vmem:[%s2487_s1 + $0x200] sm:$0xff]  }
  0x29   :  { %1736 = vmatpush3.bf16.msra.mxu1 %v1911_v58  ;;  %v358_v58 = vcombine.high %v349_v55, %v349_v55 }
  0x2a   :  { %1737 = vmatprep.subr.bf16.mxu1 %v1914_v59  ;;  %v328_v59 = vcombine.high %v326_v52, %v326_v52 }
  0x2b   :  { %1716 = vmatpush3.bf16.msra.mxu0 %v1913_v60  ;;  %v335_v60 = vrot.slane %v319_v47, %v2168_v41 }
  0x2c   :  { %1717 = vmatprep.subr.bf16.mxu0 %v1916_v61  ;;  %v1968_v61 = vld [vmem:[%s2487_s1 + $0x378] sm:$0xff]  }
  0x2d   :  { %1738 = vmatpush3.bf16.msra.mxu1 %v1915_v62  ;;  %v1967_v62 = vld [vmem:[%s2487_s1 + $0x280] sm:$0xff]  }
  0x2e   :  { %1739 = vmatprep.subr.bf16.mxu1 %v1918_v63  ;;  %v1969_v63 = vld [vmem:[%s2487_s1 + $0x338] sm:$0xff]  }
  0x2f   :  { %1718 = vmatpush3.bf16.msra.mxu0 %v1917_v0  ;;  %v356_v0 = vrot.slane %v328_v59, %v2168_v41 }
  0x30   :  { %1719 = vmatprep.subr.bf16.mxu0 %v1920_v1  ;;  %v357_v1 = vcombine.high %v335_v60, %v335_v60 }
  0x31   :  { %1740 = vmatpush3.bf16.msra.mxu1 %v1919_v2  ;;  %v1970_v2 = vld [vmem:[%s2487_s1 + $0x370] sm:$0xff]  }
  0x32   :  { %1741 = vmatprep.subr.bf16.mxu1 %v1922_v3  ;;  %v1971_v3 = vld [vmem:[%s2487_s1 + $0x330] sm:$0xff]  }
  0x33   :  { %1720 = vmatpush3.bf16.msra.mxu0 %v1921_v4  ;;  %v1972_v4 = vld [vmem:[%s2487_s1 + $0x368] sm:$0xff]  }
  0x34   :  { %1721 = vmatprep.subr.bf16.mxu0 %v1924_v5  ;;  %v1973_v5 = vld [vmem:[%s2487_s1 + $0x328] sm:$0xff]  }
  0x35   :  { %1742 = vmatpush3.bf16.msra.mxu1 %v1923_v6  ;;  %v1974_v6 = vld [vmem:[%s2487_s1 + $0x360] sm:$0xff]  }
  0x36   :  { %1743 = vmatprep.subr.bf16.mxu1 %v1926_v7  ;;  %v1975_v7 = vld [vmem:[%s2487_s1 + $0x320] sm:$0xff]  }
  0x37   :  { %1722 = vmatpush3.bf16.msra.mxu0 %v1925_v8  ;;  %v1976_v8 = vld [vmem:[%s2487_s1 + $0x358] sm:$0xff]  }
  0x38   :  { %1723 = vmatprep.subr.bf16.mxu0 %v1928_v9 }
  0x39   :  { %1744 = vmatpush3.bf16.msra.mxu1 %v1927_v10 }
  0x3a   :  { %1745 = vmatprep.subr.bf16.mxu1 %v1930_v11 }
  0x3b   :  { %1724 = vmatpush3.bf16.msra.mxu0 %v1929_v12 }
  0x3c   :  { %1725 = vmatprep.subr.bf16.mxu0 %v1932_v13 }
  0x3d   :  { %1746 = vmatpush3.bf16.msra.mxu1 %v1931_v14 }
  0x3e   :  { %1747 = vmatprep.subr.bf16.mxu1 %v1934_v15 }
  0x3f   :  { %1726 = vmatpush3.bf16.msra.mxu0 %v1933_v16 }
  0x40   :  { %1755 = vmatprep.subr.bf16.mxu0 %v1936_v18 }
  0x41   :  { %1748 = vmatpush3.bf16.msra.mxu1 %v1935_v19 }
  0x42   :  { %1158 = vmatmul.mubr.bf16.vlgmr.msra.gmra.mxu0 %v293_v17  ;;  %1777 = vmatprep.subr.bf16.mxu1 %v1938_v20 }
  0x43   :  { %1756 = vmatpush3.bf16.msra.mxu0 %v1937_v21  ;;  %1237 = vmatprep.mubr.bf16.mxu0 %v349_v55 }
  0x44   :  { %1198 = vmatmul.mubr.bf16.vlgmr.msra.gmra.mxu1 %v309_v22  ;;  %1757 = vmatprep.subr.bf16.mxu0 %v1940_v23 }
  0x45   :  { %1778 = vmatpush3.bf16.msra.mxu1 %v1939_v24  ;;  %1277 = vmatprep.mubr.bf16.mxu1 %v358_v58 }
  0x46   :  { %1779 = vmatprep.subr.bf16.mxu1 %v1942_v25 }
  0x47   :  { %1758 = vmatpush3.bf16.msra.mxu0 %v1941_v26 }
  0x48   :  { %1759 = vmatprep.subr.bf16.mxu0 %v1944_v27 }
  0x49   :  { %1780 = vmatpush3.bf16.msra.mxu1 %v1943_v28 }
  0x4a   :  { %1781 = vmatprep.subr.bf16.mxu1 %v1946_v29 }
  0x4b   :  { %1760 = vmatpush3.bf16.msra.mxu0 %v1945_v30 }
  0x4c   :  { %1761 = vmatprep.subr.bf16.mxu0 %v1948_v31 }
  0x4d   :  { %1782 = vmatpush3.bf16.msra.mxu1 %v1947_v32 }
  0x4e   :  { %1783 = vmatprep.subr.bf16.mxu1 %v1950_v33 }
  0x4f   :  { %1762 = vmatpush3.bf16.msra.mxu0 %v1949_v34 }
  0x50   :  { %1763 = vmatprep.subr.bf16.mxu0 %v1952_v35 }
  0x51   :  { %1784 = vmatpush3.bf16.msra.mxu1 %v1951_v36 }
  0x52   :  { %1785 = vmatprep.subr.bf16.mxu1 %v1954_v37 }
  0x53   :  { %1764 = vmatpush3.bf16.msra.mxu0 %v1953_v38 }
  0x54   :  { %1765 = vmatprep.subr.bf16.mxu0 %v1956_v39 }
  0x55   :  { %1786 = vmatpush3.bf16.msra.mxu1 %v1955_v40 }
  0x56   :  { %1787 = vmatprep.subr.bf16.mxu1 %v1958_v42 }
  0x57   :  { %1766 = vmatpush3.bf16.msra.mxu0 %v1957_v43 }
  0x58   :  { %1767 = vmatprep.subr.bf16.mxu0 %v1960_v44 }
  0x59   :  { %1788 = vmatpush3.bf16.msra.mxu1 %v1959_v46 }
  0x5a   :  { %1789 = vmatprep.subr.bf16.mxu1 %v1962_v49 }
  0x5b   :  { %1768 = vmatpush3.bf16.msra.mxu0 %v1961_v50 }
  0x5c   :  { %1769 = vmatprep.subr.bf16.mxu0 %v1964_v53 }
  0x5d   :  { %1790 = vmatpush3.bf16.msra.mxu1 %v1963_v54 }
  0x5e   :  { %1791 = vmatprep.subr.bf16.mxu1 %v1966_v56 }
  0x5f   :  { %1770 = vmatpush3.bf16.msra.mxu0 %v1965_v57 }
  0x60   :  { %1799 = vmatprep.subr.bf16.mxu0 %v1968_v61 }
  0x61   :  { %1792 = vmatpush3.bf16.msra.mxu1 %v1967_v62 }
  0x62   :  { %1238 = vmatmul.mubr.bf16.vlgmr.msra.gmra.mxu0 %v335_v60 }
  0x63   :  { %1800 = vmatpush3.bf16.msra.mxu0 %v1969_v63  ;;  %1317 = vmatprep.mubr.bf16.mxu0 %v356_v0 }
  0x64   :  { %1278 = vmatmul.mubr.bf16.vlgmr.msra.gmra.mxu1 %v357_v1  ;;  %1801 = vmatprep.subr.bf16.mxu0 %v1970_v2 }
  0x67   :  { %1802 = vmatpush3.bf16.msra.mxu0 %v1971_v3 }
  0x68   :  { %1803 = vmatprep.subr.bf16.mxu0 %v1972_v4 }
  0x6b   :  { %1804 = vmatpush3.bf16.msra.mxu0 %v1973_v5 }
  0x6c   :  { %1805 = vmatprep.subr.bf16.mxu0 %v1974_v6 }
  0x6d   :  { %12 = vsyncpa [#allocation3], 0  ;;  %v1977_v9 = vld [vmem:[%s2487_s1 + $0x318] sm:$0xff]   ;;  %v1978_v10 = vld [vmem:[%s2487_s1 + $0x350] sm:$0xff]   ;;  %v342_v16 = vrot.slane %v326_v52, %v2168_v41  ;;  %v2020_v18 = vmov 0.0   ;;  %vm2021_vm0 = vmmov 0  }
  0x6e   :  { %v1979_v11 = vld [vmem:[%s2487_s1 + $0x310] sm:$0xff]   ;;  %v1980_v12 = vld [vmem:[%s2487_s1 + $0x348] sm:$0xff]   ;;  %v1982_v14 = vld [vmem:[%s2487_s1 + $0x340] sm:$0xff]   ;;  %1835 = vmatprep.subr.bf16.mxu1 %v2020_v18  ;;  %1851 = vmatprep.mubr.msk.bf16.mxu1 %vm2021_vm0, %v2020_v18  ;;  %vm1479_vm1 = vcmask 523264   ;;  %s2022_s23 = smov [#allocation2]   ;;  %vm1523_vm2 = vcmask 74752  }
  0x6f   :  { %1806 = vmatpush3.bf16.msra.mxu0 %v1975_v7  ;;  %v1981_v13 = vld [vmem:[%s2487_s1 + $0x308] sm:$0xff]   ;;  %v1983_v15 = vld [vmem:[%s2487_s1 + $0x300] sm:$0xff]   ;;  %v1985_v17 = vld [vmem:[%s2489_s3 + $0x38] sm:$0xff]  }
  0x70   :  { %1807 = vmatprep.subr.bf16.mxu0 %v1976_v8  ;;  %1836 = vmatpush3.bf16.msra.mxu1 %v1985_v17  ;;  %v1986_v19 = vld [vmem:[%s2489_s3 + $0x30] sm:$0xff]   ;;  %v1987_v41 = vld [vmem:[%s2489_s3 + $0x28] sm:$0xff]   ;;  %v1988_v20 = vld [vmem:[%s2489_s3 + $0x20] sm:$0xff]  }
  0x71   :  { %1837 = vmatprep.subr.bf16.mxu1 %v2020_v18  ;;  %v1989_v21 = vld [vmem:[%s2489_s3 + $0x18] sm:$0xff]   ;;  %v1990_v22 = vld [vmem:[%s2489_s3 + $0x10] sm:$0xff]   ;;  %v1991_v23 = vld [vmem:[%s2489_s3 + $0x8] sm:$0xff]  }
  0x72   :  { %v1992_v24 = vld [vmem:[%s2489_s3] sm:$0xff]   ;;  %v1993_v25 = vld [vmem:[%s2491_s5 + $0x18] sm:$0xff]   ;;  %v1994_v26 = vld [vmem:[%s2491_s5 + $0x10] sm:$0xff]  }
  0x73   :  { %1808 = vmatpush3.bf16.msra.mxu0 %v1977_v9  ;;  %v1539_v28 = vld [vmem:[%s2488_s2] ss:$0 sm:$0xff]  ;;  %v1995_v9 = vld [vmem:[%s2491_s5 + $0x8] sm:$0xff]  }
  0x74   :  { %1809 = vmatprep.subr.bf16.mxu0 %v1978_v10  ;;  %1838 = vmatpush3.bf16.msra.mxu1 %v1986_v19  ;;  %v1996_v10 = vld [vmem:[%s2491_s5] sm:$0xff]   ;;  %s1531_s5 = sshll.u32 %s2022_s23, 4  ;;  %s1532_s5 = int_to_ptr.vmem [resolvable:$true] %s1531_s5 }
  0x75   :  { %1839 = vmatprep.subr.bf16.mxu1 %v2020_v18  ;;  %p2002_p1 = scmp.lt.s32.totalorder %s1532_s5, %s1532_s5 }
  0x77   :  { %1810 = vmatpush3.bf16.msra.mxu0 %v1979_v11  ;;  %v1652_v11 = vld [vmem:[%s2490_s4] ss:$0 sm:$0xff]  ;;  %s1997_s4 = scalar_lea.vmem %s1532_s5, 32 }
  0x78   :  { %1811 = vmatprep.subr.bf16.mxu0 %v1980_v12  ;;  %1840 = vmatpush3.bf16.msra.mxu1 %v1987_v41  ;;  %p1998_p0 = scmp.ne.s32.totalorder %s1532_s5, %s1997_s4  ;;  %p2003_p2 = scmp.lt.s32.totalorder %s1997_s4, %s1997_s4 }
  0x79   :  { %1841 = vmatprep.subr.bf16.mxu1 %v2020_v18 }
  0x7a   :  { %p2004_p3 = por %p2003_p2, %p2002_p1 }
  0x7b   :  { %1812 = vmatpush3.bf16.msra.mxu0 %v1981_v13 }
  0x7c   :  { %1813 = vmatprep.subr.bf16.mxu0 %v1982_v14  ;;  %1842 = vmatpush3.bf16.msra.mxu1 %v1988_v20  ;;  %p2005_p4 = pnand %p2004_p3, %p1998_p0 }
  0x7d   :  { %1843 = vmatprep.subr.bf16.mxu1 %v2020_v18 }
  0x7f   :  { %1814 = vmatpush3.bf16.msra.mxu0 %v1983_v15 }
  0x80   :  { %1855 = vmatprep.subr.bf16.mxu0 %v2020_v18  ;;  %1844 = vmatpush3.bf16.msra.mxu1 %v1989_v21 }
  0x81   :  { %1845 = vmatprep.subr.bf16.mxu1 %v2020_v18 }
  0x82   :  { %1318 = vmatmul.mubr.bf16.vlgmr.msra.gmra.mxu0 %v342_v16 }
  0x83   :  { %1863 = vmatprep.mubr.msk.bf16.mxu0 %vm2021_vm0, %v2020_v18  ;;  %1856 = vmatpush3.bf16.msra.mxu0 %v1993_v25 }
  0x84   :  { %1846 = vmatpush3.bf16.msra.mxu1 %v1990_v22  ;;  %1857 = vmatprep.subr.bf16.mxu0 %v2020_v18 }
  0x85   :  { %1847 = vmatprep.subr.bf16.mxu1 %v2020_v18 }
  0x87   :  { %1858 = vmatpush3.bf16.msra.mxu0 %v1994_v26 }
  0x88   :  { %1848 = vmatpush3.bf16.msra.mxu1 %v1991_v23  ;;  %1859 = vmatprep.subr.bf16.mxu0 %v2020_v18 }
  0x89   :  { %1849 = vmatprep.subr.bf16.mxu1 %v2020_v18 }
  0x8b   :  { %1860 = vmatpush3.bf16.msra.mxu0 %v1995_v9 }
  0x8c   :  { %1850 = vmatpush3.bf16.msra.mxu1 %v1992_v24  ;;  %1861 = vmatprep.subr.bf16.mxu0 %v2020_v18  ;;  %v1661_v18 = vld [vmem:[%s2492_s6] ss:$0 sm:$0xff] }
  0x8f   :  { %1862 = vmatpush3.bf16.msra.mxu0 %v1996_v10 }
  0xe2   :  { %v1683_v27 = vpop.f32.mrf.mxu0 }
  0xe4   :  { %v1684_v29 = vpop.f32.mrf.mxu0  ;;  %v1705_v30 = vpop.f32.mrf.mxu1 }
  0xe5   :  { %v1685_v31 = vadd.f32 %v1684_v29, %v1683_v27 }
  0xe6   :  { %v1686_v32 = vpop.f32.mrf.mxu0  ;;  %v1706_v33 = vpop.f32.mrf.mxu1 }
  0xe7   :  { %v1080_v34 = vadd.f32 %v1685_v31, %v1539_v28  ;;  %v1707_v35 = vadd.f32 %v1706_v33, %v1705_v30 }
  0xe8   :  { %v1687_v36 = vpop.f32.mrf.mxu0  ;;  %v1708_v37 = vpop.f32.mrf.mxu1 }
  0xe9   :  { %v1120_v38 = vadd.f32 %v1707_v35, %v1080_v34 }
  0xea   :  { %v1709_v39 = vpop.f32.mrf.mxu1 }
 0x102   :  { %v1727_v40 = vpop.f32.mrf.mxu0 }
 0x104   :  { %v1728_v42 = vpop.f32.mrf.mxu0  ;;  %v1749_v43 = vpop.f32.mrf.mxu1 }
 0x105   :  { %v1729_v57 = vadd.f32 %v1728_v42, %v1727_v40 }
 0x106   :  { %v1730_v44 = vpop.f32.mrf.mxu0  ;;  %v1750_v45 = vpop.f32.mrf.mxu1 }
 0x107   :  { %v1160_v58 = vadd.f32 %v1729_v57, %v1120_v38  ;;  %v1751_v59 = vadd.f32 %v1750_v45, %v1749_v43 }
 0x108   :  { %v1731_v46 = vpop.f32.mrf.mxu0  ;;  %v1752_v47 = vpop.f32.mrf.mxu1 }
 0x109   :  { %v1200_v61 = vadd.f32 %v1751_v59, %v1160_v58 }
 0x10a   :  { %v1753_v48 = vpop.f32.mrf.mxu1 }
 0x122   :  { %v1771_v49 = vpop.f32.mrf.mxu0 }
 0x124   :  { %v1772_v50 = vpop.f32.mrf.mxu0  ;;  %v1793_v51 = vpop.f32.mrf.mxu1 }
 0x125   :  { %v1773_v60 = vadd.f32 %v1772_v50, %v1771_v49 }
 0x126   :  { %v1774_v52 = vpop.f32.mrf.mxu0  ;;  %v1794_v53 = vpop.f32.mrf.mxu1 }
 0x127   :  { %v1240_v62 = vadd.f32 %v1773_v60, %v1200_v61  ;;  %v1795_v63 = vadd.f32 %v1794_v53, %v1793_v51 }
 0x128   :  { %v1775_v54 = vpop.f32.mrf.mxu0  ;;  %v1796_v55 = vpop.f32.mrf.mxu1 }
 0x129   :  { %v1280_v2 = vadd.f32 %v1795_v63, %v1240_v62 }
 0x12a   :  { %v1797_v56 = vpop.f32.mrf.mxu1 }
 0x142   :  { %v1815_v0 = vpop.f32.mrf.mxu0 }
 0x144   :  { %v1816_v1 = vpop.f32.mrf.mxu0 }
 0x145   :  { %v1817_v3 = vadd.f32 %v1816_v1, %v1815_v0 }
 0x146   :  { %v1818_v4 = vpop.f32.mrf.mxu0 }
 0x147   :  { %v1320_v5 = vadd.f32 %v1817_v3, %v1280_v2 }
 0x148   :  { %v1819_v6 = vpop.f32.mrf.mxu0 }
 0x149   :  { %v1325_v7 = vmax.f32 %v1320_v5, 0.0 }
 0x14b   :  { %v1326_v8 = vpack.c.bf16 %v1325_v7, %v1325_v7 }
 0x14d   :  { %1852 = vmatmul.mubr.bf16.vlgmr.msra.gmra.mxu1 %v1326_v8 }
 0x20d   :  { %v1432_v12 = vpop.f32.mrf.mxu1 }
 0x20e   :  { %v1433_v13 = vadd.f32 %v1652_v11, %v1432_v12 }
 0x20f   :  { %v1853_v14 = vpop.f32.mrf.mxu1 }
 0x210   :  { %v1438_v15 = vmax.f32 %v1433_v13, 0.0 }
 0x211   :  { %v1435_v16 = vpop.f32.mrf.mxu1 }
 0x212   :  { %v1439_v17 = vpack.c.bf16 %v1438_v15, %v1438_v15 }
 0x213   :  { %v1854_v19 = vpop.f32.mrf.mxu1 }
 0x214   :  { %1864 = vmatmul.mubr.msk.bf16.vlgmr.msra.gmra.mxu0 %vm1479_vm1, %v1439_v17 }
 0x2d4   :  { %v1517_v41 = vpop.f32.mrf.mxu0 }
 0x2d5   :  { %v1518_v20 = vadd.f32 %v1661_v18, %v1517_v41 }
 0x2d6   :  { %v1865_v21 = vpop.f32.mrf.mxu0 }
 0x2d7   :  { %1524 = vst.msk [vmem:[#allocation2] sm:$0x3] %vm1523_vm2, %v1518_v20 }
 0x2d8   :  { %v1520_v22 = vpop.f32.mrf.mxu0 }
 0x2d9   :  { %2008 = shalt.err (!%p2005_p4)
}
 0x2da   :  { %1534 = dma.vmem_to_hbm [thread:$0]  %s1532_s5, 32, %s2493_s7, [#allocation3]   ;;  %v1866_v23 = vpop.f32.mrf.mxu0 }
 0x2db   :  { %2017 = dma.done.wait [#allocation3], 32  }
 0x2dc   :  { %2018 = vsyncadd [#allocation3], 4294967264 }
 0x2dd   :  { %1538 = vsyncpa [#allocation3], 1 }

// kernel: convnet_forward.2
= control target key start
LH: loop header
LB: loop body
LE: loop exit
PB: predicated region body
PF: predicated region fallthrough
CT: control target
= control target key end

     0   :  { %12 = vsyncpa [#allocation3], 0  ;;  %s5202_s0 = inlined_call_operand.vmem [shape: f32[4,14,28], index: 0, kind: input, shape index: {}]   ;;  %s5203_s1 = inlined_call_operand.vmem [shape: bf16[14,1], index: 1, kind: input, shape index: {}]   ;;  %s5204_s2 = inlined_call_operand.vmem [shape: bf16[14,1], index: 2, kind: input, shape index: {}]   ;;  %s5205_s3 = inlined_call_operand.hbm [shape: bf16[3,28,512], index: 3, kind: input, shape index: {}]   ;;  %s5206_s4 = inlined_call_operand.vmem [shape: f32[1,512], index: 4, kind: input, shape index: {}]   ;;  %s5207_s5 = inlined_call_operand.hbm [shape: bf16[3,256,512], index: 5, kind: input, shape index: {}]   ;;  %s5208_s6 = inlined_call_operand.vmem [shape: f32[1,512], index: 6, kind: input, shape index: {}]   ;;  %s5209_s7 = inlined_call_operand.vmem [shape: bf16[14,256], index: 7, kind: output, shape index: {}]  }
   0x1   :  { %13 = vsyncpa [#allocation5], 0  ;;  %s4064_s24 = smov [#allocation2]  }
   0x2   :  { %s25_s25 = sshll.u32 %s4064_s24, 4  ;;  %s26_s25 = int_to_ptr.vmem [resolvable:$true] %s25_s25 }
   0x3   :  { %s4028_s26 = scalar_lea.vmem %s26_s25, 3072  ;;  %p4033_p1 = scmp.lt.s32.totalorder %s26_s25, %s26_s25 }
   0x4   :  { %p4029_p0 = scmp.ne.s32.totalorder %s26_s25, %s4028_s26  ;;  %p4034_p2 = scmp.lt.s32.totalorder %s4028_s26, %s4028_s26 }
   0x6   :  { %p4035_p3 = por %p4034_p2, %p4033_p1 }
   0x8   :  { %p4036_p4 = pnand %p4035_p3, %p4029_p0 }
   0xa   :  { %4039 = shalt.err (!%p4036_p4)
}
   0xb   :  { %s4065_s27 = smov 256   ;;  %s4066_s28 = smov 16  }
   0xc   :  { %31 = dma.hbm_to_vmem [thread:$0]  %s5205_s3, 3072, %s26_s25, [#allocation3], %s4065_s27, %s4065_s27, %s4066_s28  }
   0xd   :  { %s4067_s8 = smov [#allocation4]  }
   0xe   :  { %s39_s9 = sshll.u32 %s4067_s8, 4  ;;  %s40_s9 = int_to_ptr.vmem [resolvable:$true] %s39_s9 }
   0xf   :  { %s4048_s10 = scalar_lea.vmem %s40_s9, 24576  ;;  %p4053_p6 = scmp.lt.s32.totalorder %s40_s9, %s40_s9 }
  0x10   :  { %p4049_p5 = scmp.ne.s32.totalorder %s40_s9, %s4048_s10  ;;  %p4054_p7 = scmp.lt.s32.totalorder %s4048_s10, %s4048_s10 }
  0x12   :  { %p4055_p8 = por %p4054_p7, %p4053_p6 }
  0x14   :  { %p4056_p9 = pnand %p4055_p8, %p4049_p5 }
  0x16   :  { %4059 = shalt.err (!%p4056_p9)
}
  0x17   :  { %45 = dma.hbm_to_vmem [thread:$0]  %s5207_s5, 24576, %s40_s9, [#allocation5], %s4065_s27, %s4065_s27, %s4066_s28  }
  0x18   :  { %4060 = dma.done.wait [#allocation3], 3072  }
  0x19   :  { %4061 = vsyncadd [#allocation3], 4294964224 }
  0x1a   :  { %4062 = dma.done.wait [#allocation5], 24576  }
  0x1b   :  { %4063 = vsyncadd [#allocation5], 4294942720  ;;  %v4068_v0 = vmov 0   ;;  %v55_v1 = vld [vmem:[%s5203_s1] sm:$0xf]  ;;  %vm226_vm0 = vcmask 1045504   ;;  %v94_v35 = vlaneseq }
  0x1c   :  { %3628 = vset.pattern.permute.xlu0 %v4068_v0  ;;  %3629 = vset.pattern.permute.xlu1 %v4068_v0  ;;  %v56_v2 = vld [vmem:[%s5203_s1 + $0x4] sm:$0x7]  ;;  %v57_v3 = vld [vmem:[%s5204_s2] sm:$0xf]  ;;  %v4149_v12 = vld [vmem:[#allocation2 + $0x4c] ss:$16 sps:$4 sm:$0xff]  }
  0x1d   :  { %271 = vmatprep.mubr.bf16.mxu0 %v4068_v0  ;;  %314 = vmatprep.mubr.bf16.mxu1 %v4068_v0  ;;  %v58_v4 = vld [vmem:[%s5204_s2 + $0x4] sm:$0x7]  ;;  %v4134_v6 = vld [vmem:[#allocation2 + $0x6c] ss:$16 sps:$4 sm:$0x3f]   ;;  %vm223_vm1 = vcmask 228352  }
  0x1e   :  { %88 = vperm.xlu0 %3628, %v55_v1   ;;  %131 = vperm.xlu1 %3629, %v57_v3   ;;  %v4132_v5 = vld [vmem:[#allocation2 + $0x64] ss:$16 sps:$4 sm:$0x3f]   ;;  %v3634_v7 = vld [vmem:[#allocation2 + $0x60] ss:$16 sps:$4 sm:$0x3f]  }
  0x1f   :  { %3362 = vmatprep.subr.msk.bf16.mxu0 %vm226_vm0, %v4132_v5  ;;  %v3635_v8 = vld [vmem:[#allocation2 + $0x68] ss:$16 sps:$4 sm:$0x3f]   ;;  %v4139_v9 = vsel %vm226_vm0, %v3634_v7, 0  ;;  %v4141_v10 = vld [vmem:[#allocation2 + $0x44] ss:$16 sps:$4 sm:$0xff]   ;;  %3364 = vmatprep.subr.msk.bf16.mxu1 %vm226_vm0, %v4134_v6 }
  0x20   :  { %252 = vmatpush1.bf16.msra.mxu0 %v4139_v9  ;;  %v4147_v11 = vsel %vm226_vm0, %v3635_v8, 0  ;;  %v4151_v13 = vld [vmem:[#allocation2 + $0x40] ss:$16 sps:$4 sm:$0xff]   ;;  %v4158_v15 = vld [vmem:[#allocation2 + $0x48] ss:$16 sps:$4 sm:$0xff]   ;;  %v4219_v38 = vshrl.u32 %v94_v35, 7 }
  0x21   :  { %v59_v14 = vld [vmem:[%s5202_s0] sm:$0xff]  ;;  %295 = vmatpush1.bf16.msra.mxu1 %v4147_v11  ;;  %253 = vmatprep.subr.bf16.mxu0 %v4141_v10  ;;  %v60_v16 = vld [vmem:[%s5202_s0 + $0x8] sm:$0x3f]  ;;  %v3350_v30 = vld [vmem:[%s5202_s0 + $0x30] sm:$0xff]  ;;  %v4069_v33 = vmov 839922192  }
  0x22   :  { %100 = vperm.xlu0 %3628, %v56_v2   ;;  %143 = vperm.xlu1 %3629, %v58_v4   ;;  %v4164_v17 = vld [vmem:[#allocation2 + $0x24] ss:$16 sps:$4 sm:$0x3f]   ;;  %v4166_v18 = vpack.c.bf16 %v60_v16, %v59_v14  ;;  %v4168_v19 = vld [vmem:[#allocation2 + $0x2c] ss:$16 sps:$4 sm:$0x3f]   ;;  %v92_v34 = vunpack.c.l.s4 %v4069_v33 }
  0x23   :  { %296 = vmatprep.subr.bf16.mxu1 %v4149_v12  ;;  %v3646_v20 = vld [vmem:[#allocation2 + $0x20] ss:$16 sps:$4 sm:$0x3f]   ;;  %v3647_v21 = vld [vmem:[#allocation2 + $0x28] ss:$16 sps:$4 sm:$0x3f]  }
  0x24   :  { %254 = vmatpush1.bf16.msra.mxu0 %v4151_v13  ;;  %v4177_v22 = vsel %vm226_vm0, %v3646_v20, 0  ;;  %v4180_v23 = vsel %vm226_vm0, %v3647_v21, 0  ;;  %v4182_v24 = vld [vmem:[#allocation2 + $0x4] ss:$16 sps:$4 sm:$0xff]   ;;  %v4186_v25 = vld [vmem:[#allocation2 + $0xc] ss:$16 sps:$4 sm:$0xff]   ;;  %v93_v37 = vunpack.c.0.s8 %v92_v34 }
  0x25   :  { %297 = vmatpush1.bf16.msra.mxu1 %v4158_v15  ;;  %3374 = vmatprep.subr.msk.bf16.mxu0 %vm226_vm0, %v4164_v17  ;;  %v4188_v26 = vld [vmem:[#allocation2] ss:$16 sps:$4 sm:$0xff]   ;;  %v4190_v27 = vld [vmem:[#allocation2 + $0x8] ss:$16 sps:$4 sm:$0xff]   ;;  %5297 = vst [vmem:[#allocation8_spill] sm:$0xff] %v4219_v38  ;;  %vm82_vm2 = vcmask 1040384  }
  0x26   :  { %3376 = vmatprep.subr.msk.bf16.mxu1 %vm226_vm0, %v4168_v19  ;;  %v4197_v28 = vld [vmem:[#allocation2 + $0xa4] ss:$16 sps:$4 sm:$0x3f]   ;;  %v4201_v29 = vld [vmem:[#allocation2 + $0xac] ss:$16 sps:$4 sm:$0x3f]   ;;  %v4223_v42 = vsub.s32 %v93_v37, %v4219_v38 }
  0x27   :  { %3363 = vmatmul.mubr.msk.bf16.vlgmr.msra.gmra.mxu0 %vm223_vm1, %v4166_v18  ;;  %v3351_v31 = vld [vmem:[%s5202_s0 + $0x38] sm:$0x3f]  ;;  %vm83_vm3 = vsmask.f32 256  ;;  %v4242_v55 = vld [vmem:[#allocation2 + $0x84] ss:$16 sps:$4 sm:$0xff]  }
  0x28   :  { %3365 = vmatmul.mubr.msk.bf16.vlgmr.msra.gmra.mxu1 %vm223_vm1, %v4166_v18  ;;  %389 = vmatpush1.bf16.msra.mxu0 %v4177_v22  ;;  %v4216_v32 = vpack.c.bf16 %v3351_v31, %v3350_v30  ;;  %vm4225_vm4 = vmand %vm82_vm2, %vm83_vm3  ;;  %v3658_v48 = vld [vmem:[#allocation2 + $0xa0] ss:$16 sps:$4 sm:$0x3f]   ;;  %v3659_v49 = vld [vmem:[#allocation2 + $0xa8] ss:$16 sps:$4 sm:$0x3f]  }
  0x29   :  { %432 = vmatpush1.bf16.msra.mxu1 %v4180_v23  ;;  %390 = vmatprep.subr.bf16.mxu0 %v4182_v24  ;;  %v4237_v53 = vsel %vm226_vm0, %v3658_v48, 0  ;;  %v4240_v54 = vsel %vm226_vm0, %v3659_v49, 0  ;;  %v4244_v56 = vld [vmem:[#allocation2 + $0x8c] ss:$16 sps:$4 sm:$0xff]   ;;  %v4248_v57 = vld [vmem:[#allocation2 + $0x80] ss:$16 sps:$4 sm:$0xff]  }
  0x2a   :  { %433 = vmatprep.subr.bf16.mxu1 %v4186_v25  ;;  %408 = vmatprep.mubr.bf16.mxu0 %v4068_v0  ;;  %v75_v36 = vshrl.u32 %v4216_v32, 16  ;;  %v78_v40 = vshll.u32 %v4216_v32, 16  ;;  %v4252_v58 = vld [vmem:[#allocation2 + $0x88] ss:$16 sps:$4 sm:$0xff]   ;;  %v3346_v59 = vld [vmem:[%s5202_s0 + $0x10] sm:$0xff]  ;;  %v3348_v62 = vld [vmem:[%s5202_s0 + $0x20] sm:$0xff] }
  0x2b   :  { %451 = vmatprep.mubr.bf16.mxu1 %v4068_v0  ;;  %v3347_v60 = vld [vmem:[%s5202_s0 + $0x18] sm:$0x3f]  ;;  %v3349_v63 = vld [vmem:[%s5202_s0 + $0x28] sm:$0x3f]  ;;  %v120_v3 = vshll.u32 %v4166_v18, 16  ;;  %v118_v4 = vshrl.u32 %v4166_v18, 16 }
  0x2c   :  { %391 = vmatpush1.bf16.msra.mxu0 %v4188_v26  ;;  %v77_v39 = vrot.slane %v75_v36, 7  ;;  %v4264_v61 = vpack.c.bf16 %v3347_v60, %v3346_v59  ;;  %v4320_v1 = vpack.c.bf16 %v3349_v63, %v3348_v62  ;;  %vm125_vm5 = vcmask 1046528   ;;  %v3671_v14 = vld [vmem:[#allocation4 + $0x2ec] ss:$16 sps:$4 sm:$0xff]   ;;  %v3666_v16 = vld [vmem:[#allocation4 + $0x2e0] ss:$16 sps:$4 sm:$0xff]  }
  0x2d   :  { %434 = vmatpush1.bf16.msra.mxu1 %v4190_v27  ;;  %3386 = vmatprep.subr.msk.bf16.mxu0 %vm226_vm0, %v4197_v28  ;;  %vm126_vm6 = vsmask.f32 6400  ;;  %v3672_v20 = vld [vmem:[#allocation4 + $0x2c0] ss:$16 sps:$4 sm:$0xff]   ;;  %v3680_v21 = vld [vmem:[#allocation4 + $0x2a4] ss:$16 sps:$4 sm:$0xff]  }
  0x2e   :  { %3388 = vmatprep.subr.msk.bf16.mxu1 %vm226_vm0, %v4201_v29  ;;  %v80_v43 = vor.u32 %v78_v40, %v77_v39  ;;  %vm4412_vm7 = vmand %vm125_vm5, %vm126_vm6  ;;  %v3695_v30 = vld [vmem:[#allocation4 + $0x26c] ss:$16 sps:$4 sm:$0xff]   ;;  %v3690_v31 = vld [vmem:[#allocation4 + $0x260] ss:$16 sps:$4 sm:$0xff]  }
  0x2f   :  { %v3698_v33 = vld [vmem:[#allocation4 + $0x244] ss:$16 sps:$4 sm:$0xff]   ;;  %v3701_v34 = vld [vmem:[#allocation4 + $0x24c] ss:$16 sps:$4 sm:$0xff]   ;;  %v3696_v35 = vld [vmem:[#allocation4 + $0x240] ss:$16 sps:$4 sm:$0xff]  }
  0x30   :  { %v85_v50 = vsel %vm4225_vm4, 0, %v80_v43  ;;  %v3699_v36 = vld [vmem:[#allocation4 + $0x248] ss:$16 sps:$4 sm:$0xff]   ;;  %v3704_v37 = vld [vmem:[#allocation4 + $0x224] ss:$16 sps:$4 sm:$0xff]  }
  0x31   :  { %v3707_v39 = vld [vmem:[#allocation4 + $0x22c] ss:$16 sps:$4 sm:$0xff]   ;;  %v3702_v40 = vld [vmem:[#allocation4 + $0x220] ss:$16 sps:$4 sm:$0xff]   ;;  %v3729_v59 = vld [vmem:[#allocation4 + $0x3a8] ss:$16 sps:$4 sm:$0xff]  }
  0x32   :  { %v3713_v43 = vld [vmem:[#allocation4 + $0x20c] ss:$16 sps:$4 sm:$0xff]   ;;  %v3714_v49 = vld [vmem:[#allocation4 + $0x3e0] ss:$16 sps:$4 sm:$0xff]   ;;  %v3734_v60 = vld [vmem:[#allocation4 + $0x384] ss:$16 sps:$4 sm:$0xff]  }
  0x33   :  { %v3719_v48 = vld [vmem:[#allocation4 + $0x3ec] ss:$16 sps:$4 sm:$0xff]   ;;  %v3732_v62 = vld [vmem:[#allocation4 + $0x380] ss:$16 sps:$4 sm:$0xff]   ;;  %v3735_v63 = vld [vmem:[#allocation4 + $0x388] ss:$16 sps:$4 sm:$0xff]  }
  0x34   :  { %v4834_v44 = vld [vmem:[#allocation4 + $0x4c0] ss:$16 sps:$4 sm:$0xff]  }
  0x35   :  { %5325 = vst [vmem:[#allocation29_spill] sm:$0xff] %v4834_v44 }
  0x99   :  { %v89_v41 = vpop.permute.xlu0 %88  ;;  %v132_v2 = vpop.permute.xlu1 %131 }
  0x9a   :  { %v97_v46 = vrot.slane %v89_v41, %v4223_v42  ;;  %v140_v7 = vrot.slane %v132_v2, %v4223_v42  ;;  %v3705_v41 = vld [vmem:[#allocation4 + $0x228] ss:$16 sps:$4 sm:$0xff]   ;;  %v3743_v2 = vld [vmem:[#allocation4 + $0x36c] ss:$16 sps:$4 sm:$0xff]  }
  0x9d   :  { %v101_v45 = vpop.permute.xlu0 %100 }
  0x9e   :  { %v109_v47 = vrot.slane %v101_v45, %v4223_v42  ;;  %v3708_v45 = vld [vmem:[#allocation4 + $0x200] ss:$16 sps:$4 sm:$0xff]  }
  0xa0   :  { %v4233_v51 = vcombine.low %v97_v46, %v109_v47  ;;  %v3711_v46 = vld [vmem:[#allocation4 + $0x208] ss:$16 sps:$4 sm:$0xff]   ;;  %v3716_v47 = vld [vmem:[#allocation4 + $0x3e4] ss:$16 sps:$4 sm:$0xff]  }
  0xa2   :  { %v116_v52 = vmul.bf16 %v4233_v51, %v85_v50  ;;  %v3717_v50 = vld [vmem:[#allocation4 + $0x3e8] ss:$16 sps:$4 sm:$0xff]  }
  0xa4   :  { %3375 = vmatmul.mubr.msk.bf16.vlgmr.msra.gmra.mxu0 %vm223_vm1, %v116_v52  ;;  %3377 = vmatmul.mubr.msk.bf16.vlgmr.msra.gmra.mxu1 %vm223_vm1, %v116_v52  ;;  %v3722_v52 = vld [vmem:[#allocation4 + $0x3c4] ss:$16 sps:$4 sm:$0xff]  }
  0xa5   :  { %526 = vmatpush1.bf16.msra.mxu0 %v4237_v53  ;;  %569 = vmatpush1.bf16.msra.mxu1 %v4240_v54 }
  0xa6   :  { %527 = vmatprep.subr.bf16.mxu0 %v4242_v55  ;;  %570 = vmatprep.subr.bf16.mxu1 %v4244_v56 }
  0xa7   :  { %545 = vmatprep.mubr.bf16.mxu0 %v4068_v0  ;;  %588 = vmatprep.mubr.bf16.mxu1 %v4068_v0 }
  0xa9   :  { %528 = vmatpush1.bf16.msra.mxu0 %v4248_v57  ;;  %571 = vmatpush1.bf16.msra.mxu1 %v4252_v58 }
  0xaa   :  { %3390 = vmatprep.subr.msk.bf16.mxu0 %vm226_vm0, %v4132_v5  ;;  %3392 = vmatprep.subr.msk.bf16.mxu1 %vm226_vm0, %v4134_v6 }
  0xac   :  { %3387 = vmatmul.mubr.msk.bf16.vlgmr.msra.gmra.mxu0 %vm223_vm1, %v4264_v61  ;;  %3389 = vmatmul.mubr.msk.bf16.vlgmr.msra.gmra.mxu1 %vm223_vm1, %v4264_v61 }
  0xad   :  { %657 = vmatpush1.bf16.msra.mxu0 %v4139_v9  ;;  %700 = vmatpush1.bf16.msra.mxu1 %v4147_v11 }
  0xae   :  { %658 = vmatprep.subr.bf16.mxu0 %v4141_v10  ;;  %701 = vmatprep.subr.bf16.mxu1 %v4149_v12 }
  0xaf   :  { %676 = vmatprep.mubr.bf16.mxu0 %v4068_v0  ;;  %719 = vmatprep.mubr.bf16.mxu1 %v4068_v0 }
  0xb1   :  { %659 = vmatpush1.bf16.msra.mxu0 %v4151_v13  ;;  %702 = vmatpush1.bf16.msra.mxu1 %v4158_v15 }
  0xb2   :  { %3394 = vmatprep.subr.msk.bf16.mxu0 %vm226_vm0, %v4164_v17  ;;  %3396 = vmatprep.subr.msk.bf16.mxu1 %vm226_vm0, %v4168_v19 }
  0xb4   :  { %3391 = vmatmul.mubr.msk.bf16.vlgmr.msra.gmra.mxu0 %vm223_vm1, %v4264_v61  ;;  %3393 = vmatmul.mubr.msk.bf16.vlgmr.msra.gmra.mxu1 %vm223_vm1, %v4264_v61 }
  0xb5   :  { %743 = vmatpush1.bf16.msra.mxu0 %v4177_v22  ;;  %786 = vmatpush1.bf16.msra.mxu1 %v4180_v23 }
  0xb6   :  { %744 = vmatprep.subr.bf16.mxu0 %v4182_v24  ;;  %787 = vmatprep.subr.bf16.mxu1 %v4186_v25 }
  0xb7   :  { %762 = vmatprep.mubr.bf16.mxu0 %v4068_v0  ;;  %805 = vmatprep.mubr.bf16.mxu1 %v4068_v0 }
  0xb9   :  { %745 = vmatpush1.bf16.msra.mxu0 %v4188_v26  ;;  %788 = vmatpush1.bf16.msra.mxu1 %v4190_v27 }
  0xba   :  { %3398 = vmatprep.subr.msk.bf16.mxu0 %vm226_vm0, %v4197_v28  ;;  %3400 = vmatprep.subr.msk.bf16.mxu1 %vm226_vm0, %v4201_v29 }
  0xbc   :  { %3395 = vmatmul.mubr.msk.bf16.vlgmr.msra.gmra.mxu0 %vm223_vm1, %v4166_v18  ;;  %3397 = vmatmul.mubr.msk.bf16.vlgmr.msra.gmra.mxu1 %vm223_vm1, %v4166_v18  ;;  %v3674_v18 = vld [vmem:[#allocation4 + $0x2c4] ss:$16 sps:$4 sm:$0xff]  }
  0xbd   :  { %832 = vmatpush1.bf16.msra.mxu0 %v4237_v53  ;;  %875 = vmatpush1.bf16.msra.mxu1 %v4240_v54 }
  0xbe   :  { %833 = vmatprep.subr.bf16.mxu0 %v4242_v55  ;;  %876 = vmatprep.subr.bf16.mxu1 %v4244_v56 }
  0xbf   :  { %851 = vmatprep.mubr.bf16.mxu0 %v4068_v0  ;;  %894 = vmatprep.mubr.bf16.mxu1 %v4068_v0 }
  0xc1   :  { %834 = vmatpush1.bf16.msra.mxu0 %v4248_v57  ;;  %877 = vmatpush1.bf16.msra.mxu1 %v4252_v58 }
  0xc2   :  { %3402 = vmatprep.subr.msk.bf16.mxu0 %vm226_vm0, %v4132_v5  ;;  %3404 = vmatprep.subr.msk.bf16.mxu1 %vm226_vm0, %v4134_v6 }
  0xc4   :  { %3399 = vmatmul.mubr.msk.bf16.vlgmr.msra.gmra.mxu0 %vm223_vm1, %v4320_v1  ;;  %3401 = vmatmul.mubr.msk.bf16.vlgmr.msra.gmra.mxu1 %vm223_vm1, %v4320_v1 }
  0xc5   :  { %942 = vmatpush1.bf16.msra.mxu0 %v4139_v9  ;;  %985 = vmatpush1.bf16.msra.mxu1 %v4147_v11 }
  0xc6   :  { %943 = vmatprep.subr.bf16.mxu0 %v4141_v10  ;;  %986 = vmatprep.subr.bf16.mxu1 %v4149_v12 }
  0xc7   :  { %961 = vmatprep.mubr.bf16.mxu0 %v4068_v0  ;;  %1004 = vmatprep.mubr.bf16.mxu1 %v4068_v0 }
  0xc9   :  { %944 = vmatpush1.bf16.msra.mxu0 %v4151_v13  ;;  %987 = vmatpush1.bf16.msra.mxu1 %v4158_v15 }
  0xca   :  { %3406 = vmatprep.subr.msk.bf16.mxu0 %vm226_vm0, %v4164_v17  ;;  %3408 = vmatprep.subr.msk.bf16.mxu1 %vm226_vm0, %v4168_v19 }
  0xcc   :  { %3403 = vmatmul.mubr.msk.bf16.vlgmr.msra.gmra.mxu0 %vm223_vm1, %v4320_v1  ;;  %3405 = vmatmul.mubr.msk.bf16.vlgmr.msra.gmra.mxu1 %vm223_vm1, %v4320_v1 }
  0xcd   :  { %1028 = vmatpush1.bf16.msra.mxu0 %v4177_v22  ;;  %1071 = vmatpush1.bf16.msra.mxu1 %v4180_v23 }
  0xce   :  { %1029 = vmatprep.subr.bf16.mxu0 %v4182_v24  ;;  %1072 = vmatprep.subr.bf16.mxu1 %v4186_v25 }
  0xcf   :  { %1047 = vmatprep.mubr.bf16.mxu0 %v4068_v0  ;;  %1090 = vmatprep.mubr.bf16.mxu1 %v4068_v0 }
  0xd1   :  { %1030 = vmatpush1.bf16.msra.mxu0 %v4188_v26  ;;  %1073 = vmatpush1.bf16.msra.mxu1 %v4190_v27 }
  0xd2   :  { %3410 = vmatprep.subr.msk.bf16.mxu0 %vm226_vm0, %v4197_v28  ;;  %3412 = vmatprep.subr.msk.bf16.mxu1 %vm226_vm0, %v4201_v29 }
  0xd4   :  { %3407 = vmatmul.mubr.msk.bf16.vlgmr.msra.gmra.mxu0 %vm223_vm1, %v4264_v61  ;;  %3409 = vmatmul.mubr.msk.bf16.vlgmr.msra.gmra.mxu1 %vm223_vm1, %v4264_v61  ;;  %v3737_v61 = vld [vmem:[#allocation4 + $0x38c] ss:$16 sps:$4 sm:$0xff]  }
  0xd5   :  { %1116 = vmatpush1.bf16.msra.mxu0 %v4237_v53  ;;  %1159 = vmatpush1.bf16.msra.mxu1 %v4240_v54 }
  0xd6   :  { %1117 = vmatprep.subr.bf16.mxu0 %v4242_v55  ;;  %1160 = vmatprep.subr.bf16.mxu1 %v4244_v56 }
  0xd7   :  { %1135 = vmatprep.mubr.bf16.mxu0 %v4068_v0  ;;  %1178 = vmatprep.mubr.bf16.mxu1 %v4068_v0 }
  0xd9   :  { %1118 = vmatpush1.bf16.msra.mxu0 %v4248_v57  ;;  %1161 = vmatpush1.bf16.msra.mxu1 %v4252_v58 }
  0xda   :  { %3414 = vmatprep.subr.msk.bf16.mxu0 %vm226_vm0, %v4132_v5  ;;  %3416 = vmatprep.subr.msk.bf16.mxu1 %vm226_vm0, %v4134_v6  ;;  %v122_v5 = vrot.slane %v120_v3, 1  ;;  %v144_v6 = vpop.permute.xlu1 %143  ;;  %v3738_v3 = vld [vmem:[#allocation4 + $0x360] ss:$16 sps:$4 sm:$0xff]  }
  0xdb   :  { %v152_v8 = vrot.slane %v144_v6, %v4223_v42  ;;  %v3710_v42 = vld [vmem:[#allocation4 + $0x204] ss:$16 sps:$4 sm:$0xff]   ;;  %v3749_v6 = vld [vmem:[#allocation4 + $0x34c] ss:$16 sps:$4 sm:$0xff]  }
  0xdc   :  { %3411 = vmatmul.mubr.msk.bf16.vlgmr.msra.gmra.mxu0 %vm223_vm1, %v4216_v32  ;;  %3413 = vmatmul.mubr.msk.bf16.vlgmr.msra.gmra.mxu1 %vm223_vm1, %v4216_v32 }
  0xdd   :  { %1226 = vmatpush1.bf16.msra.mxu0 %v4139_v9  ;;  %1269 = vmatpush1.bf16.msra.mxu1 %v4147_v11  ;;  %v123_v9 = vor.u32 %v122_v5, %v118_v4  ;;  %v4420_v11 = vcombine.low %v140_v7, %v152_v8  ;;  %v3741_v4 = vld [vmem:[#allocation4 + $0x368] ss:$16 sps:$4 sm:$0xff]   ;;  %v3746_v5 = vld [vmem:[#allocation4 + $0x344] ss:$16 sps:$4 sm:$0xff]   ;;  %v3744_v7 = vld [vmem:[#allocation4 + $0x340] ss:$16 sps:$4 sm:$0xff]  }
  0xde   :  { %1227 = vmatprep.subr.bf16.mxu0 %v4141_v10  ;;  %1270 = vmatprep.subr.bf16.mxu1 %v4149_v12  ;;  %v5300_v10 = vmov 0  ;;  %v3747_v8 = vld [vmem:[#allocation4 + $0x348] ss:$16 sps:$4 sm:$0xff]  }
  0xdf   :  { %1245 = vmatprep.mubr.bf16.mxu0 %v4068_v0  ;;  %1288 = vmatprep.mubr.bf16.mxu1 %v4068_v0  ;;  %v5301_v10 = vsel %vm4412_vm7, 4294967295, %v5300_v10  ;;  %5303 = vst [vmem:[#allocation10_spill] sm:$0xff] %v4420_v11  ;;  %v128_v12 = vsel %vm4412_vm7, %v123_v9, 0  ;;  %v3752_v9 = vld [vmem:[#allocation4 + $0x324] ss:$16 sps:$4 sm:$0xff]  }
  0xe0   :  { %5302 = vst [vmem:[#allocation9_spill] sm:$0xff] %v5301_v10 }
  0xe1   :  { %1228 = vmatpush1.bf16.msra.mxu0 %v4151_v13  ;;  %1271 = vmatpush1.bf16.msra.mxu1 %v4158_v15  ;;  %v3668_v13 = vld [vmem:[#allocation4 + $0x2e4] ss:$16 sps:$4 sm:$0xff]   ;;  %v159_v15 = vmul.bf16 %v4420_v11, %v128_v12  ;;  %v3755_v12 = vld [vmem:[#allocation4 + $0x32c] ss:$16 sps:$4 sm:$0xff]  }
  0xe2   :  { %3418 = vmatprep.subr.msk.bf16.mxu0 %vm226_vm0, %v4164_v17  ;;  %3420 = vmatprep.subr.msk.bf16.mxu1 %vm226_vm0, %v4168_v19  ;;  %v3669_v17 = vld [vmem:[#allocation4 + $0x2e8] ss:$16 sps:$4 sm:$0xff]   ;;  %v3677_v19 = vld [vmem:[#allocation4 + $0x2cc] ss:$16 sps:$4 sm:$0xff]  }
  0xe4   :  { %3415 = vmatmul.mubr.msk.bf16.vlgmr.msra.gmra.mxu0 %vm223_vm1, %v4216_v32  ;;  %3417 = vmatmul.mubr.msk.bf16.vlgmr.msra.gmra.mxu1 %vm223_vm1, %v4216_v32  ;;  %v3693_v32 = vld [vmem:[#allocation4 + $0x268] ss:$16 sps:$4 sm:$0xff]  }
  0xe5   :  { %1312 = vmatpush1.bf16.msra.mxu0 %v4177_v22  ;;  %1355 = vmatpush1.bf16.msra.mxu1 %v4180_v23  ;;  %v3683_v22 = vld [vmem:[#allocation4 + $0x2ac] ss:$16 sps:$4 sm:$0xff]   ;;  %v3678_v23 = vld [vmem:[#allocation4 + $0x2a0] ss:$16 sps:$4 sm:$0xff]  }
  0xe6   :  { %1313 = vmatprep.subr.bf16.mxu0 %v4182_v24  ;;  %1356 = vmatprep.subr.bf16.mxu1 %v4186_v25  ;;  %v3681_v24 = vld [vmem:[#allocation4 + $0x2a8] ss:$16 sps:$4 sm:$0xff]   ;;  %v3686_v25 = vld [vmem:[#allocation4 + $0x284] ss:$16 sps:$4 sm:$0xff]  }
  0xe7   :  { %1331 = vmatprep.mubr.bf16.mxu0 %v4068_v0  ;;  %1374 = vmatprep.mubr.bf16.mxu1 %v4068_v0 }
  0xe9   :  { %1314 = vmatpush1.bf16.msra.mxu0 %v4188_v26  ;;  %1357 = vmatpush1.bf16.msra.mxu1 %v4190_v27  ;;  %v3689_v26 = vld [vmem:[#allocation4 + $0x28c] ss:$16 sps:$4 sm:$0xff]   ;;  %v3684_v27 = vld [vmem:[#allocation4 + $0x280] ss:$16 sps:$4 sm:$0xff]  }
  0xea   :  { %3422 = vmatprep.subr.msk.bf16.mxu0 %vm226_vm0, %v4197_v28  ;;  %3424 = vmatprep.subr.msk.bf16.mxu1 %vm226_vm0, %v4201_v29  ;;  %v3687_v28 = vld [vmem:[#allocation4 + $0x288] ss:$16 sps:$4 sm:$0xff]   ;;  %v3692_v29 = vld [vmem:[#allocation4 + $0x264] ss:$16 sps:$4 sm:$0xff]  }
  0xec   :  { %3419 = vmatmul.mubr.msk.bf16.vlgmr.msra.gmra.mxu0 %vm223_vm1, %v4320_v1  ;;  %3421 = vmatmul.mubr.msk.bf16.vlgmr.msra.gmra.mxu1 %vm223_vm1, %v4320_v1  ;;  %v3740_v1 = vld [vmem:[#allocation4 + $0x364] ss:$16 sps:$4 sm:$0xff]  }
  0xed   :  { %1401 = vmatpush1.bf16.msra.mxu0 %v4237_v53  ;;  %1444 = vmatpush1.bf16.msra.mxu1 %v4240_v54  ;;  %v3725_v53 = vld [vmem:[#allocation4 + $0x3cc] ss:$16 sps:$4 sm:$0xff]   ;;  %v3720_v54 = vld [vmem:[#allocation4 + $0x3c0] ss:$16 sps:$4 sm:$0xff]  }
  0xee   :  { %1402 = vmatprep.subr.bf16.mxu0 %v4242_v55  ;;  %1445 = vmatprep.subr.bf16.mxu1 %v4244_v56  ;;  %v3723_v55 = vld [vmem:[#allocation4 + $0x3c8] ss:$16 sps:$4 sm:$0xff]   ;;  %v3728_v56 = vld [vmem:[#allocation4 + $0x3a4] ss:$16 sps:$4 sm:$0xff]  }
  0xef   :  { %1420 = vmatprep.mubr.bf16.mxu0 %v4068_v0  ;;  %1463 = vmatprep.mubr.bf16.mxu1 %v4068_v0  ;;  %v3675_v0 = vld [vmem:[#allocation4 + $0x2c8] ss:$16 sps:$4 sm:$0xff]  }
  0xf1   :  { %1403 = vmatpush1.bf16.msra.mxu0 %v4248_v57  ;;  %1446 = vmatpush1.bf16.msra.mxu1 %v4252_v58  ;;  %v3731_v57 = vld [vmem:[#allocation4 + $0x3ac] ss:$16 sps:$4 sm:$0xff]   ;;  %v3726_v58 = vld [vmem:[#allocation4 + $0x3a0] ss:$16 sps:$4 sm:$0xff]  }
  0xf2   :  { %2089 = vmatprep.subr.bf16.mxu0 %v3668_v13  ;;  %2132 = vmatprep.subr.bf16.mxu1 %v3671_v14  ;;  %v3750_v13 = vld [vmem:[#allocation4 + $0x320] ss:$16 sps:$4 sm:$0xff]   ;;  %v3753_v14 = vld [vmem:[#allocation4 + $0x328] ss:$16 sps:$4 sm:$0xff]  }
  0xf4   :  { %3423 = vmatmul.mubr.msk.bf16.vlgmr.msra.gmra.mxu0 %vm223_vm1, %v159_v15  ;;  %3425 = vmatmul.mubr.msk.bf16.vlgmr.msra.gmra.mxu1 %vm223_vm1, %v159_v15  ;;  %v3758_v15 = vld [vmem:[#allocation4 + $0x304] ss:$16 sps:$4 sm:$0xff]  }
  0xf5   :  { %2090 = vmatpush1.bf16.msra.mxu0 %v3666_v16  ;;  %2133 = vmatpush1.bf16.msra.mxu1 %v3669_v17  ;;  %v3761_v16 = vld [vmem:[#allocation4 + $0x30c] ss:$16 sps:$4 sm:$0xff]   ;;  %v3756_v17 = vld [vmem:[#allocation4 + $0x300] ss:$16 sps:$4 sm:$0xff]  }
  0xf6   :  { %2091 = vmatprep.subr.bf16.mxu0 %v3674_v18  ;;  %2134 = vmatprep.subr.bf16.mxu1 %v3677_v19  ;;  %v3759_v18 = vld [vmem:[#allocation4 + $0x308] ss:$16 sps:$4 sm:$0xff]   ;;  %v3764_v19 = vld [vmem:[#allocation4 + $0xe4] ss:$16 sps:$4 sm:$0xff]  }
  0xf9   :  { %2092 = vmatpush1.bf16.msra.mxu0 %v3672_v20  ;;  %2135 = vmatpush1.bf16.msra.mxu1 %v3675_v0  ;;  %v3767_v20 = vld [vmem:[#allocation4 + $0xec] ss:$16 sps:$4 sm:$0xff]   ;;  %v273_v0 = vpop.f32.mrf.mxu0 }
  0xfa   :  { %2093 = vmatprep.subr.bf16.mxu0 %v3680_v21  ;;  %2136 = vmatprep.subr.bf16.mxu1 %v3683_v22  ;;  %v316_v21 = vpop.f32.mrf.mxu1 }
  0xfb   :  { %v275_v22 = vpop.f32.mrf.mxu0 }
  0xfd   :  { %2094 = vmatpush1.bf16.msra.mxu0 %v3678_v23  ;;  %2137 = vmatpush1.bf16.msra.mxu1 %v3681_v24  ;;  %v318_v23 = vpop.f32.mrf.mxu1  ;;  %v277_v24 = vpop.f32.mrf.mxu0 }
  0xfe   :  { %2095 = vmatprep.subr.bf16.mxu0 %v3686_v25  ;;  %2138 = vmatprep.subr.bf16.mxu1 %v3689_v26 }
  0xff   :  { %v320_v25 = vpop.f32.mrf.mxu1  ;;  %v279_v26 = vpop.f32.mrf.mxu0 }
 0x101   :  { %2096 = vmatpush1.bf16.msra.mxu0 %v3684_v27  ;;  %2139 = vmatpush1.bf16.msra.mxu1 %v3687_v28  ;;  %v322_v27 = vpop.f32.mrf.mxu1 }
 0x102   :  { %2097 = vmatprep.subr.bf16.mxu0 %v3692_v29  ;;  %2140 = vmatprep.subr.bf16.mxu1 %v3695_v30 }
 0x105   :  { %2098 = vmatpush1.bf16.msra.mxu0 %v3690_v31  ;;  %2141 = vmatpush1.bf16.msra.mxu1 %v3693_v32 }
 0x106   :  { %2099 = vmatprep.subr.bf16.mxu0 %v3698_v33  ;;  %2142 = vmatprep.subr.bf16.mxu1 %v3701_v34 }
 0x109   :  { %2100 = vmatpush1.bf16.msra.mxu0 %v3696_v35  ;;  %2143 = vmatpush1.bf16.msra.mxu1 %v3699_v36 }
 0x10a   :  { %2101 = vmatprep.subr.bf16.mxu0 %v3704_v37  ;;  %2144 = vmatprep.subr.bf16.mxu1 %v3707_v39 }
 0x10d   :  { %2102 = vmatpush1.bf16.msra.mxu0 %v3702_v40  ;;  %2145 = vmatpush1.bf16.msra.mxu1 %v3705_v41 }
 0x10e   :  { %2103 = vmatprep.subr.bf16.mxu0 %v3710_v42  ;;  %2146 = vmatprep.subr.bf16.mxu1 %v3713_v43 }
 0x111   :  { %2104 = vmatpush1.bf16.msra.mxu0 %v3708_v45  ;;  %2147 = vmatpush1.bf16.msra.mxu1 %v3711_v46 }
 0x112   :  { %2105 = vmatprep.subr.bf16.mxu0 %v3716_v47  ;;  %2148 = vmatprep.subr.bf16.mxu1 %v3719_v48 }
 0x115   :  { %2106 = vmatpush2.bf16.msra.mxu0 %v3714_v49  ;;  %2149 = vmatpush2.bf16.msra.mxu1 %v3717_v50 }
 0x116   :  { %2107 = vmatprep.subr.bf16.mxu0 %v3722_v52  ;;  %2150 = vmatprep.subr.bf16.mxu1 %v3725_v53  ;;  %v5213_v53 = vsub.s32 0, %v4219_v38 }
 0x119   :  { %2108 = vmatpush2.bf16.msra.mxu0 %v3720_v54  ;;  %2151 = vmatpush2.bf16.msra.mxu1 %v3723_v55  ;;  %v5211_v54 = vsub.s32 1, %v4219_v38  ;;  %v5210_v55 = vsub.s32 3, %v4219_v38 }
 0x11a   :  { %2109 = vmatprep.subr.bf16.mxu0 %v3728_v56  ;;  %2152 = vmatprep.subr.bf16.mxu1 %v3731_v57  ;;  %v186_v56 = vld [vmem:[%s5206_s4] sm:$0xf] }
 0x11d   :  { %2110 = vmatpush2.bf16.msra.mxu0 %v3726_v58  ;;  %2153 = vmatpush2.bf16.msra.mxu1 %v3729_v59  ;;  %v5212_v59 = vsub.s32 2, %v4219_v38 }
 0x11e   :  { %2111 = vmatprep.subr.bf16.mxu0 %v3734_v60  ;;  %2154 = vmatprep.subr.bf16.mxu1 %v3737_v61 }
 0x121   :  { %2112 = vmatpush2.bf16.msra.mxu0 %v3732_v62  ;;  %2155 = vmatpush2.bf16.msra.mxu1 %v3735_v63 }
 0x122   :  { %2113 = vmatprep.subr.bf16.mxu0 %v3740_v1  ;;  %2156 = vmatprep.subr.bf16.mxu1 %v3743_v2 }
 0x125   :  { %2114 = vmatpush2.bf16.msra.mxu0 %v3738_v3  ;;  %2157 = vmatpush2.bf16.msra.mxu1 %v3741_v4  ;;  %v4446_v3 = vrot.slane %v186_v56, %v5213_v53  ;;  %v4450_v4 = vrot.slane %v186_v56, %v5211_v54 }
 0x126   :  { %2115 = vmatprep.subr.bf16.mxu0 %v3746_v5  ;;  %2158 = vmatprep.subr.bf16.mxu1 %v3749_v6  ;;  %v4454_v5 = vrot.slane %v186_v56, %v5210_v55  ;;  %v4601_v55 = vld [vmem:[#allocation4 + $0x4c] ss:$16 sps:$4 sm:$0xff]  }
 0x127   :  { %5308 = vst [vmem:[#allocation15_spill] sm:$0xff] %v4601_v55 }
 0x129   :  { %2116 = vmatpush2.bf16.msra.mxu0 %v3744_v7  ;;  %2159 = vmatpush2.bf16.msra.mxu1 %v3747_v8 }
 0x12a   :  { %2117 = vmatprep.subr.bf16.mxu0 %v3752_v9  ;;  %2160 = vmatprep.subr.bf16.mxu1 %v3755_v12 }
 0x12d   :  { %2118 = vmatpush2.bf16.msra.mxu0 %v3750_v13  ;;  %2161 = vmatpush2.bf16.msra.mxu1 %v3753_v14 }
 0x12e   :  { %2119 = vmatprep.subr.bf16.mxu0 %v3758_v15  ;;  %2162 = vmatprep.subr.bf16.mxu1 %v3761_v16  ;;  %v4458_v16 = vrot.slane %v186_v56, %v5212_v59 }
 0x131   :  { %2120 = vmatpush2.bf16.msra.mxu0 %v3756_v17  ;;  %2163 = vmatpush2.bf16.msra.mxu1 %v3759_v18 }
 0x132   :  { %2495 = vmatprep.subr.bf16.mxu0 %v3764_v19  ;;  %2538 = vmatprep.subr.bf16.mxu1 %v3767_v20 }
 0x164   :  { %v410_v28 = vpop.f32.mrf.mxu0  ;;  %v453_v29 = vpop.f32.mrf.mxu1 }
 0x165   :  { %v411_v60 = vadd.f32 %v410_v28, %v273_v0  ;;  %v454_v2 = vadd.f32 %v453_v29, %v316_v21 }
 0x166   :  { %v412_v30 = vpop.f32.mrf.mxu0  ;;  %v455_v31 = vpop.f32.mrf.mxu1 }
 0x167   :  { %v413_v61 = vadd.f32 %v412_v30, %v275_v22  ;;  %v456_v62 = vadd.f32 %v455_v31, %v318_v23 }
 0x168   :  { %v414_v32 = vpop.f32.mrf.mxu0  ;;  %v457_v33 = vpop.f32.mrf.mxu1 }
 0x169   :  { %v415_v6 = vadd.f32 %v414_v32, %v277_v24  ;;  %v458_v14 = vadd.f32 %v457_v33, %v320_v25 }
 0x16a   :  { %v416_v34 = vpop.f32.mrf.mxu0  ;;  %v459_v35 = vpop.f32.mrf.mxu1 }
 0x16b   :  { %v417_v20 = vadd.f32 %v416_v34, %v279_v26  ;;  %v460_v0 = vadd.f32 %v459_v35, %v322_v27 }
 0x16c   :  { %v547_v36 = vpop.f32.mrf.mxu0  ;;  %v590_v37 = vpop.f32.mrf.mxu1 }
 0x16d   :  { %v599_v7 = vadd.f32 %v547_v36, %v411_v60  ;;  %v601_v15 = vadd.f32 %v590_v37, %v454_v2 }
 0x16e   :  { %v549_v39 = vpop.f32.mrf.mxu0  ;;  %v592_v40 = vpop.f32.mrf.mxu1 }
 0x16f   :  { %v600_v8 = vadd.f32 %v549_v39, %v413_v61  ;;  %v602_v9 = vadd.f32 %v592_v40, %v456_v62  ;;  %v4461_v21 = vadd.f32 %v4446_v3, %v599_v7  ;;  %v4470_v31 = vadd.f32 %v4458_v16, %v601_v15 }
 0x170   :  { %v551_v41 = vpop.f32.mrf.mxu0  ;;  %v594_v42 = vpop.f32.mrf.mxu1 }
 0x171   :  { %v603_v17 = vadd.f32 %v551_v41, %v415_v6  ;;  %v4464_v22 = vadd.f32 %v4450_v4, %v600_v8  ;;  %v4467_v23 = vadd.f32 %v4454_v5, %v602_v9  ;;  %v605_v24 = vadd.f32 %v594_v42, %v458_v14 }
 0x172   :  { %v553_v43 = vpop.f32.mrf.mxu0  ;;  %v596_v45 = vpop.f32.mrf.mxu1  ;;  %v636_v40 = vmax.f32 %v4461_v21, 0.0 }
 0x173   :  { %v632_v26 = vadd.f32 %v4446_v3, %v603_v17  ;;  %v604_v27 = vadd.f32 %v553_v43, %v417_v20  ;;  %v606_v32 = vadd.f32 %v596_v45, %v460_v0  ;;  %v637_v41 = vmax.f32 %v4464_v22, 0.0 }
 0x174   :  { %v678_v46 = vpop.f32.mrf.mxu0  ;;  %v721_v47 = vpop.f32.mrf.mxu1  ;;  %v639_v42 = vmax.f32 %v4467_v23, 0.0 }
 0x175   :  { %v635_v6 = vadd.f32 %v4454_v5, %v606_v32 }
 0x176   :  { %v680_v48 = vpop.f32.mrf.mxu0  ;;  %v723_v49 = vpop.f32.mrf.mxu1 }
 0x178   :  { %v682_v50 = vpop.f32.mrf.mxu0  ;;  %v725_v52 = vpop.f32.mrf.mxu1 }
 0x17a   :  { %v684_v57 = vpop.f32.mrf.mxu0  ;;  %v4441_v58 = vpop.f32.mrf.mxu1 }
 0x17c   :  { %v764_v63 = vpop.f32.mrf.mxu0  ;;  %v807_v1 = vpop.f32.mrf.mxu1 }
 0x17d   :  { %v765_v29 = vadd.f32 %v764_v63, %v678_v46  ;;  %v808_v30 = vadd.f32 %v807_v1, %v721_v47  ;;  %v634_v46 = vadd.f32 %v4458_v16, %v605_v24 }
 0x17e   :  { %v766_v12 = vpop.f32.mrf.mxu0  ;;  %v809_v13 = vpop.f32.mrf.mxu1 }
 0x17f   :  { %v767_v35 = vadd.f32 %v766_v12, %v680_v48  ;;  %v810_v36 = vadd.f32 %v809_v13, %v723_v49  ;;  %v640_v48 = vmax.f32 %v632_v26, 0.0  ;;  %v633_v49 = vadd.f32 %v4450_v4, %v604_v27 }
 0x180   :  { %v768_v18 = vpop.f32.mrf.mxu0  ;;  %v811_v19 = vpop.f32.mrf.mxu1 }
 0x181   :  { %v769_v62 = vadd.f32 %v768_v18, %v682_v50  ;;  %v812_v63 = vadd.f32 %v811_v19, %v725_v52  ;;  %v642_v18 = vmax.f32 %v634_v46, 0.0 }
 0x182   :  { %v770_v25 = vpop.f32.mrf.mxu0  ;;  %v813_v28 = vpop.f32.mrf.mxu1 }
 0x183   :  { %v771_v7 = vadd.f32 %v770_v25, %v684_v57  ;;  %v814_v12 = vadd.f32 %v813_v28, %v4441_v58  ;;  %v638_v58 = vmax.f32 %v4470_v31, 0.0  ;;  %v641_v25 = vmax.f32 %v633_v49, 0.0 }
 0x184   :  { %v853_v33 = vpop.f32.mrf.mxu0  ;;  %v896_v34 = vpop.f32.mrf.mxu1  ;;  %v643_v28 = vmax.f32 %v635_v6, 0.0 }
 0x185   :  { %v905_v37 = vadd.f32 %v853_v33, %v765_v29  ;;  %v907_v39 = vadd.f32 %v896_v34, %v808_v30 }
 0x186   :  { %v855_v47 = vpop.f32.mrf.mxu0  ;;  %v898_v56 = vpop.f32.mrf.mxu1 }
 0x187   :  { %v913_v60 = vadd.f32 %v905_v37, %v4446_v3  ;;  %v915_v43 = vadd.f32 %v907_v39, %v4458_v16  ;;  %v906_v45 = vadd.f32 %v855_v47, %v767_v35  ;;  %v908_v61 = vadd.f32 %v898_v56, %v810_v36 }
 0x188   :  { %v857_v1 = vpop.f32.mrf.mxu0  ;;  %v900_v2 = vpop.f32.mrf.mxu1  ;;  %v1499_v37 = vadd.f32 %v639_v42, %v637_v41  ;;  %v1500_v39 = vadd.f32 %v642_v18, %v640_v48 }
 0x189   :  { %v914_v8 = vadd.f32 %v906_v45, %v4450_v4  ;;  %v916_v9 = vadd.f32 %v908_v61, %v4454_v5  ;;  %v921_v13 = vmax.f32 %v913_v60, 0.0  ;;  %v909_v14 = vadd.f32 %v857_v1, %v769_v62 }
 0x18a   :  { %v911_v15 = vadd.f32 %v900_v2, %v812_v63  ;;  %v859_v17 = vpop.f32.mrf.mxu0  ;;  %v902_v20 = vpop.f32.mrf.mxu1  ;;  %v923_v0 = vmax.f32 %v915_v43, 0.0  ;;  %v1498_v60 = vadd.f32 %v638_v58, %v636_v40  ;;  %v1501_v43 = vadd.f32 %v643_v28, %v641_v25  ;;  %v4545_v58 = vld [vmem:[#allocation4 + $0xa4] ss:$16 sps:$4 sm:$0xff]   ;;  %v4547_v25 = vld [vmem:[#allocation4 + $0xac] ss:$16 sps:$4 sm:$0xff]  }
 0x18b   :  { %v922_v21 = vmax.f32 %v914_v8, 0.0  ;;  %v924_v50 = vmax.f32 %v916_v9, 0.0  ;;  %v910_v52 = vadd.f32 %v859_v17, %v771_v7  ;;  %v917_v19 = vadd.f32 %v909_v14, %v4446_v3  ;;  %v4521_v17 = vld [vmem:[#allocation4 + $0xe8] ss:$16 sps:$4 sm:$0xff]  }
 0x18c   :  { %v919_v57 = vadd.f32 %v911_v15, %v4458_v16  ;;  %v912_v22 = vadd.f32 %v902_v20, %v814_v12  ;;  %v4486_v23 = vpop.f32.mrf.mxu0  ;;  %v4488_v24 = vpop.f32.mrf.mxu1  ;;  %v1502_v35 = vadd.f32 %v923_v0, %v921_v13  ;;  %v4519_v15 = vld [vmem:[#allocation4 + $0xe0] ss:$16 sps:$4 sm:$0xff]   ;;  %v4525_v0 = vld [vmem:[#allocation4 + $0xc4] ss:$16 sps:$4 sm:$0xff]  }
 0x18d   :  { %v918_v29 = vadd.f32 %v910_v52, %v4450_v4  ;;  %v1503_v30 = vadd.f32 %v924_v50, %v922_v21  ;;  %v925_v26 = vmax.f32 %v917_v19, 0.0  ;;  %v4527_v21 = vld [vmem:[#allocation4 + $0xcc] ss:$16 sps:$4 sm:$0xff]  }
 0x18e   :  { %v927_v27 = vmax.f32 %v919_v57, 0.0  ;;  %v920_v32 = vadd.f32 %v912_v22, %v4454_v5  ;;  %v4493_v33 = vpop.f32.mrf.mxu0  ;;  %v4495_v34 = vpop.f32.mrf.mxu1  ;;  %v1506_v1 = vadd.f32 %v1502_v35, %v1498_v60  ;;  %v4539_v57 = vld [vmem:[#allocation4 + $0xc0] ss:$16 sps:$4 sm:$0xff]   ;;  %v4541_v22 = vld [vmem:[#allocation4 + $0xc8] ss:$16 sps:$4 sm:$0xff]  }
 0x18f   :  { %v926_v36 = vmax.f32 %v918_v29, 0.0  ;;  %v1507_v45 = vadd.f32 %v1503_v30, %v1499_v37  ;;  %v4561_v35 = vld [vmem:[#allocation4 + $0x84] ss:$16 sps:$4 sm:$0xff]   ;;  %v4575_v60 = vld [vmem:[#allocation4 + $0x80] ss:$16 sps:$4 sm:$0xff]  }
 0x190   :  { %v1504_v46 = vadd.f32 %v927_v27, %v925_v26  ;;  %v928_v47 = vmax.f32 %v920_v32, 0.0  ;;  %v4497_v31 = vpop.f32.mrf.mxu0  ;;  %v4499_v56 = vpop.f32.mrf.mxu1  ;;  %v1510_v9 = vmul.f32 0.25, %v1506_v1  ;;  %v4555_v27 = vld [vmem:[#allocation4 + $0xa0] ss:$16 sps:$4 sm:$0xff]   ;;  %v4557_v32 = vld [vmem:[#allocation4 + $0xa8] ss:$16 sps:$4 sm:$0xff]  }
 0x191   :  { %v1511_v48 = vmul.f32 0.25, %v1507_v45  ;;  %v4581_v45 = vld [vmem:[#allocation4 + $0x64] ss:$16 sps:$4 sm:$0xff]  }
 0x192   :  { %v1508_v61 = vadd.f32 %v1504_v46, %v1500_v39  ;;  %v1505_v49 = vadd.f32 %v928_v47, %v926_v36  ;;  %v4501_v62 = vpop.f32.mrf.mxu0  ;;  %v4503_v63 = vpop.f32.mrf.mxu1  ;;  %v4563_v36 = vld [vmem:[#allocation4 + $0x8c] ss:$16 sps:$4 sm:$0xff]   ;;  %5306 = vst [vmem:[#allocation13_spill] sm:$0xff] %v4581_v45 }
 0x194   :  { %v1509_v2 = vadd.f32 %v1505_v49, %v1501_v43  ;;  %v4505_v6 = vpop.f32.mrf.mxu0  ;;  %v4507_v41 = vpop.f32.mrf.mxu1  ;;  %v1512_v42 = vmul.f32 0.25, %v1508_v61  ;;  %v4577_v43 = vld [vmem:[#allocation4 + $0x88] ss:$16 sps:$4 sm:$0xff]   ;;  %v4583_v61 = vld [vmem:[#allocation4 + $0x6c] ss:$16 sps:$4 sm:$0xff]  }
 0x195   :  { %5305 = vst [vmem:[#allocation12_spill] sm:$0xff] %v4577_v43  ;;  %5307 = vst [vmem:[#allocation14_spill] sm:$0xff] %v4583_v61  ;;  %v1050_v54 = vadd.f32 %v4505_v6, %v4486_v23  ;;  %v1093_v59 = vadd.f32 %v4507_v41, %v4488_v24  ;;  %v4617_v23 = vld [vmem:[#allocation4 + $0x48] ss:$16 sps:$4 sm:$0xff]   ;;  %v4621_v6 = vld [vmem:[#allocation4 + $0x24] ss:$16 sps:$4 sm:$0xff]  }
 0x196   :  { %v1513_v7 = vmul.f32 0.25, %v1509_v2  ;;  %v4509_v8 = vpop.f32.mrf.mxu0  ;;  %v4511_v40 = vpop.f32.mrf.mxu1  ;;  %v4523_v20 = vpack.c.bf16 %v1512_v42, %v1510_v9  ;;  %v4599_v9 = vld [vmem:[#allocation4 + $0x44] ss:$16 sps:$4 sm:$0xff]   ;;  %5310 = vst [vmem:[#allocation17_spill] sm:$0xff] %v4617_v23  ;;  %5311 = vst [vmem:[#allocation18_spill] sm:$0xff] %v4621_v6 }
 0x197   :  { %v1052_v11 = vadd.f32 %v4509_v8, %v4493_v33  ;;  %v4623_v33 = vld [vmem:[#allocation4 + $0x2c] ss:$16 sps:$4 sm:$0xff]  }
 0x198   :  { %v4513_v12 = vpack.c.bf16 %v1513_v7, %v1511_v48  ;;  %v4515_v13 = vpop.f32.mrf.mxu0  ;;  %v4517_v14 = vpop.f32.mrf.mxu1  ;;  %5304 = vst [vmem:[#allocation11_spill] sm:$0xff] %v4523_v20  ;;  %v4593_v48 = vld [vmem:[#allocation4 + $0x60] ss:$16 sps:$4 sm:$0xff]   ;;  %v4595_v7 = vld [vmem:[#allocation4 + $0x68] ss:$16 sps:$4 sm:$0xff]   ;;  %5312 = vst [vmem:[#allocation19_spill] sm:$0xff] %v4623_v33 }
 0x199   :  { %v1054_v8 = vadd.f32 %v4515_v13, %v4497_v31  ;;  %v4645_v13 = vld [vmem:[#allocation4 + $0x28] ss:$16 sps:$4 sm:$0xff]  }
 0x19a   :  { %2121 = vmatprep.mubr.bf16.mxu0 %v4513_v12  ;;  %2164 = vmatprep.mubr.bf16.mxu1 %v4513_v12  ;;  %v4531_v50 = vpop.f32.mrf.mxu0  ;;  %v4533_v52 = vpop.f32.mrf.mxu1 }
 0x19b   :  { %2122 = vmatmul.mubr.bf16.vlgmr.msra.gmra.mxu0 %v4523_v20  ;;  %2165 = vmatmul.mubr.bf16.vlgmr.msra.gmra.mxu1 %v4523_v20 }
 0x19c   :  { %2496 = vmatpush1.bf16.msra.mxu0 %v4519_v15  ;;  %2539 = vmatpush1.bf16.msra.mxu1 %v4521_v17  ;;  %v1137_v18 = vpop.f32.mrf.mxu0  ;;  %v1180_v19 = vpop.f32.mrf.mxu1 }
 0x19d   :  { %2497 = vmatprep.subr.bf16.mxu0 %v4525_v0  ;;  %2540 = vmatprep.subr.bf16.mxu1 %v4527_v21  ;;  %v1189_v20 = vadd.f32 %v1137_v18, %v1050_v54  ;;  %v1191_v10 = vadd.f32 %v1180_v19, %v1093_v59  ;;  %v1095_v54 = vadd.f32 %v4511_v40, %v4495_v34 }
 0x19e   :  { %v1139_v28 = vpop.f32.mrf.mxu0  ;;  %v1182_v29 = vpop.f32.mrf.mxu1  ;;  %v1097_v18 = vadd.f32 %v4517_v14, %v4499_v56  ;;  %v1099_v19 = vadd.f32 %v4533_v52, %v4503_v63  ;;  %v4643_v56 = vld [vmem:[#allocation4 + $0x20] ss:$16 sps:$4 sm:$0xff]   ;;  %v4654_v63 = vld [vmem:[#allocation4 + $0xc] ss:$16 sps:$4 sm:$0xff]  }
 0x19f   :  { %v1190_v24 = vadd.f32 %v1139_v28, %v1052_v11  ;;  %v1056_v11 = vadd.f32 %v4531_v50, %v4501_v62  ;;  %v4636_v28 = vadd.f32 %v1189_v20, %v4446_v3  ;;  %v1192_v34 = vadd.f32 %v1182_v29, %v1095_v54 }
 0x1a0   :  { %2498 = vmatpush1.bf16.msra.mxu0 %v4539_v57  ;;  %2541 = vmatpush1.bf16.msra.mxu1 %v4541_v22  ;;  %v4551_v30 = vpop.f32.mrf.mxu0  ;;  %v4553_v26 = vpop.f32.mrf.mxu1 }
 0x1a1   :  { %2499 = vmatprep.subr.bf16.mxu0 %v4545_v58  ;;  %2542 = vmatprep.subr.bf16.mxu1 %v4547_v25  ;;  %v4648_v62 = vadd.f32 %v1190_v24, %v4450_v4  ;;  %v1193_v14 = vadd.f32 %v4551_v30, %v1054_v8  ;;  %v1195_v20 = vadd.f32 %v4553_v26, %v1097_v18  ;;  %v4671_v8 = vld [vmem:[#allocation4 + $0x8] ss:$16 sps:$4 sm:$0xff]  }
 0x1a2   :  { %v4565_v37 = vpop.f32.mrf.mxu0  ;;  %v4567_v39 = vpop.f32.mrf.mxu1  ;;  %5314 = vst [vmem:[#allocation21_spill] sm:$0xff] %v4671_v8 }
 0x1a3   :  { %v1194_v50 = vadd.f32 %v4565_v37, %v1056_v11  ;;  %v1196_v52 = vadd.f32 %v4567_v39, %v1099_v19  ;;  %v4669_v39 = vld [vmem:[#allocation4] ss:$16 sps:$4 sm:$0xff]   ;;  %v1201_v18 = vadd.f32 %v1193_v14, %v4446_v3  ;;  %v1203_v11 = vadd.f32 %v1195_v20, %v4458_v16 }
 0x1a4   :  { %2500 = vmatpush1.bf16.msra.mxu0 %v4555_v27  ;;  %2543 = vmatpush1.bf16.msra.mxu1 %v4557_v32  ;;  %v4571_v46 = vpop.f32.mrf.mxu0  ;;  %v4573_v47 = vpop.f32.mrf.mxu1  ;;  %5313 = vst [vmem:[#allocation20_spill] sm:$0xff] %v4669_v39 }
 0x1a5   :  { %2501 = vmatprep.subr.bf16.mxu0 %v4561_v35  ;;  %2544 = vmatprep.subr.bf16.mxu1 %v4563_v36  ;;  %v4684_v19 = vadd.f32 %v1194_v50, %v4450_v4 }
 0x1a6   :  { %v1249_v49 = vpop.f32.mrf.mxu0  ;;  %v4585_v1 = vpop.f32.mrf.mxu1 }
 0x1a8   :  { %2502 = vmatpush1.bf16.msra.mxu0 %v4575_v60  ;;  %2545 = vmatpush1.bf16.msra.mxu1 %v4577_v43  ;;  %v4589_v2 = vpop.f32.mrf.mxu0  ;;  %v4591_v42 = vpop.f32.mrf.mxu1  ;;  %v4615_v43 = vld [vmem:[#allocation4 + $0x40] ss:$16 sps:$4 sm:$0xff]  }
 0x1a9   :  { %2503 = vmatprep.subr.bf16.mxu0 %v4581_v45  ;;  %2546 = vmatprep.subr.bf16.mxu1 %v4583_v61  ;;  %5309 = vst [vmem:[#allocation16_spill] sm:$0xff] %v4615_v43 }
 0x1aa   :  { %v4607_v53 = vpop.f32.mrf.mxu0  ;;  %v4609_v38 = vpop.f32.mrf.mxu1 }
 0x1ac   :  { %2504 = vmatpush1.bf16.msra.mxu0 %v4593_v48  ;;  %2547 = vmatpush1.bf16.msra.mxu1 %v4595_v7  ;;  %v1333_v61 = vpop.f32.mrf.mxu0  ;;  %v1376_v45 = vpop.f32.mrf.mxu1 }
 0x1ad   :  { %2505 = vmatprep.subr.bf16.mxu0 %v4599_v9  ;;  %2548 = vmatprep.subr.bf16.mxu1 %v4601_v55  ;;  %v4639_v55 = vadd.f32 %v1191_v10, %v4458_v16  ;;  %v4652_v10 = vld [vmem:[#allocation4 + $0x4] ss:$16 sps:$4 sm:$0xff]   ;;  %v1334_v24 = vadd.f32 %v1333_v61, %v4571_v46 }
 0x1ae   :  { %v1335_v59 = vpop.f32.mrf.mxu0  ;;  %v1378_v41 = vpop.f32.mrf.mxu1 }
 0x1af   :  { %v1336_v30 = vadd.f32 %v1335_v59, %v1249_v49  ;;  %v4677_v49 = vld [vmem:[#allocation4 + $0x1e4] ss:$16 sps:$4 sm:$0xff]   ;;  %v4679_v59 = vld [vmem:[#allocation4 + $0x1ec] ss:$16 sps:$4 sm:$0xff]  }
 0x1b0   :  { %2506 = vmatpush1.bf16.msra.mxu0 %v4615_v43  ;;  %2549 = vmatpush1.bf16.msra.mxu1 %v4617_v23  ;;  %v1337_v31 = vpop.f32.mrf.mxu0  ;;  %v1380_v40 = vpop.f32.mrf.mxu1  ;;  %v4665_v43 = vadd.f32 %v1192_v34, %v4454_v5  ;;  %5315 = vst [vmem:[#allocation22_spill] sm:$0xff] %v4677_v49  ;;  %5316 = vst [vmem:[#allocation23_spill] sm:$0xff] %v4679_v59  ;;  %v4687_v34 = vadd.f32 %v1196_v52, %v4454_v5 }
 0x1b1   :  { %2507 = vmatprep.subr.bf16.mxu0 %v4621_v6  ;;  %2550 = vmatprep.subr.bf16.mxu1 %v4623_v33  ;;  %v1377_v6 = vadd.f32 %v1376_v45, %v4573_v47  ;;  %v1379_v47 = vadd.f32 %v1378_v41, %v4585_v1  ;;  %v1338_v14 = vadd.f32 %v1337_v31, %v4589_v2  ;;  %v4697_v33 = vld [vmem:[#allocation4 + $0x1e0] ss:$16 sps:$4 sm:$0xff]   ;;  %v1209_v31 = vmax.f32 %v1201_v18, 0.0 }
 0x1b2   :  { %v1339_v29 = vpop.f32.mrf.mxu0  ;;  %v1382_v54 = vpop.f32.mrf.mxu1  ;;  %v1208_v46 = vmax.f32 %v4665_v43, 0.0  ;;  %v1381_v20 = vadd.f32 %v1380_v40, %v4591_v42  ;;  %v4707_v42 = vld [vmem:[#allocation4 + $0x1cc] ss:$16 sps:$4 sm:$0xff]   ;;  %v4714_v18 = vld [vmem:[#allocation4 + $0x1c0] ss:$16 sps:$4 sm:$0xff]  }
 0x1b3   :  { %v1340_v50 = vadd.f32 %v1339_v29, %v4607_v53  ;;  %v4705_v53 = vld [vmem:[#allocation4 + $0x1c4] ss:$16 sps:$4 sm:$0xff]   ;;  %v1383_v40 = vadd.f32 %v1382_v54, %v4609_v38  ;;  %v4716_v38 = vld [vmem:[#allocation4 + $0x1c8] ss:$16 sps:$4 sm:$0xff]   ;;  %v5318_v54 = vmax.f32 %v4639_v55, 0.0 }
 0x1b4   :  { %2508 = vmatpush1.bf16.msra.mxu0 %v4643_v56  ;;  %2551 = vmatpush1.bf16.msra.mxu1 %v4645_v13  ;;  %v1422_v26 = vpop.f32.mrf.mxu0  ;;  %v1465_v37 = vpop.f32.mrf.mxu1 }
 0x1b5   :  { %v1474_v45 = vadd.f32 %v1422_v26, %v1334_v24  ;;  %v1476_v61 = vadd.f32 %v1465_v37, %v1377_v6  ;;  %2509 = vmatprep.subr.bf16.mxu0 %v4652_v10  ;;  %2552 = vmatprep.subr.bf16.mxu1 %v4654_v63 }
 0x1b6   :  { %v1424_v1 = vpop.f32.mrf.mxu0  ;;  %v1467_v6 = vpop.f32.mrf.mxu1 }
 0x1b7   :  { %v1482_v41 = vadd.f32 %v1474_v45, %v4446_v3  ;;  %v1484_v24 = vadd.f32 %v1476_v61, %v4458_v16  ;;  %v1475_v26 = vadd.f32 %v1424_v1, %v1336_v30  ;;  %v1477_v37 = vadd.f32 %v1467_v6, %v1379_v47  ;;  %v4699_v45 = vld [vmem:[#allocation4 + $0x1e8] ss:$16 sps:$4 sm:$0xff]  }
 0x1b8   :  { %2510 = vmatpush1.bf16.msra.mxu0 %v4669_v39  ;;  %2553 = vmatpush1.bf16.msra.mxu1 %v4671_v8  ;;  %v1426_v52 = vpop.f32.mrf.mxu0  ;;  %v1469_v23 = vpop.f32.mrf.mxu1 }
 0x1b9   :  { %v1490_v30 = vmax.f32 %v1482_v41, 0.0  ;;  %v1492_v47 = vmax.f32 %v1484_v24, 0.0  ;;  %v1483_v43 = vadd.f32 %v1475_v26, %v4450_v4  ;;  %v1485_v2 = vadd.f32 %v1477_v37, %v4454_v5  ;;  %2511 = vmatprep.subr.bf16.mxu0 %v4677_v49  ;;  %2554 = vmatprep.subr.bf16.mxu1 %v4679_v59 }
 0x1ba   :  { %v1478_v29 = vadd.f32 %v1426_v52, %v1338_v14  ;;  %v1480_v61 = vadd.f32 %v1469_v23, %v1381_v20  ;;  %v1428_v1 = vpop.f32.mrf.mxu0  ;;  %v1471_v6 = vpop.f32.mrf.mxu1  ;;  %v1211_v37 = vmax.f32 %v1203_v11, 0.0  ;;  %v5317_v23 = vmax.f32 %v4636_v28, 0.0  ;;  %v4727_v20 = vld [vmem:[#allocation4 + $0x1a4] ss:$16 sps:$4 sm:$0xff]  }
 0x1bb   :  { %v1518_v41 = vadd.f32 %v1492_v47, %v1490_v30  ;;  %v1491_v24 = vmax.f32 %v1483_v43, 0.0  ;;  %v1493_v26 = vmax.f32 %v1485_v2, 0.0  ;;  %v1479_v8 = vadd.f32 %v1428_v1, %v1340_v50  ;;  %v4729_v50 = vld [vmem:[#allocation4 + $0x1ac] ss:$16 sps:$4 sm:$0xff]  }
 0x1bc   :  { %v1486_v49 = vadd.f32 %v1478_v29, %v4446_v3  ;;  %v1488_v59 = vadd.f32 %v1480_v61, %v4458_v16  ;;  %v1481_v39 = vadd.f32 %v1471_v6, %v1383_v40  ;;  %2512 = vmatpush2.bf16.msra.mxu0 %v4697_v33  ;;  %2555 = vmatpush2.bf16.msra.mxu1 %v4699_v45  ;;  %v1210_v11 = vmax.f32 %v4684_v19, 0.0  ;;  %v4736_v40 = vld [vmem:[#allocation4 + $0x1a0] ss:$16 sps:$4 sm:$0xff]   ;;  %v4738_v29 = vld [vmem:[#allocation4 + $0x1a8] ss:$16 sps:$4 sm:$0xff]  }
 0x1bd   :  { %v1514_v14 = vadd.f32 %v5318_v54, %v5317_v23  ;;  %v1212_v3 = vmax.f32 %v4687_v34, 0.0  ;;  %v1487_v16 = vadd.f32 %v1479_v8, %v4450_v4  ;;  %2513 = vmatprep.subr.bf16.mxu0 %v4705_v53  ;;  %2556 = vmatprep.subr.bf16.mxu1 %v4707_v42  ;;  %v1519_v52 = vadd.f32 %v1493_v26, %v1491_v24  ;;  %v4748_v6 = vld [vmem:[#allocation4 + $0x180] ss:$16 sps:$4 sm:$0xff]   ;;  %v4754_v24 = vld [vmem:[#allocation4 + $0x164] ss:$16 sps:$4 sm:$0xff]  }
 0x1be   :  { %v1494_v30 = vmax.f32 %v1486_v49, 0.0  ;;  %v1496_v28 = vmax.f32 %v1488_v59, 0.0  ;;  %v1489_v55 = vadd.f32 %v1481_v39, %v4454_v5  ;;  %v5319_v47 = vmax.f32 %v4648_v62, 0.0  ;;  %v4742_v5 = vld [vmem:[#allocation4 + $0x184] ss:$16 sps:$4 sm:$0xff]  }
 0x1bf   :  { %v1495_v43 = vmax.f32 %v1487_v16, 0.0  ;;  %v1516_v34 = vadd.f32 %v1211_v37, %v1209_v31  ;;  %v1522_v2 = vadd.f32 %v1518_v41, %v1514_v14  ;;  %v4744_v62 = vld [vmem:[#allocation4 + $0x18c] ss:$16 sps:$4 sm:$0xff]   ;;  %v1517_v39 = vadd.f32 %v1212_v3, %v1210_v11  ;;  %v4750_v41 = vld [vmem:[#allocation4 + $0x188] ss:$16 sps:$4 sm:$0xff]  }
 0x1c0   :  { %v1515_v19 = vadd.f32 %v1208_v46, %v5319_v47  ;;  %v1520_v4 = vadd.f32 %v1496_v28, %v1494_v30  ;;  %v1497_v8 = vmax.f32 %v1489_v55, 0.0  ;;  %2514 = vmatpush2.bf16.msra.mxu0 %v4714_v18  ;;  %2557 = vmatpush2.bf16.msra.mxu1 %v4716_v38  ;;  %v4756_v26 = vld [vmem:[#allocation4 + $0x16c] ss:$16 sps:$4 sm:$0xff]   ;;  %v4764_v11 = vld [vmem:[#allocation4 + $0x160] ss:$16 sps:$4 sm:$0xff]  }
 0x1c1   :  { %2515 = vmatprep.subr.bf16.mxu0 %v4727_v20  ;;  %2558 = vmatprep.subr.bf16.mxu1 %v4729_v50  ;;  %v1526_v31 = vmul.f32 0.25, %v1522_v2  ;;  %v4766_v3 = vld [vmem:[#allocation4 + $0x168] ss:$16 sps:$4 sm:$0xff]   ;;  %v4770_v16 = vld [vmem:[#allocation4 + $0x144] ss:$16 sps:$4 sm:$0xff]  }
 0x1c2   :  { %v1523_v46 = vadd.f32 %v1519_v52, %v1515_v19  ;;  %v1524_v49 = vadd.f32 %v1520_v4, %v1516_v34  ;;  %v1521_v59 = vadd.f32 %v1497_v8, %v1495_v43  ;;  %v4772_v52 = vld [vmem:[#allocation4 + $0x14c] ss:$16 sps:$4 sm:$0xff]   ;;  %v4778_v55 = vld [vmem:[#allocation4 + $0x140] ss:$16 sps:$4 sm:$0xff]   ;;  %v4780_v47 = vld [vmem:[#allocation4 + $0x148] ss:$16 sps:$4 sm:$0xff]  }
 0x1c3   :  { %v4785_v34 = vld [vmem:[#allocation4 + $0x124] ss:$16 sps:$4 sm:$0xff]   ;;  %v4787_v2 = vld [vmem:[#allocation4 + $0x12c] ss:$16 sps:$4 sm:$0xff]  }
 0x1c4   :  { %v1528_v61 = vmul.f32 0.25, %v1524_v49  ;;  %v1525_v1 = vadd.f32 %v1521_v59, %v1517_v39  ;;  %2516 = vmatpush2.bf16.msra.mxu0 %v4736_v40  ;;  %2559 = vmatpush2.bf16.msra.mxu1 %v4738_v29  ;;  %v1527_v37 = vmul.f32 0.25, %v1523_v46  ;;  %v4791_v39 = vld [vmem:[#allocation4 + $0x120] ss:$16 sps:$4 sm:$0xff]   ;;  %v4793_v46 = vld [vmem:[#allocation4 + $0x128] ss:$16 sps:$4 sm:$0xff]  }
 0x1c5   :  { %2517 = vmatprep.subr.bf16.mxu0 %v4742_v5  ;;  %2560 = vmatprep.subr.bf16.mxu1 %v4744_v62 }
 0x1c6   :  { %v4758_v23 = vpack.c.bf16 %v1528_v61, %v1526_v31  ;;  %v1529_v54 = vmul.f32 0.25, %v1525_v1  ;;  %v4801_v61 = vld [vmem:[#allocation4 + $0x104] ss:$16 sps:$4 sm:$0xff]   ;;  %v4803_v1 = vld [vmem:[#allocation4 + $0x10c] ss:$16 sps:$4 sm:$0xff]  }
 0x1c8   :  { %v4760_v14 = vpack.c.bf16 %v1529_v54, %v1527_v37  ;;  %2518 = vmatpush2.bf16.msra.mxu0 %v4748_v6  ;;  %2561 = vmatpush2.bf16.msra.mxu1 %v4750_v41  ;;  %v1535_v28 = vshrl.u32 %v4758_v23, 16  ;;  %v1538_v59 = vshll.u32 %v4758_v23, 16  ;;  %v4807_v54 = vld [vmem:[#allocation4 + $0x100] ss:$16 sps:$4 sm:$0xff]  }
 0x1c9   :  { %2519 = vmatprep.subr.bf16.mxu0 %v4754_v24  ;;  %2562 = vmatprep.subr.bf16.mxu1 %v4756_v26 }
 0x1ca   :  { %v1542_v30 = vshrl.u32 %v4760_v14, 16  ;;  %v1545_v43 = vshll.u32 %v4760_v14, 16  ;;  %v1537_v8 = vrot.slane %v1535_v28, 7  ;;  %v4813_v28 = vld [vmem:[#allocation4 + $0x4e4] ss:$16 sps:$4 sm:$0xff]  }
 0x1cc   :  { %2520 = vmatpush2.bf16.msra.mxu0 %v4764_v11  ;;  %2563 = vmatpush2.bf16.msra.mxu1 %v4766_v3  ;;  %v1544_v19 = vrot.slane %v1542_v30, 7  ;;  %v1540_v37 = vor.u32 %v1538_v59, %v1537_v8  ;;  %v4809_v30 = vld [vmem:[#allocation4 + $0x108] ss:$16 sps:$4 sm:$0xff]   ;;  %v4828_v59 = vld [vmem:[#allocation4 + $0x4c4] ss:$16 sps:$4 sm:$0xff]  }
 0x1cd   :  { %2521 = vmatprep.subr.bf16.mxu0 %v4770_v16  ;;  %2564 = vmatprep.subr.bf16.mxu1 %v4772_v52  ;;  %5323 = vst [vmem:[#allocation27_spill] sm:$0xff] %v4828_v59 }
 0x1ce   :  { %v1547_v4 = vor.u32 %v1545_v43, %v1544_v19  ;;  %v4815_v19 = vld [vmem:[#allocation4 + $0x4ec] ss:$16 sps:$4 sm:$0xff]   ;;  %v1550_v43 = vsel %vm4225_vm4, 0, %v1540_v37  ;;  %v4840_v37 = vld [vmem:[#allocation4 + $0x4a4] ss:$16 sps:$4 sm:$0xff]  }
 0x1cf   :  { %5320 = vst [vmem:[#allocation24_spill] sm:$0xff] %v4815_v19  ;;  %v1552_v8 = vmul.bf16 %v4233_v51, %v1550_v43  ;;  %5327 = vst [vmem:[#allocation31_spill] sm:$0xff] %v4840_v37  ;;  %v4844_v43 = vld [vmem:[#allocation4 + $0x4ac] ss:$16 sps:$4 sm:$0xff]  }
 0x1d0   :  { %2522 = vmatpush2.bf16.msra.mxu0 %v4778_v55  ;;  %2565 = vmatpush2.bf16.msra.mxu1 %v4780_v47  ;;  %v1551_v49 = vsel %vm4225_vm4, 0, %v1547_v4  ;;  %v4821_v4 = vld [vmem:[#allocation4 + $0x4e0] ss:$16 sps:$4 sm:$0xff]   ;;  %5328 = vst [vmem:[#allocation32_spill] sm:$0xff] %v4844_v43 }
 0x1d1   :  { %2523 = vmatprep.subr.bf16.mxu0 %v4785_v34  ;;  %2566 = vmatprep.subr.bf16.mxu1 %v4787_v2  ;;  %v1553_v31 = vmul.bf16 %v4233_v51, %v1551_v49  ;;  %5321 = vst [vmem:[#allocation25_spill] sm:$0xff] %v4821_v4  ;;  %v4825_v49 = vld [vmem:[#allocation4 + $0x4e8] ss:$16 sps:$4 sm:$0xff]  }
 0x1d2   :  { %5322 = vst [vmem:[#allocation26_spill] sm:$0xff] %v4825_v49  ;;  %v4838_v51 = vld [vmem:[#allocation4 + $0x4c8] ss:$16 sps:$4 sm:$0xff]  }
 0x1d3   :  { %2527 = vmatprep.mubr.bf16.mxu0 %v1553_v31  ;;  %2570 = vmatprep.mubr.bf16.mxu1 %v1553_v31  ;;  %v4830_v31 = vld [vmem:[#allocation4 + $0x4cc] ss:$16 sps:$4 sm:$0xff]   ;;  %5326 = vst [vmem:[#allocation30_spill] sm:$0xff] %v4838_v51 }
 0x1d4   :  { %2524 = vmatpush2.bf16.msra.mxu0 %v4791_v39  ;;  %2567 = vmatpush2.bf16.msra.mxu1 %v4793_v46  ;;  %5324 = vst [vmem:[#allocation28_spill] sm:$0xff] %v4830_v31 }
 0x1d5   :  { %2525 = vmatprep.subr.bf16.mxu0 %v4801_v61  ;;  %2568 = vmatprep.subr.bf16.mxu1 %v4803_v1 }
 0x1d8   :  { %2526 = vmatpush2.bf16.msra.mxu0 %v4807_v54  ;;  %2569 = vmatpush2.bf16.msra.mxu1 %v4809_v30 }
 0x1d9   :  { %2901 = vmatprep.subr.bf16.mxu0 %v4813_v28  ;;  %2944 = vmatprep.subr.bf16.mxu1 %v4815_v19  ;;  %v4856_v19 = vld [vmem:[#allocation4 + $0x48c] ss:$16 sps:$4 sm:$0xff]  }
 0x1da   :  { %5332 = vst [vmem:[#allocation36_spill] sm:$0xff] %v4856_v19 }
 0x1db   :  { %2528 = vmatmul.mubr.bf16.vlgmr.msra.gmra.mxu0 %v1552_v8  ;;  %2571 = vmatmul.mubr.bf16.vlgmr.msra.gmra.mxu1 %v1552_v8  ;;  %v4847_v8 = vld [vmem:[#allocation4 + $0x4a0] ss:$16 sps:$4 sm:$0xff]  }
 0x1dc   :  { %2902 = vmatpush1.bf16.msra.mxu0 %v4821_v4  ;;  %2933 = vmatprep.mubr.bf16.mxu0 %v4760_v14  ;;  %5329 = vst [vmem:[#allocation33_spill] sm:$0xff] %v4847_v8  ;;  %v4853_v4 = vld [vmem:[#allocation4 + $0x484] ss:$16 sps:$4 sm:$0xff]  }
 0x1dd   :  { %2945 = vmatpush1.bf16.msra.mxu1 %v4825_v49  ;;  %2976 = vmatprep.mubr.bf16.mxu1 %v4760_v14  ;;  %v4851_v49 = vld [vmem:[#allocation4 + $0x4a8] ss:$16 sps:$4 sm:$0xff]   ;;  %5331 = vst [vmem:[#allocation35_spill] sm:$0xff] %v4853_v4 }
 0x1de   :  { %2903 = vmatprep.subr.bf16.mxu0 %v4828_v59  ;;  %2946 = vmatprep.subr.bf16.mxu1 %v4830_v31  ;;  %5330 = vst [vmem:[#allocation34_spill] sm:$0xff] %v4851_v49  ;;  %v4859_v31 = vld [vmem:[#allocation4 + $0x480] ss:$16 sps:$4 sm:$0xff]   ;;  %v3966_v59 = vld [vmem:[#allocation4 + $0x284] ss:$16 sps:$4 sm:$0xff]  }
 0x1df   :  { %5333 = vst [vmem:[#allocation37_spill] sm:$0xff] %v4859_v31 }
 0x1e0   :  { %2904 = vmatpush1.bf16.msra.mxu0 %v4834_v44  ;;  %v4863_v44 = vld [vmem:[#allocation4 + $0x488] ss:$16 sps:$4 sm:$0xff]  }
 0x1e1   :  { %2947 = vmatpush1.bf16.msra.mxu1 %v4838_v51  ;;  %2905 = vmatprep.subr.bf16.mxu0 %v4840_v37  ;;  %5334 = vst [vmem:[#allocation38_spill] sm:$0xff] %v4863_v44  ;;  %v4865_v51 = vld [vmem:[#allocation4 + $0x464] ss:$16 sps:$4 sm:$0xff]   ;;  %v4868_v37 = vld [vmem:[#allocation4 + $0x46c] ss:$16 sps:$4 sm:$0xff]  }
 0x1e2   :  { %2948 = vmatprep.subr.bf16.mxu1 %v4844_v43  ;;  %5335 = vst [vmem:[#allocation39_spill] sm:$0xff] %v4865_v51  ;;  %5336 = vst [vmem:[#allocation40_spill] sm:$0xff] %v4868_v37  ;;  %v4871_v43 = vld [vmem:[#allocation4 + $0x460] ss:$16 sps:$4 sm:$0xff]  }
 0x1e3   :  { %5337 = vst [vmem:[#allocation41_spill] sm:$0xff] %v4871_v43 }
 0x1e4   :  { %2906 = vmatpush1.bf16.msra.mxu0 %v4847_v8  ;;  %v4875_v8 = vld [vmem:[#allocation4 + $0x468] ss:$16 sps:$4 sm:$0xff]  }
 0x1e5   :  { %2949 = vmatpush1.bf16.msra.mxu1 %v4851_v49  ;;  %2907 = vmatprep.subr.bf16.mxu0 %v4853_v4  ;;  %5338 = vst [vmem:[#allocation42_spill] sm:$0xff] %v4875_v8  ;;  %v4877_v49 = vld [vmem:[#allocation4 + $0x444] ss:$16 sps:$4 sm:$0xff]   ;;  %v4880_v4 = vld [vmem:[#allocation4 + $0x44c] ss:$16 sps:$4 sm:$0xff]  }
 0x1e6   :  { %2950 = vmatprep.subr.bf16.mxu1 %v4856_v19  ;;  %5339 = vst [vmem:[#allocation43_spill] sm:$0xff] %v4877_v49  ;;  %5340 = vst [vmem:[#allocation44_spill] sm:$0xff] %v4880_v4  ;;  %v4883_v19 = vld [vmem:[#allocation4 + $0x440] ss:$16 sps:$4 sm:$0xff]  }
 0x1e7   :  { %5341 = vst [vmem:[#allocation45_spill] sm:$0xff] %v4883_v19 }
 0x1e8   :  { %2908 = vmatpush1.bf16.msra.mxu0 %v4859_v31  ;;  %v4887_v31 = vld [vmem:[#allocation4 + $0x448] ss:$16 sps:$4 sm:$0xff]  }
 0x1e9   :  { %2951 = vmatpush1.bf16.msra.mxu1 %v4863_v44  ;;  %2909 = vmatprep.subr.bf16.mxu0 %v4865_v51  ;;  %5342 = vst [vmem:[#allocation46_spill] sm:$0xff] %v4887_v31  ;;  %v4889_v44 = vld [vmem:[#allocation4 + $0x424] ss:$16 sps:$4 sm:$0xff]   ;;  %v4892_v51 = vld [vmem:[#allocation4 + $0x42c] ss:$16 sps:$4 sm:$0xff]  }
 0x1ea   :  { %2952 = vmatprep.subr.bf16.mxu1 %v4868_v37  ;;  %5343 = vst [vmem:[#allocation47_spill] sm:$0xff] %v4889_v44  ;;  %5344 = vst [vmem:[#allocation48_spill] sm:$0xff] %v4892_v51  ;;  %v4895_v37 = vld [vmem:[#allocation4 + $0x420] ss:$16 sps:$4 sm:$0xff]  }
 0x1eb   :  { %5345 = vst [vmem:[#allocation49_spill] sm:$0xff] %v4895_v37 }
 0x1ec   :  { %2910 = vmatpush1.bf16.msra.mxu0 %v4871_v43  ;;  %v4899_v43 = vld [vmem:[#allocation4 + $0x428] ss:$16 sps:$4 sm:$0xff]  }
 0x1ed   :  { %2953 = vmatpush1.bf16.msra.mxu1 %v4875_v8  ;;  %2911 = vmatprep.subr.bf16.mxu0 %v4877_v49  ;;  %5346 = vst [vmem:[#allocation50_spill] sm:$0xff] %v4899_v43  ;;  %v4901_v8 = vld [vmem:[#allocation4 + $0x404] ss:$16 sps:$4 sm:$0xff]   ;;  %v4904_v49 = vld [vmem:[#allocation4 + $0x40c] ss:$16 sps:$4 sm:$0xff]  }
 0x1ee   :  { %2954 = vmatprep.subr.bf16.mxu1 %v4880_v4  ;;  %5347 = vst [vmem:[#allocation51_spill] sm:$0xff] %v4901_v8  ;;  %5348 = vst [vmem:[#allocation52_spill] sm:$0xff] %v4904_v49  ;;  %v4907_v4 = vld [vmem:[#allocation4 + $0x400] ss:$16 sps:$4 sm:$0xff]  }
 0x1ef   :  { %5349 = vst [vmem:[#allocation53_spill] sm:$0xff] %v4907_v4 }
 0x1f0   :  { %2912 = vmatpush1.bf16.msra.mxu0 %v4883_v19  ;;  %v4911_v19 = vld [vmem:[#allocation4 + $0x408] ss:$16 sps:$4 sm:$0xff]  }
 0x1f1   :  { %2955 = vmatpush1.bf16.msra.mxu1 %v4887_v31  ;;  %2913 = vmatprep.subr.bf16.mxu0 %v4889_v44  ;;  %5350 = vst [vmem:[#allocation54_spill] sm:$0xff] %v4911_v19  ;;  %v4913_v31 = vld [vmem:[#allocation4 + $0x5e4] ss:$16 sps:$4 sm:$0xff]   ;;  %v4916_v44 = vld [vmem:[#allocation4 + $0x5ec] ss:$16 sps:$4 sm:$0xff]  }
 0x1f2   :  { %2956 = vmatprep.subr.bf16.mxu1 %v4892_v51  ;;  %5351 = vst [vmem:[#allocation55_spill] sm:$0xff] %v4913_v31  ;;  %5352 = vst [vmem:[#allocation56_spill] sm:$0xff] %v4916_v44  ;;  %v4919_v51 = vld [vmem:[#allocation4 + $0x5e0] ss:$16 sps:$4 sm:$0xff]  }
 0x1f3   :  { %5353 = vst [vmem:[#allocation57_spill] sm:$0xff] %v4919_v51 }
 0x1f4   :  { %2914 = vmatpush1.bf16.msra.mxu0 %v4895_v37  ;;  %v4923_v37 = vld [vmem:[#allocation4 + $0x5e8] ss:$16 sps:$4 sm:$0xff]  }
 0x1f5   :  { %2957 = vmatpush1.bf16.msra.mxu1 %v4899_v43  ;;  %2915 = vmatprep.subr.bf16.mxu0 %v4901_v8  ;;  %5354 = vst [vmem:[#allocation58_spill] sm:$0xff] %v4923_v37  ;;  %v4925_v43 = vld [vmem:[#allocation4 + $0x5c4] ss:$16 sps:$4 sm:$0xff]   ;;  %v4928_v8 = vld [vmem:[#allocation4 + $0x5cc] ss:$16 sps:$4 sm:$0xff]  }
 0x1f6   :  { %2958 = vmatprep.subr.bf16.mxu1 %v4904_v49  ;;  %5355 = vst [vmem:[#allocation59_spill] sm:$0xff] %v4925_v43  ;;  %5356 = vst [vmem:[#allocation60_spill] sm:$0xff] %v4928_v8  ;;  %v4931_v49 = vld [vmem:[#allocation4 + $0x5c0] ss:$16 sps:$4 sm:$0xff]  }
 0x1f7   :  { %5357 = vst [vmem:[#allocation61_spill] sm:$0xff] %v4931_v49 }
 0x1f8   :  { %2916 = vmatpush1.bf16.msra.mxu0 %v4907_v4  ;;  %v4935_v4 = vld [vmem:[#allocation4 + $0x5c8] ss:$16 sps:$4 sm:$0xff]  }
 0x1f9   :  { %2959 = vmatpush1.bf16.msra.mxu1 %v4911_v19  ;;  %2917 = vmatprep.subr.bf16.mxu0 %v4913_v31  ;;  %5358 = vst [vmem:[#allocation62_spill] sm:$0xff] %v4935_v4  ;;  %v4937_v19 = vld [vmem:[#allocation4 + $0x5a4] ss:$16 sps:$4 sm:$0xff]   ;;  %v4940_v31 = vld [vmem:[#allocation4 + $0x5ac] ss:$16 sps:$4 sm:$0xff]  }
 0x1fa   :  { %2960 = vmatprep.subr.bf16.mxu1 %v4916_v44  ;;  %5359 = vst [vmem:[#allocation63_spill] sm:$0xff] %v4937_v19  ;;  %5360 = vst [vmem:[#allocation64_spill] sm:$0xff] %v4940_v31  ;;  %v4943_v44 = vld [vmem:[#allocation4 + $0x5a0] ss:$16 sps:$4 sm:$0xff]  }
 0x1fb   :  { %5361 = vst [vmem:[#allocation65_spill] sm:$0xff] %v4943_v44 }
 0x1fc   :  { %2918 = vmatpush2.bf16.msra.mxu0 %v4919_v51  ;;  %v4947_v51 = vld [vmem:[#allocation4 + $0x5a8] ss:$16 sps:$4 sm:$0xff]  }
 0x1fd   :  { %2961 = vmatpush2.bf16.msra.mxu1 %v4923_v37  ;;  %2919 = vmatprep.subr.bf16.mxu0 %v4925_v43  ;;  %5362 = vst [vmem:[#allocation66_spill] sm:$0xff] %v4947_v51  ;;  %v4949_v37 = vld [vmem:[#allocation4 + $0x584] ss:$16 sps:$4 sm:$0xff]   ;;  %v4952_v43 = vld [vmem:[#allocation4 + $0x58c] ss:$16 sps:$4 sm:$0xff]  }
 0x1fe   :  { %2962 = vmatprep.subr.bf16.mxu1 %v4928_v8  ;;  %5363 = vst [vmem:[#allocation67_spill] sm:$0xff] %v4949_v37  ;;  %5364 = vst [vmem:[#allocation68_spill] sm:$0xff] %v4952_v43  ;;  %v4955_v8 = vld [vmem:[#allocation4 + $0x580] ss:$16 sps:$4 sm:$0xff]  }
 0x1ff   :  { %5365 = vst [vmem:[#allocation69_spill] sm:$0xff] %v4955_v8 }
 0x200   :  { %2920 = vmatpush2.bf16.msra.mxu0 %v4931_v49  ;;  %v4959_v49 = vld [vmem:[#allocation4 + $0x588] ss:$16 sps:$4 sm:$0xff]  }
 0x201   :  { %2963 = vmatpush2.bf16.msra.mxu1 %v4935_v4  ;;  %2921 = vmatprep.subr.bf16.mxu0 %v4937_v19  ;;  %5366 = vst [vmem:[#allocation70_spill] sm:$0xff] %v4959_v49  ;;  %v4961_v4 = vld [vmem:[#allocation4 + $0x564] ss:$16 sps:$4 sm:$0xff]   ;;  %v4964_v19 = vld [vmem:[#allocation4 + $0x56c] ss:$16 sps:$4 sm:$0xff]  }
 0x202   :  { %2964 = vmatprep.subr.bf16.mxu1 %v4940_v31  ;;  %5367 = vst [vmem:[#allocation71_spill] sm:$0xff] %v4961_v4  ;;  %5368 = vst [vmem:[#allocation72_spill] sm:$0xff] %v4964_v19  ;;  %v4967_v31 = vld [vmem:[#allocation4 + $0x560] ss:$16 sps:$4 sm:$0xff]  }
 0x203   :  { %5369 = vst [vmem:[#allocation73_spill] sm:$0xff] %v4967_v31 }
 0x204   :  { %2922 = vmatpush2.bf16.msra.mxu0 %v4943_v44  ;;  %v4971_v44 = vld [vmem:[#allocation4 + $0x568] ss:$16 sps:$4 sm:$0xff]  }
 0x205   :  { %2965 = vmatpush2.bf16.msra.mxu1 %v4947_v51  ;;  %2923 = vmatprep.subr.bf16.mxu0 %v4949_v37  ;;  %5370 = vst [vmem:[#allocation74_spill] sm:$0xff] %v4971_v44  ;;  %v4973_v51 = vld [vmem:[#allocation4 + $0x544] ss:$16 sps:$4 sm:$0xff]   ;;  %v4976_v37 = vld [vmem:[#allocation4 + $0x54c] ss:$16 sps:$4 sm:$0xff]  }
 0x206   :  { %2966 = vmatprep.subr.bf16.mxu1 %v4952_v43  ;;  %5371 = vst [vmem:[#allocation75_spill] sm:$0xff] %v4973_v51  ;;  %5372 = vst [vmem:[#allocation76_spill] sm:$0xff] %v4976_v37  ;;  %v4979_v43 = vld [vmem:[#allocation4 + $0x540] ss:$16 sps:$4 sm:$0xff]  }
 0x207   :  { %5373 = vst [vmem:[#allocation77_spill] sm:$0xff] %v4979_v43 }
 0x208   :  { %2924 = vmatpush2.bf16.msra.mxu0 %v4955_v8  ;;  %v4983_v8 = vld [vmem:[#allocation4 + $0x548] ss:$16 sps:$4 sm:$0xff]  }
 0x209   :  { %2967 = vmatpush2.bf16.msra.mxu1 %v4959_v49  ;;  %2925 = vmatprep.subr.bf16.mxu0 %v4961_v4  ;;  %5374 = vst [vmem:[#allocation78_spill] sm:$0xff] %v4983_v8  ;;  %v4985_v49 = vld [vmem:[#allocation4 + $0x524] ss:$16 sps:$4 sm:$0xff]   ;;  %v4988_v4 = vld [vmem:[#allocation4 + $0x52c] ss:$16 sps:$4 sm:$0xff]  }
 0x20a   :  { %2968 = vmatprep.subr.bf16.mxu1 %v4964_v19  ;;  %5375 = vst [vmem:[#allocation79_spill] sm:$0xff] %v4985_v49  ;;  %5376 = vst [vmem:[#allocation80_spill] sm:$0xff] %v4988_v4  ;;  %v4991_v19 = vld [vmem:[#allocation4 + $0x520] ss:$16 sps:$4 sm:$0xff]  }
 0x20b   :  { %5377 = vst [vmem:[#allocation81_spill] sm:$0xff] %v4991_v19 }
 0x20c   :  { %2926 = vmatpush2.bf16.msra.mxu0 %v4967_v31  ;;  %v4995_v31 = vld [vmem:[#allocation4 + $0x528] ss:$16 sps:$4 sm:$0xff]  }
 0x20d   :  { %2969 = vmatpush2.bf16.msra.mxu1 %v4971_v44  ;;  %2927 = vmatprep.subr.bf16.mxu0 %v4973_v51  ;;  %5378 = vst [vmem:[#allocation82_spill] sm:$0xff] %v4995_v31  ;;  %v4997_v44 = vld [vmem:[#allocation4 + $0x504] ss:$16 sps:$4 sm:$0xff]   ;;  %v5000_v51 = vld [vmem:[#allocation4 + $0x50c] ss:$16 sps:$4 sm:$0xff]  }
 0x20e   :  { %2970 = vmatprep.subr.bf16.mxu1 %v4976_v37  ;;  %5379 = vst [vmem:[#allocation83_spill] sm:$0xff] %v4997_v44  ;;  %5380 = vst [vmem:[#allocation84_spill] sm:$0xff] %v5000_v51  ;;  %v5003_v37 = vld [vmem:[#allocation4 + $0x500] ss:$16 sps:$4 sm:$0xff]  }
 0x20f   :  { %5381 = vst [vmem:[#allocation85_spill] sm:$0xff] %v5003_v37 }
 0x210   :  { %2928 = vmatpush2.bf16.msra.mxu0 %v4979_v43  ;;  %v5007_v43 = vld [vmem:[#allocation4 + $0x508] ss:$16 sps:$4 sm:$0xff]  }
 0x211   :  { %2971 = vmatpush2.bf16.msra.mxu1 %v4983_v8  ;;  %2929 = vmatprep.subr.bf16.mxu0 %v4985_v49  ;;  %5382 = vst [vmem:[#allocation86_spill] sm:$0xff] %v5007_v43  ;;  %v3954_v49 = vld [vmem:[#allocation4 + $0x2e4] ss:$16 sps:$4 sm:$0xff]   ;;  %v3964_v8 = vld [vmem:[#allocation4 + $0x2a0] ss:$16 sps:$4 sm:$0xff]  }
 0x212   :  { %2972 = vmatprep.subr.bf16.mxu1 %v4988_v4  ;;  %v3955_v4 = vld [vmem:[#allocation4 + $0x2ec] ss:$16 sps:$4 sm:$0xff]  }
 0x214   :  { %2930 = vmatpush2.bf16.msra.mxu0 %v4991_v19  ;;  %v3956_v19 = vld [vmem:[#allocation4 + $0x2e0] ss:$16 sps:$4 sm:$0xff]  }
 0x215   :  { %2973 = vmatpush2.bf16.msra.mxu1 %v4995_v31  ;;  %2931 = vmatprep.subr.bf16.mxu0 %v4997_v44  ;;  %v3957_v44 = vld [vmem:[#allocation4 + $0x2e8] ss:$16 sps:$4 sm:$0xff]   ;;  %v3963_v31 = vld [vmem:[#allocation4 + $0x2ac] ss:$16 sps:$4 sm:$0xff]  }
 0x216   :  { %2974 = vmatprep.subr.bf16.mxu1 %v5000_v51  ;;  %v3958_v51 = vld [vmem:[#allocation4 + $0x2c4] ss:$16 sps:$4 sm:$0xff]  }
 0x218   :  { %2932 = vmatpush2.bf16.msra.mxu0 %v5003_v37  ;;  %v3959_v37 = vld [vmem:[#allocation4 + $0x2cc] ss:$16 sps:$4 sm:$0xff]  }
 0x219   :  { %2975 = vmatpush2.bf16.msra.mxu1 %v5007_v43  ;;  %2995 = vmatprep.subr.bf16.mxu0 %v3954_v49  ;;  %v3960_v43 = vld [vmem:[#allocation4 + $0x2c0] ss:$16 sps:$4 sm:$0xff]   ;;  %v3961_v49 = vld [vmem:[#allocation4 + $0x2c8] ss:$16 sps:$4 sm:$0xff]  }
 0x21a   :  { %3038 = vmatprep.subr.bf16.mxu1 %v3955_v4  ;;  %v3962_v4 = vld [vmem:[#allocation4 + $0x2a4] ss:$16 sps:$4 sm:$0xff]  }
 0x21b   :  { %2934 = vmatmul.mubr.bf16.vlgmr.msra.gmra.mxu0 %v4758_v23 }
 0x21c   :  { %2977 = vmatmul.mubr.bf16.vlgmr.msra.gmra.mxu1 %v4758_v23  ;;  %2996 = vmatpush1.bf16.msra.mxu0 %v3956_v19  ;;  %v3965_v19 = vld [vmem:[#allocation4 + $0x2a8] ss:$16 sps:$4 sm:$0xff]  }
 0x21d   :  { %3027 = vmatprep.mubr.bf16.mxu0 %v4760_v14  ;;  %3039 = vmatpush1.bf16.msra.mxu1 %v3957_v44  ;;  %v3967_v44 = vld [vmem:[#allocation4 + $0x28c] ss:$16 sps:$4 sm:$0xff]  }
 0x21e   :  { %3070 = vmatprep.mubr.bf16.mxu1 %v4760_v14  ;;  %2997 = vmatprep.subr.bf16.mxu0 %v3958_v51  ;;  %v3968_v14 = vld [vmem:[#allocation4 + $0x280] ss:$16 sps:$4 sm:$0xff]   ;;  %v3969_v51 = vld [vmem:[#allocation4 + $0x288] ss:$16 sps:$4 sm:$0xff]  }
 0x21f   :  { %3040 = vmatprep.subr.bf16.mxu1 %v3959_v37  ;;  %v3970_v37 = vld [vmem:[#allocation4 + $0x264] ss:$16 sps:$4 sm:$0xff]  }
 0x220   :  { %2998 = vmatpush1.bf16.msra.mxu0 %v3960_v43  ;;  %v3971_v43 = vld [vmem:[#allocation4 + $0x26c] ss:$16 sps:$4 sm:$0xff]  }
 0x221   :  { %3041 = vmatpush1.bf16.msra.mxu1 %v3961_v49  ;;  %2999 = vmatprep.subr.bf16.mxu0 %v3962_v4  ;;  %v3972_v49 = vld [vmem:[#allocation4 + $0x260] ss:$16 sps:$4 sm:$0xff]   ;;  %v3973_v4 = vld [vmem:[#allocation4 + $0x268] ss:$16 sps:$4 sm:$0xff]  }
 0x222   :  { %3042 = vmatprep.subr.bf16.mxu1 %v3963_v31  ;;  %v3974_v31 = vld [vmem:[#allocation4 + $0x244] ss:$16 sps:$4 sm:$0xff]  }
 0x224   :  { %3000 = vmatpush1.bf16.msra.mxu0 %v3964_v8  ;;  %v3975_v8 = vld [vmem:[#allocation4 + $0x24c] ss:$16 sps:$4 sm:$0xff]  }
 0x225   :  { %3043 = vmatpush1.bf16.msra.mxu1 %v3965_v19  ;;  %3001 = vmatprep.subr.bf16.mxu0 %v3966_v59  ;;  %v3976_v19 = vld [vmem:[#allocation4 + $0x240] ss:$16 sps:$4 sm:$0xff]   ;;  %v3977_v59 = vld [vmem:[#allocation4 + $0x248] ss:$16 sps:$4 sm:$0xff]  }
 0x226   :  { %3044 = vmatprep.subr.bf16.mxu1 %v3967_v44  ;;  %v3978_v44 = vld [vmem:[#allocation4 + $0x224] ss:$16 sps:$4 sm:$0xff]  }
 0x228   :  { %3002 = vmatpush1.bf16.msra.mxu0 %v3968_v14  ;;  %v3979_v14 = vld [vmem:[#allocation4 + $0x22c] ss:$16 sps:$4 sm:$0xff]  }
 0x229   :  { %3045 = vmatpush1.bf16.msra.mxu1 %v3969_v51  ;;  %3003 = vmatprep.subr.bf16.mxu0 %v3970_v37  ;;  %v3980_v51 = vld [vmem:[#allocation4 + $0x220] ss:$16 sps:$4 sm:$0xff]   ;;  %v3981_v37 = vld [vmem:[#allocation4 + $0x228] ss:$16 sps:$4 sm:$0xff]  }
 0x22a   :  { %3046 = vmatprep.subr.bf16.mxu1 %v3971_v43  ;;  %v3982_v43 = vld [vmem:[#allocation4 + $0x204] ss:$16 sps:$4 sm:$0xff]  }
 0x22c   :  { %3004 = vmatpush1.bf16.msra.mxu0 %v3972_v49  ;;  %v3983_v49 = vld [vmem:[#allocation4 + $0x20c] ss:$16 sps:$4 sm:$0xff]  }
 0x22d   :  { %3047 = vmatpush1.bf16.msra.mxu1 %v3973_v4  ;;  %3005 = vmatprep.subr.bf16.mxu0 %v3974_v31  ;;  %v3984_v4 = vld [vmem:[#allocation4 + $0x200] ss:$16 sps:$4 sm:$0xff]   ;;  %v3985_v31 = vld [vmem:[#allocation4 + $0x208] ss:$16 sps:$4 sm:$0xff]  }
 0x22e   :  { %3048 = vmatprep.subr.bf16.mxu1 %v3975_v8  ;;  %v3986_v8 = vld [vmem:[#allocation4 + $0x3e4] ss:$16 sps:$4 sm:$0xff]  }
 0x230   :  { %3006 = vmatpush1.bf16.msra.mxu0 %v3976_v19  ;;  %v3987_v19 = vld [vmem:[#allocation4 + $0x3ec] ss:$16 sps:$4 sm:$0xff]  }
 0x231   :  { %3049 = vmatpush1.bf16.msra.mxu1 %v3977_v59  ;;  %3007 = vmatprep.subr.bf16.mxu0 %v3978_v44  ;;  %v3988_v59 = vld [vmem:[#allocation4 + $0x3e0] ss:$16 sps:$4 sm:$0xff]   ;;  %v3989_v44 = vld [vmem:[#allocation4 + $0x3e8] ss:$16 sps:$4 sm:$0xff]  }
 0x232   :  { %3050 = vmatprep.subr.bf16.mxu1 %v3979_v14  ;;  %v3990_v14 = vld [vmem:[#allocation4 + $0x3c4] ss:$16 sps:$4 sm:$0xff]  }
 0x234   :  { %3008 = vmatpush1.bf16.msra.mxu0 %v3980_v51  ;;  %v3991_v51 = vld [vmem:[#allocation4 + $0x3cc] ss:$16 sps:$4 sm:$0xff]  }
 0x235   :  { %3051 = vmatpush1.bf16.msra.mxu1 %v3981_v37  ;;  %3009 = vmatprep.subr.bf16.mxu0 %v3982_v43  ;;  %v3992_v37 = vld [vmem:[#allocation4 + $0x3c0] ss:$16 sps:$4 sm:$0xff]   ;;  %v3993_v43 = vld [vmem:[#allocation4 + $0x3c8] ss:$16 sps:$4 sm:$0xff]  }
 0x236   :  { %3052 = vmatprep.subr.bf16.mxu1 %v3983_v49  ;;  %v3994_v49 = vld [vmem:[#allocation4 + $0x3a4] ss:$16 sps:$4 sm:$0xff]  }
 0x238   :  { %3010 = vmatpush1.bf16.msra.mxu0 %v3984_v4  ;;  %v3995_v4 = vld [vmem:[#allocation4 + $0x3ac] ss:$16 sps:$4 sm:$0xff]  }
 0x239   :  { %3053 = vmatpush1.bf16.msra.mxu1 %v3985_v31  ;;  %3011 = vmatprep.subr.bf16.mxu0 %v3986_v8  ;;  %v3996_v31 = vld [vmem:[#allocation4 + $0x3a0] ss:$16 sps:$4 sm:$0xff]   ;;  %v3997_v8 = vld [vmem:[#allocation4 + $0x3a8] ss:$16 sps:$4 sm:$0xff]  }
 0x23a   :  { %3054 = vmatprep.subr.bf16.mxu1 %v3987_v19  ;;  %v3998_v19 = vld [vmem:[#allocation4 + $0x384] ss:$16 sps:$4 sm:$0xff]  }
 0x23c   :  { %3012 = vmatpush2.bf16.msra.mxu0 %v3988_v59  ;;  %v3999_v59 = vld [vmem:[#allocation4 + $0x38c] ss:$16 sps:$4 sm:$0xff]  }
 0x23d   :  { %3055 = vmatpush2.bf16.msra.mxu1 %v3989_v44  ;;  %3013 = vmatprep.subr.bf16.mxu0 %v3990_v14  ;;  %v4000_v44 = vld [vmem:[#allocation4 + $0x380] ss:$16 sps:$4 sm:$0xff]   ;;  %v4001_v14 = vld [vmem:[#allocation4 + $0x388] ss:$16 sps:$4 sm:$0xff]  }
 0x23e   :  { %3056 = vmatprep.subr.bf16.mxu1 %v3991_v51  ;;  %v4002_v51 = vld [vmem:[#allocation4 + $0x364] ss:$16 sps:$4 sm:$0xff]  }
 0x240   :  { %3014 = vmatpush2.bf16.msra.mxu0 %v3992_v37  ;;  %v4003_v37 = vld [vmem:[#allocation4 + $0x36c] ss:$16 sps:$4 sm:$0xff]  }
 0x241   :  { %3057 = vmatpush2.bf16.msra.mxu1 %v3993_v43  ;;  %3015 = vmatprep.subr.bf16.mxu0 %v3994_v49  ;;  %v4004_v43 = vld [vmem:[#allocation4 + $0x360] ss:$16 sps:$4 sm:$0xff]   ;;  %v4005_v49 = vld [vmem:[#allocation4 + $0x368] ss:$16 sps:$4 sm:$0xff]  }
 0x242   :  { %3058 = vmatprep.subr.bf16.mxu1 %v3995_v4  ;;  %v4006_v4 = vld [vmem:[#allocation4 + $0x344] ss:$16 sps:$4 sm:$0xff]  }
 0x244   :  { %3016 = vmatpush2.bf16.msra.mxu0 %v3996_v31  ;;  %v4007_v31 = vld [vmem:[#allocation4 + $0x34c] ss:$16 sps:$4 sm:$0xff]  }
 0x245   :  { %3059 = vmatpush2.bf16.msra.mxu1 %v3997_v8  ;;  %3017 = vmatprep.subr.bf16.mxu0 %v3998_v19  ;;  %v4008_v8 = vld [vmem:[#allocation4 + $0x340] ss:$16 sps:$4 sm:$0xff]   ;;  %v4009_v19 = vld [vmem:[#allocation4 + $0x348] ss:$16 sps:$4 sm:$0xff]  }
 0x246   :  { %3060 = vmatprep.subr.bf16.mxu1 %v3999_v59  ;;  %v4010_v59 = vld [vmem:[#allocation4 + $0x324] ss:$16 sps:$4 sm:$0xff]  }
 0x248   :  { %3018 = vmatpush2.bf16.msra.mxu0 %v4000_v44  ;;  %v4011_v44 = vld [vmem:[#allocation4 + $0x32c] ss:$16 sps:$4 sm:$0xff]  }
 0x249   :  { %3061 = vmatpush2.bf16.msra.mxu1 %v4001_v14  ;;  %3019 = vmatprep.subr.bf16.mxu0 %v4002_v51  ;;  %v4012_v14 = vld [vmem:[#allocation4 + $0x320] ss:$16 sps:$4 sm:$0xff]   ;;  %v4013_v51 = vld [vmem:[#allocation4 + $0x328] ss:$16 sps:$4 sm:$0xff]  }
 0x24a   :  { %3062 = vmatprep.subr.bf16.mxu1 %v4003_v37  ;;  %v4014_v37 = vld [vmem:[#allocation4 + $0x304] ss:$16 sps:$4 sm:$0xff]  }
 0x24c   :  { %3020 = vmatpush2.bf16.msra.mxu0 %v4004_v43  ;;  %v4015_v43 = vld [vmem:[#allocation4 + $0x30c] ss:$16 sps:$4 sm:$0xff]  }
 0x24d   :  { %3063 = vmatpush2.bf16.msra.mxu1 %v4005_v49  ;;  %3021 = vmatprep.subr.bf16.mxu0 %v4006_v4  ;;  %v4016_v49 = vld [vmem:[#allocation4 + $0x300] ss:$16 sps:$4 sm:$0xff]   ;;  %v4017_v4 = vld [vmem:[#allocation4 + $0x308] ss:$16 sps:$4 sm:$0xff]  }
 0x24e   :  { %3064 = vmatprep.subr.bf16.mxu1 %v4007_v31  ;;  %v4018_v31 = vld [vmem:[#allocation4 + $0xe4] ss:$16 sps:$4 sm:$0xff]  }
 0x250   :  { %3022 = vmatpush2.bf16.msra.mxu0 %v4008_v8  ;;  %v4019_v8 = vld [vmem:[#allocation4 + $0xec] ss:$16 sps:$4 sm:$0xff]  }
 0x251   :  { %3065 = vmatpush2.bf16.msra.mxu1 %v4009_v19  ;;  %3023 = vmatprep.subr.bf16.mxu0 %v4010_v59  ;;  %v5430_v19 = vld [vmem:[#allocation56_spill] sm:$0xff]  ;;  %v5431_v59 = vld [vmem:[#allocation57_spill] sm:$0xff] }
 0x252   :  { %3066 = vmatprep.subr.bf16.mxu1 %v4011_v44  ;;  %v5432_v44 = vld [vmem:[#allocation58_spill] sm:$0xff] }
 0x254   :  { %3024 = vmatpush2.bf16.msra.mxu0 %v4012_v14  ;;  %v5433_v14 = vld [vmem:[#allocation59_spill] sm:$0xff] }
 0x255   :  { %3067 = vmatpush2.bf16.msra.mxu1 %v4013_v51  ;;  %3025 = vmatprep.subr.bf16.mxu0 %v4014_v37  ;;  %v5434_v51 = vld [vmem:[#allocation60_spill] sm:$0xff]  ;;  %v5435_v37 = vld [vmem:[#allocation61_spill] sm:$0xff] }
 0x256   :  { %3068 = vmatprep.subr.bf16.mxu1 %v4015_v43  ;;  %v5436_v43 = vld [vmem:[#allocation62_spill] sm:$0xff] }
 0x258   :  { %3026 = vmatpush2.bf16.msra.mxu0 %v4016_v49  ;;  %v5437_v49 = vld [vmem:[#allocation63_spill] sm:$0xff] }
 0x259   :  { %3069 = vmatpush2.bf16.msra.mxu1 %v4017_v4  ;;  %3081 = vmatprep.subr.bf16.mxu0 %v4018_v31  ;;  %v5438_v4 = vld [vmem:[#allocation64_spill] sm:$0xff]  ;;  %v5439_v31 = vld [vmem:[#allocation65_spill] sm:$0xff] }
 0x25a   :  { %3124 = vmatprep.subr.bf16.mxu1 %v4019_v8  ;;  %v5440_v8 = vld [vmem:[#allocation66_spill] sm:$0xff] }
 0x25b   :  { %3028 = vmatmul.mubr.bf16.vlgmr.msra.gmra.mxu0 %v4758_v23 }
 0x25c   :  { %3071 = vmatmul.mubr.bf16.vlgmr.msra.gmra.mxu1 %v4758_v23  ;;  %3082 = vmatpush1.bf16.msra.mxu0 %v4519_v15  ;;  %v5383_v15 = vld [vmem:[#allocation12_spill] sm:$0xff] }
 0x25d   :  { %3113 = vmatprep.mubr.bf16.mxu0 %v4513_v12  ;;  %3125 = vmatpush1.bf16.msra.mxu1 %v4521_v17  ;;  %v5384_v17 = vld [vmem:[#allocation13_spill] sm:$0xff]  ;;  %v5414_v23 = vld [vmem:[#allocation40_spill] sm:$0xff] }
 0x25e   :  { %3156 = vmatprep.mubr.bf16.mxu1 %v4513_v12  ;;  %3083 = vmatprep.subr.bf16.mxu0 %v4525_v0  ;;  %v5385_v0 = vld [vmem:[#allocation14_spill] sm:$0xff] }
 0x25f   :  { %3126 = vmatprep.subr.bf16.mxu1 %v4527_v21  ;;  %v5386_v21 = vld [vmem:[#allocation15_spill] sm:$0xff] }
 0x260   :  { %3084 = vmatpush1.bf16.msra.mxu0 %v4539_v57  ;;  %v5387_v57 = vld [vmem:[#allocation16_spill] sm:$0xff] }
 0x261   :  { %3127 = vmatpush1.bf16.msra.mxu1 %v4541_v22  ;;  %3085 = vmatprep.subr.bf16.mxu0 %v4545_v58  ;;  %v5388_v22 = vld [vmem:[#allocation17_spill] sm:$0xff]  ;;  %v5389_v58 = vld [vmem:[#allocation18_spill] sm:$0xff] }
 0x262   :  { %3128 = vmatprep.subr.bf16.mxu1 %v4547_v25  ;;  %v5390_v25 = vld [vmem:[#allocation19_spill] sm:$0xff] }
 0x264   :  { %3086 = vmatpush1.bf16.msra.mxu0 %v4555_v27  ;;  %v5391_v27 = vld [vmem:[#allocation20_spill] sm:$0xff] }
 0x265   :  { %3129 = vmatpush1.bf16.msra.mxu1 %v4557_v32  ;;  %3087 = vmatprep.subr.bf16.mxu0 %v4561_v35  ;;  %v5392_v32 = vld [vmem:[#allocation21_spill] sm:$0xff]  ;;  %v5393_v35 = vld [vmem:[#allocation22_spill] sm:$0xff] }
 0x266   :  { %3130 = vmatprep.subr.bf16.mxu1 %v4563_v36  ;;  %v5394_v36 = vld [vmem:[#allocation23_spill] sm:$0xff] }
 0x268   :  { %3088 = vmatpush1.bf16.msra.mxu0 %v4575_v60  ;;  %v1564_v60 = vshll.u32 %v4513_v12, 16 }
 0x269   :  { %3131 = vmatpush1.bf16.msra.mxu1 %v5383_v15  ;;  %3089 = vmatprep.subr.bf16.mxu0 %v5384_v17  ;;  %v5441_v15 = vld [vmem:[#allocation67_spill] sm:$0xff]  ;;  %v5442_v17 = vld [vmem:[#allocation68_spill] sm:$0xff] }
 0x26a   :  { %3132 = vmatprep.subr.bf16.mxu1 %v5385_v0  ;;  %v5443_v0 = vld [vmem:[#allocation69_spill] sm:$0xff] }
 0x26c   :  { %3090 = vmatpush1.bf16.msra.mxu0 %v4593_v48  ;;  %v1566_v48 = vrot.slane %v1564_v60, 1  ;;  %v5451_v60 = vld [vmem:[#allocation77_spill] sm:$0xff] }
 0x26d   :  { %3133 = vmatpush1.bf16.msra.mxu1 %v4595_v7  ;;  %3091 = vmatprep.subr.bf16.mxu0 %v4599_v9  ;;  %v1562_v7 = vshrl.u32 %v4513_v12, 16  ;;  %v5397_v12 = vld [vmem:[#allocation11_spill] sm:$0xff] }
 0x26e   :  { %3134 = vmatprep.subr.bf16.mxu1 %v5386_v21  ;;  %v5444_v21 = vld [vmem:[#allocation70_spill] sm:$0xff] }
 0x26f   :  { %v1567_v9 = vor.u32 %v1566_v48, %v1562_v7  ;;  %v1555_v48 = vshrl.u32 %v5397_v12, 16  ;;  %v5452_v7 = vld [vmem:[#allocation78_spill] sm:$0xff] }
 0x270   :  { %3092 = vmatpush1.bf16.msra.mxu0 %v5387_v57  ;;  %v5445_v57 = vld [vmem:[#allocation71_spill] sm:$0xff] }
 0x271   :  { %3135 = vmatpush1.bf16.msra.mxu1 %v5388_v22  ;;  %3093 = vmatprep.subr.bf16.mxu0 %v5389_v58  ;;  %v5446_v22 = vld [vmem:[#allocation72_spill] sm:$0xff]  ;;  %v1557_v58 = vshll.u32 %v5397_v12, 16 }
 0x272   :  { %3136 = vmatprep.subr.bf16.mxu1 %v5390_v25  ;;  %v5447_v25 = vld [vmem:[#allocation73_spill] sm:$0xff] }
 0x274   :  { %3094 = vmatpush1.bf16.msra.mxu0 %v4643_v56  ;;  %v1571_v56 = vsel %vm4412_vm7, %v1567_v9, 0  ;;  %v5453_v9 = vld [vmem:[#allocation79_spill] sm:$0xff] }
 0x275   :  { %3137 = vmatpush1.bf16.msra.mxu1 %v4645_v13  ;;  %3095 = vmatprep.subr.bf16.mxu0 %v4652_v10  ;;  %v5396_v13 = vld [vmem:[#allocation24_spill] sm:$0xff]  ;;  %v5398_v10 = vld [vmem:[#allocation10_spill] sm:$0xff] }
 0x276   :  { %3138 = vmatprep.subr.bf16.mxu1 %v4654_v63  ;;  %v1573_v63 = vmul.bf16 %v5398_v10, %v1571_v56  ;;  %v5454_v56 = vld [vmem:[#allocation80_spill] sm:$0xff] }
 0x278   :  { %3096 = vmatpush1.bf16.msra.mxu0 %v5391_v27  ;;  %v5448_v27 = vld [vmem:[#allocation74_spill] sm:$0xff] }
 0x279   :  { %3139 = vmatpush1.bf16.msra.mxu1 %v5392_v32  ;;  %3097 = vmatprep.subr.bf16.mxu0 %v5393_v35  ;;  %v5449_v32 = vld [vmem:[#allocation75_spill] sm:$0xff]  ;;  %v5450_v35 = vld [vmem:[#allocation76_spill] sm:$0xff] }
 0x27a   :  { %3140 = vmatprep.subr.bf16.mxu1 %v5394_v36  ;;  %v1559_v36 = vrot.slane %v1557_v58, 1 }
 0x27c   :  { %3098 = vmatpush2.bf16.msra.mxu0 %v4697_v33 }
 0x27d   :  { %3141 = vmatpush2.bf16.msra.mxu1 %v4699_v45  ;;  %3099 = vmatprep.subr.bf16.mxu0 %v4705_v53  ;;  %v5399_v45 = vld [vmem:[#allocation25_spill] sm:$0xff]  ;;  %v5400_v53 = vld [vmem:[#allocation26_spill] sm:$0xff] }
 0x27e   :  { %3142 = vmatprep.subr.bf16.mxu1 %v4707_v42  ;;  %v5401_v42 = vld [vmem:[#allocation27_spill] sm:$0xff] }
 0x280   :  { %3100 = vmatpush2.bf16.msra.mxu0 %v4714_v18  ;;  %v5402_v18 = vld [vmem:[#allocation28_spill] sm:$0xff] }
 0x281   :  { %3143 = vmatpush2.bf16.msra.mxu1 %v4716_v38  ;;  %3101 = vmatprep.subr.bf16.mxu0 %v4727_v20  ;;  %v5403_v38 = vld [vmem:[#allocation29_spill] sm:$0xff]  ;;  %v5404_v20 = vld [vmem:[#allocation30_spill] sm:$0xff] }
 0x282   :  { %3144 = vmatprep.subr.bf16.mxu1 %v4729_v50  ;;  %v5405_v50 = vld [vmem:[#allocation31_spill] sm:$0xff] }
 0x284   :  { %3102 = vmatpush2.bf16.msra.mxu0 %v4736_v40  ;;  %v5406_v40 = vld [vmem:[#allocation32_spill] sm:$0xff] }
 0x285   :  { %3145 = vmatpush2.bf16.msra.mxu1 %v4738_v29  ;;  %3103 = vmatprep.subr.bf16.mxu0 %v4742_v5  ;;  %v5407_v29 = vld [vmem:[#allocation33_spill] sm:$0xff]  ;;  %v5408_v5 = vld [vmem:[#allocation34_spill] sm:$0xff] }
 0x286   :  { %3146 = vmatprep.subr.bf16.mxu1 %v4744_v62  ;;  %v5409_v62 = vld [vmem:[#allocation35_spill] sm:$0xff] }
 0x288   :  { %3104 = vmatpush2.bf16.msra.mxu0 %v4748_v6  ;;  %v5410_v6 = vld [vmem:[#allocation36_spill] sm:$0xff] }
 0x289   :  { %3147 = vmatpush2.bf16.msra.mxu1 %v4750_v41  ;;  %3105 = vmatprep.subr.bf16.mxu0 %v4754_v24  ;;  %v5411_v41 = vld [vmem:[#allocation37_spill] sm:$0xff]  ;;  %v5412_v24 = vld [vmem:[#allocation38_spill] sm:$0xff] }
 0x28a   :  { %3148 = vmatprep.subr.bf16.mxu1 %v4756_v26  ;;  %v5413_v26 = vld [vmem:[#allocation39_spill] sm:$0xff] }
 0x28c   :  { %3106 = vmatpush2.bf16.msra.mxu0 %v4764_v11  ;;  %v5415_v11 = vld [vmem:[#allocation41_spill] sm:$0xff] }
 0x28d   :  { %3149 = vmatpush2.bf16.msra.mxu1 %v4766_v3  ;;  %3107 = vmatprep.subr.bf16.mxu0 %v4770_v16  ;;  %v5416_v3 = vld [vmem:[#allocation42_spill] sm:$0xff]  ;;  %v5417_v16 = vld [vmem:[#allocation43_spill] sm:$0xff] }
 0x28e   :  { %3150 = vmatprep.subr.bf16.mxu1 %v4772_v52  ;;  %v5418_v52 = vld [vmem:[#allocation44_spill] sm:$0xff] }
 0x290   :  { %3108 = vmatpush2.bf16.msra.mxu0 %v4778_v55  ;;  %v5419_v55 = vld [vmem:[#allocation45_spill] sm:$0xff] }
 0x291   :  { %3151 = vmatpush2.bf16.msra.mxu1 %v4780_v47  ;;  %3109 = vmatprep.subr.bf16.mxu0 %v4785_v34  ;;  %v5420_v47 = vld [vmem:[#allocation46_spill] sm:$0xff]  ;;  %v5421_v34 = vld [vmem:[#allocation47_spill] sm:$0xff] }
 0x292   :  { %3152 = vmatprep.subr.bf16.mxu1 %v4787_v2  ;;  %v5422_v2 = vld [vmem:[#allocation48_spill] sm:$0xff] }
 0x294   :  { %3110 = vmatpush2.bf16.msra.mxu0 %v4791_v39  ;;  %v5423_v39 = vld [vmem:[#allocation49_spill] sm:$0xff] }
 0x295   :  { %3153 = vmatpush2.bf16.msra.mxu1 %v4793_v46  ;;  %3111 = vmatprep.subr.bf16.mxu0 %v4801_v61  ;;  %v5424_v46 = vld [vmem:[#allocation50_spill] sm:$0xff]  ;;  %v5425_v61 = vld [vmem:[#allocation51_spill] sm:$0xff] }
 0x296   :  { %3154 = vmatprep.subr.bf16.mxu1 %v4803_v1  ;;  %v5426_v1 = vld [vmem:[#allocation52_spill] sm:$0xff] }
 0x298   :  { %3112 = vmatpush2.bf16.msra.mxu0 %v4807_v54  ;;  %v5427_v54 = vld [vmem:[#allocation53_spill] sm:$0xff] }
 0x299   :  { %3155 = vmatpush2.bf16.msra.mxu1 %v4809_v30  ;;  %3167 = vmatprep.subr.bf16.mxu0 %v4813_v28  ;;  %v5428_v30 = vld [vmem:[#allocation54_spill] sm:$0xff]  ;;  %v5429_v28 = vld [vmem:[#allocation55_spill] sm:$0xff] }
 0x29a   :  { %3210 = vmatprep.subr.bf16.mxu1 %v5396_v13  ;;  %v1560_v13 = vor.u32 %v1559_v36, %v1555_v48 }
 0x29b   :  { %3114 = vmatmul.mubr.bf16.vlgmr.msra.gmra.mxu0 %v5397_v12 }
 0x29c   :  { %3157 = vmatmul.mubr.bf16.vlgmr.msra.gmra.mxu1 %v5397_v12  ;;  %3168 = vmatpush1.bf16.msra.mxu0 %v5399_v45  ;;  %v5456_v45 = vld [vmem:[#allocation82_spill] sm:$0xff] }
 0x29d   :  { %3199 = vmatprep.mubr.bf16.mxu0 %v1573_v63  ;;  %3211 = vmatpush1.bf16.msra.mxu1 %v5400_v53  ;;  %v5457_v53 = vld [vmem:[#allocation83_spill] sm:$0xff]  ;;  %v5460_v12 = vld [vmem:[#allocation86_spill] sm:$0xff] }
 0x29e   :  { %3242 = vmatprep.mubr.bf16.mxu1 %v1573_v63  ;;  %3169 = vmatprep.subr.bf16.mxu0 %v5401_v42  ;;  %v5455_v63 = vld [vmem:[#allocation81_spill] sm:$0xff]  ;;  %v5458_v42 = vld [vmem:[#allocation84_spill] sm:$0xff] }
 0x29f   :  { %3212 = vmatprep.subr.bf16.mxu1 %v5402_v18  ;;  %v1570_v18 = vsel %vm4412_vm7, %v1560_v13, 0 }
 0x2a0   :  { %3170 = vmatpush1.bf16.msra.mxu0 %v5403_v38  ;;  %v5459_v38 = vld [vmem:[#allocation85_spill] sm:$0xff] }
 0x2a1   :  { %3213 = vmatpush1.bf16.msra.mxu1 %v5404_v20  ;;  %3171 = vmatprep.subr.bf16.mxu0 %v5405_v50  ;;  %v1572_v20 = vmul.bf16 %v5398_v10, %v1570_v18  ;;  %v2123_v50 = vpop.f32.mrf.mxu0 }
 0x2a2   :  { %3214 = vmatprep.subr.bf16.mxu1 %v5406_v40  ;;  %v2166_v40 = vpop.f32.mrf.mxu1 }
 0x2a4   :  { %3172 = vmatpush1.bf16.msra.mxu0 %v5407_v29  ;;  %v2125_v29 = vpop.f32.mrf.mxu0 }
 0x2a5   :  { %3215 = vmatpush1.bf16.msra.mxu1 %v5408_v5  ;;  %3173 = vmatprep.subr.bf16.mxu0 %v5409_v62  ;;  %v2168_v5 = vpop.f32.mrf.mxu1 }
 0x2a6   :  { %3216 = vmatprep.subr.bf16.mxu1 %v5410_v6  ;;  %v2127_v62 = vpop.f32.mrf.mxu0 }
 0x2a7   :  { %v2170_v6 = vpop.f32.mrf.mxu1 }
 0x2a8   :  { %3174 = vmatpush1.bf16.msra.mxu0 %v5411_v41  ;;  %v2129_v41 = vpop.f32.mrf.mxu0 }
 0x2a9   :  { %3217 = vmatpush1.bf16.msra.mxu1 %v5412_v24  ;;  %3175 = vmatprep.subr.bf16.mxu0 %v5413_v26  ;;  %v2172_v24 = vpop.f32.mrf.mxu1 }
 0x2aa   :  { %3218 = vmatprep.subr.bf16.mxu1 %v5414_v23  ;;  %v2529_v26 = vpop.f32.mrf.mxu0 }
 0x2ab   :  { %v2572_v23 = vpop.f32.mrf.mxu1 }
 0x2ac   :  { %3176 = vmatpush1.bf16.msra.mxu0 %v5415_v11  ;;  %v2531_v33 = vpop.f32.mrf.mxu0 }
 0x2ad   :  { %3219 = vmatpush1.bf16.msra.mxu1 %v5416_v3  ;;  %3177 = vmatprep.subr.bf16.mxu0 %v5417_v16  ;;  %v2574_v11 = vpop.f32.mrf.mxu1 }
 0x2ae   :  { %3220 = vmatprep.subr.bf16.mxu1 %v5418_v52  ;;  %v2533_v3 = vpop.f32.mrf.mxu0 }
 0x2af   :  { %v2576_v16 = vpop.f32.mrf.mxu1  ;;  %v2534_v13 = vadd.f32 %v2533_v3, %v2127_v62 }
 0x2b0   :  { %3178 = vmatpush1.bf16.msra.mxu0 %v5419_v55  ;;  %v2535_v52 = vpop.f32.mrf.mxu0 }
 0x2b1   :  { %3221 = vmatpush1.bf16.msra.mxu1 %v5420_v47  ;;  %3179 = vmatprep.subr.bf16.mxu0 %v5421_v34  ;;  %v2578_v55 = vpop.f32.mrf.mxu1  ;;  %v2536_v18 = vadd.f32 %v2535_v52, %v2129_v41 }
 0x2b2   :  { %3222 = vmatprep.subr.bf16.mxu1 %v5422_v2 }
 0x2b4   :  { %3180 = vmatpush1.bf16.msra.mxu0 %v5423_v39 }
 0x2b5   :  { %3223 = vmatpush1.bf16.msra.mxu1 %v5424_v46  ;;  %3181 = vmatprep.subr.bf16.mxu0 %v5425_v61 }
 0x2b6   :  { %3224 = vmatprep.subr.bf16.mxu1 %v5426_v1 }
 0x2b8   :  { %3182 = vmatpush1.bf16.msra.mxu0 %v5427_v54 }
 0x2b9   :  { %3225 = vmatpush1.bf16.msra.mxu1 %v5428_v30  ;;  %3183 = vmatprep.subr.bf16.mxu0 %v5429_v28 }
 0x2ba   :  { %3226 = vmatprep.subr.bf16.mxu1 %v5430_v19 }
 0x2bc   :  { %3184 = vmatpush2.bf16.msra.mxu0 %v5431_v59 }
 0x2bd   :  { %3227 = vmatpush2.bf16.msra.mxu1 %v5432_v44  ;;  %3185 = vmatprep.subr.bf16.mxu0 %v5433_v14 }
 0x2be   :  { %3228 = vmatprep.subr.bf16.mxu1 %v5434_v51 }
 0x2c0   :  { %3186 = vmatpush2.bf16.msra.mxu0 %v5435_v37 }
 0x2c1   :  { %3229 = vmatpush2.bf16.msra.mxu1 %v5436_v43  ;;  %3187 = vmatprep.subr.bf16.mxu0 %v5437_v49  ;;  %v1768_v49 = vld [vmem:[%s5208_s6] sm:$0xf] }
 0x2c2   :  { %3230 = vmatprep.subr.bf16.mxu1 %v5438_v4  ;;  %v2530_v4 = vadd.f32 %v2529_v26, %v2123_v50 }
 0x2c4   :  { %3188 = vmatpush2.bf16.msra.mxu0 %v5439_v31  ;;  %v2573_v31 = vadd.f32 %v2572_v23, %v2166_v40 }
 0x2c5   :  { %3231 = vmatpush2.bf16.msra.mxu1 %v5440_v8  ;;  %3189 = vmatprep.subr.bf16.mxu0 %v5441_v15  ;;  %v2532_v15 = vadd.f32 %v2531_v33, %v2125_v29 }
 0x2c6   :  { %3232 = vmatprep.subr.bf16.mxu1 %v5442_v17  ;;  %v5461_v17 = vld [vmem:[#allocation8_spill] sm:$0xff] }
 0x2c7   :  { %v5464_v36 = vsub.s32 1, %v5461_v17 }
 0x2c8   :  { %3190 = vmatpush2.bf16.msra.mxu0 %v5443_v0  ;;  %v5462_v0 = vsub.s32 0, %v5461_v17 }
 0x2c9   :  { %3233 = vmatpush2.bf16.msra.mxu1 %v5444_v21  ;;  %3191 = vmatprep.subr.bf16.mxu0 %v5445_v57 }
 0x2ca   :  { %3234 = vmatprep.subr.bf16.mxu1 %v5446_v22  ;;  %v5165_v21 = vrot.slane %v1768_v49, %v5462_v0  ;;  %v2575_v22 = vadd.f32 %v2574_v11, %v2168_v5 }
 0x2cc   :  { %3192 = vmatpush2.bf16.msra.mxu0 %v5447_v25 }
 0x2cd   :  { %3235 = vmatpush2.bf16.msra.mxu1 %v5448_v27  ;;  %3193 = vmatprep.subr.bf16.mxu0 %v5449_v32  ;;  %v5463_v27 = vsub.s32 2, %v5461_v17 }
 0x2ce   :  { %3236 = vmatprep.subr.bf16.mxu1 %v5450_v35 }
 0x2cf   :  { %v5169_v32 = vrot.slane %v1768_v49, %v5463_v27 }
 0x2d0   :  { %3194 = vmatpush2.bf16.msra.mxu0 %v5451_v60  ;;  %v5173_v60 = vrot.slane %v1768_v49, %v5464_v36 }
 0x2d1   :  { %3237 = vmatpush2.bf16.msra.mxu1 %v5452_v7  ;;  %3195 = vmatprep.subr.bf16.mxu0 %v5453_v9  ;;  %v5465_v7 = vsub.s32 3, %v5461_v17 }
 0x2d2   :  { %3238 = vmatprep.subr.bf16.mxu1 %v5454_v56 }
 0x2d3   :  { %v5177_v9 = vrot.slane %v1768_v49, %v5465_v7 }
 0x2d4   :  { %3196 = vmatpush2.bf16.msra.mxu0 %v5455_v63 }
 0x2d5   :  { %3239 = vmatpush2.bf16.msra.mxu1 %v5456_v45  ;;  %3197 = vmatprep.subr.bf16.mxu0 %v5457_v53  ;;  %v2577_v45 = vadd.f32 %v2576_v16, %v2170_v6 }
 0x2d6   :  { %3240 = vmatprep.subr.bf16.mxu1 %v5458_v42 }
 0x2d8   :  { %3198 = vmatpush2.bf16.msra.mxu0 %v5459_v38 }
 0x2d9   :  { %3241 = vmatpush2.bf16.msra.mxu1 %v5460_v12 }
 0x2db   :  { %3200 = vmatmul.mubr.bf16.vlgmr.msra.gmra.mxu0 %v1572_v20  ;;  %v2935_v47 = vpop.f32.mrf.mxu0 }
 0x2dc   :  { %3243 = vmatmul.mubr.bf16.vlgmr.msra.gmra.mxu1 %v1572_v20  ;;  %v2978_v10 = vpop.f32.mrf.mxu1  ;;  %v2987_v58 = vadd.f32 %v2935_v47, %v2530_v4  ;;  %v2579_v20 = vadd.f32 %v2578_v55, %v2172_v24 }
 0x2dd   :  { %v2937_v34 = vpop.f32.mrf.mxu0  ;;  %v2989_v25 = vadd.f32 %v2978_v10, %v2573_v31 }
 0x2de   :  { %v2980_v2 = vpop.f32.mrf.mxu1  ;;  %v2988_v35 = vadd.f32 %v2937_v34, %v2532_v15  ;;  %v3282_v53 = vadd.f32 %v5165_v21, %v2987_v58 }
 0x2df   :  { %v2939_v39 = vpop.f32.mrf.mxu0  ;;  %v2990_v48 = vadd.f32 %v2980_v2, %v2575_v22  ;;  %v3284_v42 = vadd.f32 %v5169_v32, %v2989_v25 }
 0x2e0   :  { %v2982_v46 = vpop.f32.mrf.mxu1  ;;  %v3283_v38 = vadd.f32 %v5173_v60, %v2988_v35  ;;  %v2991_v12 = vadd.f32 %v2939_v39, %v2534_v13  ;;  %v3290_v33 = vmax.f32 %v3282_v53, 0.0 }
 0x2e1   :  { %v2941_v61 = vpop.f32.mrf.mxu0  ;;  %v3285_v50 = vadd.f32 %v5177_v9, %v2990_v48  ;;  %v2993_v40 = vadd.f32 %v2982_v46, %v2577_v45  ;;  %v3292_v62 = vmax.f32 %v3284_v42, 0.0 }
 0x2e2   :  { %v2984_v1 = vpop.f32.mrf.mxu1  ;;  %v2992_v5 = vadd.f32 %v2941_v61, %v2536_v18  ;;  %v3291_v16 = vmax.f32 %v3283_v38, 0.0  ;;  %v3286_v47 = vadd.f32 %v5165_v21, %v2991_v12 }
 0x2e3   :  { %v2994_v11 = vadd.f32 %v2984_v1, %v2579_v20  ;;  %v3293_v34 = vmax.f32 %v3285_v50, 0.0  ;;  %v3288_v24 = vadd.f32 %v5169_v32, %v2993_v40 }
 0x2e4   :  { %v3287_v46 = vadd.f32 %v5173_v60, %v2992_v5  ;;  %v3294_v13 = vmax.f32 %v3286_v47, 0.0 }
 0x2e5   :  { %v3296_v53 = vmax.f32 %v3288_v24, 0.0 }
 0x2e6   :  { %v3295_v12 = vmax.f32 %v3287_v46, 0.0 }
 0x31b   :  { %v3029_v54 = vpop.f32.mrf.mxu0 }
 0x31c   :  { %v3072_v30 = vpop.f32.mrf.mxu1 }
 0x31d   :  { %v3031_v28 = vpop.f32.mrf.mxu0 }
 0x31e   :  { %v3074_v19 = vpop.f32.mrf.mxu1 }
 0x31f   :  { %v3033_v59 = vpop.f32.mrf.mxu0 }
 0x320   :  { %v3076_v44 = vpop.f32.mrf.mxu1 }
 0x321   :  { %v3035_v14 = vpop.f32.mrf.mxu0 }
 0x322   :  { %v5158_v51 = vpop.f32.mrf.mxu1 }
 0x35b   :  { %v3115_v37 = vpop.f32.mrf.mxu0 }
 0x35c   :  { %v3158_v43 = vpop.f32.mrf.mxu1  ;;  %v3116_v26 = vadd.f32 %v3115_v37, %v3029_v54  ;;  %v3289_v37 = vadd.f32 %v5177_v9, %v2994_v11 }
 0x35d   :  { %v3117_v8 = vpop.f32.mrf.mxu0  ;;  %v3159_v6 = vadd.f32 %v3158_v43, %v3072_v30 }
 0x35e   :  { %v3160_v57 = vpop.f32.mrf.mxu1  ;;  %v3118_v41 = vadd.f32 %v3117_v8, %v3031_v28  ;;  %v3297_v20 = vmax.f32 %v3289_v37, 0.0 }
 0x35f   :  { %v3119_v56 = vpop.f32.mrf.mxu0  ;;  %v3161_v55 = vadd.f32 %v3160_v57, %v3074_v19 }
 0x360   :  { %v3162_v63 = vpop.f32.mrf.mxu1  ;;  %v3120_v61 = vadd.f32 %v3119_v56, %v3033_v59 }
 0x361   :  { %v3121_v29 = vpop.f32.mrf.mxu0  ;;  %v3163_v43 = vadd.f32 %v3162_v63, %v3076_v44 }
 0x362   :  { %v3164_v23 = vpop.f32.mrf.mxu1  ;;  %v3122_v31 = vadd.f32 %v3121_v29, %v3035_v14 }
 0x363   :  { %v3165_v0 = vadd.f32 %v3164_v23, %v5158_v51 }
 0x39b   :  { %v3201_v3 = vpop.f32.mrf.mxu0 }
 0x39c   :  { %v3253_v52 = vadd.f32 %v3201_v3, %v3116_v26  ;;  %v3244_v10 = vpop.f32.mrf.mxu1 }
 0x39d   :  { %v3255_v2 = vadd.f32 %v3244_v10, %v3159_v6  ;;  %v3203_v39 = vpop.f32.mrf.mxu0 }
 0x39e   :  { %v3298_v54 = vadd.f32 %v5165_v21, %v3253_v52  ;;  %v3254_v1 = vadd.f32 %v3203_v39, %v3118_v41  ;;  %v3246_v30 = vpop.f32.mrf.mxu1 }
 0x39f   :  { %v3300_v28 = vadd.f32 %v5169_v32, %v3255_v2  ;;  %v3256_v49 = vadd.f32 %v3246_v30, %v3161_v55  ;;  %v3205_v4 = vpop.f32.mrf.mxu0 }
 0x3a0   :  { %v3306_v8 = vmax.f32 %v3298_v54, 0.0  ;;  %v3299_v19 = vadd.f32 %v5173_v60, %v3254_v1  ;;  %v3257_v15 = vadd.f32 %v3205_v4, %v3120_v61  ;;  %v3248_v17 = vpop.f32.mrf.mxu1 }
 0x3a1   :  { %v3308_v59 = vmax.f32 %v3300_v28, 0.0  ;;  %v3301_v57 = vadd.f32 %v5177_v9, %v3256_v49  ;;  %v3259_v22 = vadd.f32 %v3248_v17, %v3163_v43  ;;  %v3207_v58 = vpop.f32.mrf.mxu0 }
 0x3a2   :  { %v3314_v25 = vmax.f32 %v3290_v33, %v3306_v8  ;;  %v3307_v27 = vmax.f32 %v3299_v19, 0.0  ;;  %v3302_v44 = vadd.f32 %v5165_v21, %v3257_v15  ;;  %v3258_v35 = vadd.f32 %v3207_v58, %v3122_v31  ;;  %v3250_v36 = vpop.f32.mrf.mxu1 }
 0x3a3   :  { %v3316_v48 = vmax.f32 %v3292_v62, %v3308_v59  ;;  %v3309_v14 = vmax.f32 %v3301_v57, 0.0  ;;  %v3304_v7 = vadd.f32 %v5169_v32, %v3259_v22  ;;  %v3260_v56 = vadd.f32 %v3250_v36, %v3165_v0 }
 0x3a4   :  { %v3315_v63 = vmax.f32 %v3291_v16, %v3307_v27  ;;  %v3310_v45 = vmax.f32 %v3302_v44, 0.0  ;;  %v3303_v51 = vadd.f32 %v5173_v60, %v3258_v35 }
 0x3a5   :  { %v3317_v42 = vmax.f32 %v3293_v34, %v3309_v14  ;;  %v3312_v18 = vmax.f32 %v3304_v7, 0.0  ;;  %v3305_v38 = vadd.f32 %v5177_v9, %v3260_v56  ;;  %v3322_v21 = vmax.f32 %v3314_v25, %v3316_v48 }
 0x3a6   :  { %v3311_v50 = vmax.f32 %v3303_v51, 0.0  ;;  %v3318_v29 = vmax.f32 %v3294_v13, %v3310_v45 }
 0x3a7   :  { %v3323_v40 = vmax.f32 %v3315_v63, %v3317_v42  ;;  %v3320_v5 = vmax.f32 %v3296_v53, %v3312_v18  ;;  %v3313_v26 = vmax.f32 %v3305_v38, 0.0 }
 0x3a8   :  { %v3319_v32 = vmax.f32 %v3295_v12, %v3311_v50 }
 0x3a9   :  { %v3620_v23 = vpack.c.bf16 %v3323_v40, %v3322_v21  ;;  %v3321_v33 = vmax.f32 %v3297_v20, %v3313_v26  ;;  %v3324_v60 = vmax.f32 %v3318_v29, %v3320_v5 }
 0x3ab   :  { %3338 = vst [vmem:[%s5209_s7] sm:$0xff] %v3620_v23  ;;  %v3325_v62 = vmax.f32 %v3319_v32, %v3321_v33 }
 0x3ad   :  { %v3621_v11 = vpack.c.bf16 %v3325_v62, %v3324_v60 }
 0x3af   :  { %3339 = vst [vmem:[%s5209_s7 + $0x8] sm:$0x77] %v3621_v11 }
 0x3b0   :  { %3344 = vsyncpa [#allocation3], 1 }
 0x3b1   :  { %3345 = vsyncpa [#allocation5], 1 }

</bundles_post_ra>
